<compile_context>
chip_gen: v5e
topology: v5e:2x2
jax: 0.10.0
libtpu: 0.0.40
codegen_flags: <defaults>
</compile_context>

<pallas_src>
import numpy as np
import jax
import jax.numpy as jnp
from jax import lax
from jax.experimental import pallas as pl
from jax.experimental.pallas import tpu as pltpu

SAMPLE_RATE = 16000
N_FFT = 320
HOP = 160
N_MELS = 80
N_FREQS = N_FFT // 2 + 1        # 161 onesided rfft bins
N_FFT_PAD = 384                 # 320 -> 3*128 (lane-aligned matmul contraction)
F_PAD = 256                     # 161 -> 2*128 (re / im halves of the DFT output)
N_MELS_PAD = 128                # 80  -> 128   (lane-dense mel axis)
GAMMA, MU, OMEGA, ETA, TAU = 5.0, 20.0, 20.0, 3.0, 2

ALPHA = (0.25, 0.5, 0.75, 1.0)
BETA = (-0.357193, -0.607143, -0.285714, 0.25, 1.0)

HALO_B = 2        # backward halo rows (silence +-2 circular roll)
HALO_A = 6        # forward halo rows (4 used by vel/acc & silence, +2 align pad)
MAX_TT = 256      # core frames per time tile (frame rows per step ~ 2*(256+8))


# --------------- host-side constant operators (built once at import) --------

def _build_windowed_dft():
    # Periodic Hann window folded into the real/imag DFT matrices; cos||sin
    # concatenated so the whole windowed STFT is one (rows, 384)@(384, 512) matmul.
    i = np.arange(N_FFT)
    win = 0.5 - 0.5 * np.cos(2.0 * np.pi * i / N_FFT)
    n = np.arange(N_FFT)[:, None].astype(np.float64)
    f = np.arange(N_FREQS)[None, :].astype(np.float64)
    ang = 2.0 * np.pi * n * f / N_FFT
    m = np.zeros((N_FFT_PAD, 2 * F_PAD), np.float32)
    m[:N_FFT, :N_FREQS] = win[:, None] * np.cos(ang)
    m[:N_FFT, F_PAD:F_PAD + N_FREQS] = win[:, None] * np.sin(ang)
    return m


def _build_mel_fb():
    # torchaudio MelScale defaults: htk scale, norm=None, f_min=0, f_max=sr//2.
    f_min, f_max = 0.0, float(SAMPLE_RATE // 2)
    all_freqs = np.linspace(0.0, SAMPLE_RATE // 2, N_FREQS)
    hz2mel = lambda f: 2595.0 * np.log10(1.0 + f / 700.0)
    mel2hz = lambda m: 700.0 * (10.0 ** (m / 2595.0) - 1.0)
    m_pts = np.linspace(hz2mel(f_min), hz2mel(f_max), N_MELS + 2)
    f_pts = mel2hz(m_pts)
    f_diff = f_pts[1:] - f_pts[:-1]
    slopes = f_pts[None, :] - all_freqs[:, None]
    down = -slopes[:, :-2] / f_diff[:-1]
    up = slopes[:, 2:] / f_diff[1:]
    fb = np.maximum(0.0, np.minimum(down, up)).astype(np.float32)
    out = np.zeros((F_PAD, N_MELS_PAD), np.float32)
    out[:N_FREQS, :N_MELS] = fb
    return out


_DFT_WIN = _build_windowed_dft()     # (384, 512)
_MEL_FB = _build_mel_fb()            # (256, 128)


# ------------------------------ kernel ---------------------------------------

def _make_kernel(T, Tt, TH):
    """Per-(batch, time-tile) kernel. T = true #frames, Tt = core rows/tile,
    TH = Tt + HALO_B + HALO_A = rows per signal in the tile (multiple of 8).
    Tile row j holds frame (tile_start - HALO_B + j) mod T, so local adjacency
    equals global circular adjacency."""

    def kernel(frames_ref, dft_ref, fb_ref, v_ref, out_ref, acc_ref):
        ti = pl.program_id(1)

        @pl.when(ti == 0)
        def _init():
            acc_ref[...] = jnp.zeros_like(acc_ref)

        # ---- mel stage: bf16 MXU matmuls, f32 accumulate ----
        y = jnp.dot(frames_ref[...], dft_ref[...],
                    preferred_element_type=jnp.float32)          # (2*TH, 512)
        sq = y * y
        mag = jnp.sqrt(sq[:, :F_PAD] + sq[:, F_PAD:])            # |STFT|, power=1
        mel = jnp.dot(mag.astype(jnp.bfloat16), fb_ref[...],
                      preferred_element_type=jnp.float32)        # (2*TH, 128)
        mel = jnp.where(mel > 0.0,
                        jnp.exp(jnp.log(jnp.maximum(mel, 1e-30)) / 3.0),
                        0.0)                                     # cube root, mel >= 0

        bc_full = mel[:TH]                     # enhanced mel, with halos
        d_full = bc_full - mel[TH:]            # enhanced - clean (linear ops below)

        bc = bc_full[HALO_B:HALO_B + Tt]       # core rows
        d0 = d_full[HALO_B:HALO_B + Tt]

        v = v_ref[...]                         # (Tt, 1) speech mask (0 on pad rows)
        g = ti * Tt + lax.broadcasted_iota(jnp.int32, (Tt, 1), 0)   # global frame id
        valid = (g < T).astype(jnp.float32)

        # envelope loss (asymmetric)
        asym = jnp.where(d0 > 0.0, d0, ETA * d0)
        env = jnp.sum(jnp.abs(asym) * v, axis=0, keepdims=True)     # (1, 128)

        # speech continuity: velocity / acceleration on d = B_c - B_s
        # (non-circular: contributions with g + k >= T are masked out)
        vel = jnp.zeros_like(d0)
        accd = BETA[0] * d0
        for k in range(1, 5):
            mk = (g + k < T).astype(jnp.float32)
            dk = (d_full[HALO_B + k:HALO_B + k + Tt] - d0) * mk
            vel = vel + ALPHA[k - 1] * dk
            accd = accd + BETA[k] * dk
        sp = jnp.sum((jnp.abs(vel) + jnp.abs(accd)) * v, axis=0, keepdims=True)

        # non-speech continuity: circular +-1, +-2 frame differences (torch.roll)
        vs = (1.0 - v) * valid
        sil_map = jnp.zeros_like(bc)
        for s in (-2, -1, 1, 2):
            sil_map = sil_map + jnp.abs(bc - bc_full[HALO_B + s:HALO_B + s + Tt])
        sil = jnp.sum(sil_map * vs, axis=0, keepdims=True)

        upd = jnp.concatenate(
            [env, sp, sil, jnp.zeros((5, N_MELS_PAD), jnp.float32)], axis=0)
        acc_ref[...] = acc_ref[...] + upd

        @pl.when(ti == pl.num_programs(1) - 1)
        def _fin():
            out_ref[...] = acc_ref[...]

    return kernel


# ------------------------------- JAX glue ------------------------------------

def energy_vad(clean, frame_size=N_FFT, frame_shift=HOP, thresh=1e-3):
    # TODO(synk): webrtcvad.Vad(3) has no JAX/Pallas equivalent; a deterministic
    # energy-threshold VAD with identical framing / output shape is used instead.
    peak = jnp.maximum(jnp.max(jnp.abs(clean), axis=-1, keepdims=True), 1e-12)
    q = jnp.trunc(clean / peak * 32767.0) / 32767.0             # emulate int16 quant
    B, L = clean.shape
    nfr = (L - frame_size) // frame_shift + 1
    idx = np.arange(nfr)[:, None] * frame_shift + np.arange(frame_size)[None, :]
    fr = q[:, idx]                                              # (B, nfr, frame_size)
    energy = jnp.mean(fr * fr, axis=-1)
    flags = (energy > thresh).astype(jnp.float32)
    z = jnp.zeros((B, 1), jnp.float32)
    return jnp.concatenate([z, flags, z], axis=1)               # (B, nfr + 2) == (B, T)


def si_snr_loss(enhanced, clean):
    # Plain XLA: shares no data with the mel path; XLA handles this reduction
    # at roofline and it would otherwise pin (B, L) waveforms in kernel VMEM.
    e = enhanced - jnp.mean(enhanced, axis=-1, keepdims=True)
    c = clean - jnp.mean(clean, axis=-1, keepdims=True)
    dot = jnp.sum(e * c, axis=-1, keepdims=True)
    te = jnp.sum(c * c, axis=-1, keepdims=True)
    s_t = dot / (te + 1e-8) * c
    e_n = e - s_t
    st_e = jnp.sum(s_t * s_t, axis=-1)
    en_e = jnp.sum(e_n * e_n, axis=-1)
    return -jnp.mean(10.0 * jnp.log10(st_e / (en_e + 1e-8)))


@jax.jit
def nda_loss(enhanced, clean):
    B, L = enhanced.shape
    T = 1 + L // HOP                               # mel frames per clip
    Tt = min(MAX_TT, ((T + 7) // 8) * 8)           # core frames per time tile (mult of 8)
    NT = -(-T // Tt)                               # number of time tiles
    TH = Tt + HALO_B + HALO_A                      # rows per signal per tile (mult of 8)

    # STFT frames (un-windowed; Hann folded into DFT matrix), center=True reflect pad.
    # TODO(synk): frames are still materialized with 2x hop overlap in HBM; building
    # each frame tile in-kernel from the padded waveform (pl.ds, hop=160) would
    # roughly halve the dominant input's DMA traffic.
    wav = jnp.concatenate([enhanced, clean], axis=0)                 # (2B, L)
    pad = N_FFT // 2
    padded = jnp.pad(wav, ((0, 0), (pad, pad)), mode="reflect")
    fidx = np.arange(T)[:, None] * HOP + np.arange(N_FFT)[None, :]
    frames = padded[:, fidx]                                         # (2B, T, 320)
    frames = jnp.pad(frames, ((0, 0), (0, 0), (0, N_FFT_PAD - N_FFT)))
    frames = frames.astype(jnp.bfloat16)                             # bf16 MXU operand

    # Halo-tiled frames: tile row j = frame (ti*Tt - HALO_B + j) mod T, so each
    # time tile is self-contained for the +-2 circular and +4 banded windows.
    tidx = (np.arange(NT)[:, None] * Tt - HALO_B + np.arange(TH)[None, :]) % T
    tiled = jnp.concatenate([frames[:B][:, tidx], frames[B:][:, tidx]], axis=2)
    # (B, NT, 2*TH, 384): rows [0:TH]=enhanced tile, [TH:2*TH]=clean tile

    V = energy_vad(clean)                                            # (B, T)
    Vp = jnp.pad(V, ((0, 0), (0, NT * Tt - T)))[:, :, None]          # (B, NT*Tt, 1)

    dft = jnp.asarray(_DFT_WIN, dtype=jnp.bfloat16)
    fb = jnp.asarray(_MEL_FB, dtype=jnp.bfloat16)

    parts = pl.pallas_call(
        _make_kernel(T, Tt, TH),
        out_shape=jax.ShapeDtypeStruct((B, 8, N_MELS_PAD), jnp.float32),
        grid=(B, NT),
        in_specs=[
            pl.BlockSpec((None, None, 2 * TH, N_FFT_PAD), lambda b, t: (b, t, 0, 0)),
            pl.BlockSpec((N_FFT_PAD, 2 * F_PAD), lambda b, t: (0, 0)),   # resident
            pl.BlockSpec((F_PAD, N_MELS_PAD), lambda b, t: (0, 0)),      # resident
            pl.BlockSpec((None, Tt, 1), lambda b, t: (b, t, 0)),
        ],
        out_specs=pl.BlockSpec((None, 8, N_MELS_PAD), lambda b, t: (b, 0, 0)),
        scratch_shapes=[pltpu.VMEM((8, N_MELS_PAD), jnp.float32)],
        compiler_params=pltpu.CompilerParams(
            dimension_semantics=("parallel", "arbitrary"),
            vmem_limit_bytes=32 * 1024 * 1024),
    )(tiled, dft, fb, Vp)

    denom = float(B * T * N_MELS)                  # torch.mean denominator
    l_env = jnp.sum(parts[:, 0, :]) / denom
    l_sp = jnp.sum(parts[:, 1, :]) / denom
    l_sil = jnp.sum(parts[:, 2, :]) / denom
    # TODO(synk): pallas_call has no autodiff; training use needs a custom_vjp.
    return si_snr_loss(enhanced, clean) + GAMMA * l_env + MU * l_sp + OMEGA * l_sil


# --------------------------------- main ---------------------------------------

if __name__ == "__main__":
    B, L = 2, 2400                       # 0.15 s per clip -> T = 16 mel frames
    key = jax.random.PRNGKey(0)
    k1, k2 = jax.random.split(key)

    t = jnp.arange(L, dtype=jnp.float32) / SAMPLE_RATE
    envelope = (jnp.arange(L) >= L // 3).astype(jnp.float32)    # leading silence
    clean = jnp.stack([
        jnp.sin(2.0 * jnp.pi * 440.0 * t) * envelope,
        jnp.sin(2.0 * jnp.pi * 220.0 * t) * envelope,
    ]).astype(jnp.float32)
    clean = clean + 0.002 * jax.random.normal(k1, (B, L), jnp.float32)
    enhanced = clean + 0.05 * jax.random.normal(k2, (B, L), jnp.float32)

    loss = jax.block_until_ready(nda_loss(enhanced, clean))
    assert bool(jnp.isfinite(loss))
    print("KERNEL_OK")
</pallas_src>

<mosaic_0001>
module attributes {stable_mosaic.version = 11 : i64} {
  func.func @kernel(%arg0: i32, %arg1: i32, %arg2: memref<1x1x48x384xbf16, #tpu.memory_space<vmem>>, %arg3: memref<384x512xbf16, #tpu.memory_space<vmem>>, %arg4: memref<256x128xbf16, #tpu.memory_space<vmem>>, %arg5: memref<1x16x1xf32, #tpu.memory_space<vmem>>, %arg6: memref<1x8x128xf32, #tpu.memory_space<vmem>>, %arg7: memref<8x128xf32, #tpu.memory_space<vmem>>) attributes {dimension_semantics = [#tpu.dimension_semantics<parallel>, #tpu.dimension_semantics<arbitrary>], iteration_bounds = array<i64: 2, 1>, scalar_prefetch = 0 : i64, scratch_operands = 1 : i64, tpu.core_type = #tpu.core_type<tc>, window_params = [{transform_indices = @transform_0, window_bounds = array<i64: 1, 1, 48, 384>}, {pipeline_mode = #tpu.pipeline_mode<synchronous>, transform_indices = @transform_1, window_bounds = array<i64: 384, 512>}, {pipeline_mode = #tpu.pipeline_mode<synchronous>, transform_indices = @transform_2, window_bounds = array<i64: 256, 128>}, {transform_indices = @transform_3, window_bounds = array<i64: 1, 16, 1>}, {transform_indices = @transform_4, window_bounds = array<i64: 1, 8, 128>}]} {
    %c0_i32 = arith.constant 0 : i32
    %0 = arith.cmpi eq, %arg1, %c0_i32 : i32
    %1 = arith.extui %0 : i1 to i32
    %c0_i32_0 = arith.constant 0 : i32
    %2 = arith.cmpi ne, %1, %c0_i32_0 : i32
    scf.if %2 {
      %cst_45 = arith.constant 0.000000e+00 : f32
      %156 = vector.broadcast %cst_45 : f32 to vector<8x128xf32>
      %c0_46 = arith.constant 0 : index
      %c0_47 = arith.constant 0 : index
      %157 = vector.load %arg7[%c0_46, %c0_47] : memref<8x128xf32, #tpu.memory_space<vmem>>, vector<8x128xf32>
      tpu.vector_store %arg7[%c0_46, %c0_47], %156 {strides = array<i32>} : memref<8x128xf32, #tpu.memory_space<vmem>>, vector<8x128xf32>,
    } else {
    }
    %c0 = arith.constant 0 : index
    %c0_1 = arith.constant 0 : index
    %c0_2 = arith.constant 0 : index
    %c0_3 = arith.constant 0 : index
    %3 = vector.load %arg2[%c0, %c0_1, %c0_2, %c0_3] : memref<1x1x48x384xbf16, #tpu.memory_space<vmem>>, vector<1x1x48x384xbf16>
    %4 = vector.shape_cast %3 : vector<1x1x48x384xbf16> to vector<48x384xbf16>
    %c0_4 = arith.constant 0 : index
    %c0_5 = arith.constant 0 : index
    %5 = vector.load %arg3[%c0_4, %c0_5] : memref<384x512xbf16, #tpu.memory_space<vmem>>, vector<384x512xbf16>
    %cst = arith.constant dense<0.000000e+00> : vector<48x512xf32>
    %6 = tpu.matmul %4, %5, %cst {dimension_numbers = #tpu.dot_dimension_numbers<[1], [0], [0], [1], [0, 0, 1, 1], [], []>} : vector<48x384xbf16>, vector<384x512xbf16>, vector<48x512xf32> -> vector<48x512xf32>
    %7 = arith.mulf %6, %6 : vector<48x512xf32>
    %8 = vector.extract_strided_slice %7 {offsets = [0, 0], sizes = [48, 256], strides = [1, 1]} : vector<48x512xf32> to vector<48x256xf32>
    %9 = vector.extract_strided_slice %7 {offsets = [0, 256], sizes = [48, 256], strides = [1, 1]} : vector<48x512xf32> to vector<48x256xf32>
    %10 = arith.addf %8, %9 : vector<48x256xf32>
    %11 = math.sqrt %10 : vector<48x256xf32>
    %12 = arith.truncf %11 : vector<48x256xf32> to vector<48x256xbf16>
    %c0_6 = arith.constant 0 : index
    %c0_7 = arith.constant 0 : index
    %13 = vector.load %arg4[%c0_6, %c0_7] : memref<256x128xbf16, #tpu.memory_space<vmem>>, vector<256x128xbf16>
    %cst_8 = arith.constant dense<0.000000e+00> : vector<48x128xf32>
    %14 = tpu.matmul %12, %13, %cst_8 {dimension_numbers = #tpu.dot_dimension_numbers<[1], [0], [0], [1], [0, 0, 1, 1], [], []>} : vector<48x256xbf16>, vector<256x128xbf16>, vector<48x128xf32> -> vector<48x128xf32>
    %cst_9 = arith.constant 0.000000e+00 : f32
    %15 = vector.broadcast %cst_9 : f32 to vector<48x128xf32>
    %16 = arith.cmpf ogt, %14, %15 : vector<48x128xf32>
    %cst_10 = arith.constant 1.000000e-30 : f32
    %17 = vector.broadcast %cst_10 : f32 to vector<48x128xf32>
    %18 = arith.maximumf %14, %17 : vector<48x128xf32>
    %19 = math.log %18 : vector<48x128xf32>
    %cst_11 = arith.constant 3.000000e+00 : f32
    %20 = vector.broadcast %cst_11 : f32 to vector<48x128xf32>
    %21 = arith.divf %19, %20 : vector<48x128xf32>
    %22 = math.exp %21 : vector<48x128xf32>
    %cst_12 = arith.constant 0.000000e+00 : f32
    %23 = vector.broadcast %cst_12 : f32 to vector<48x128xf32>
    %24 = arith.select %16, %22, %23 : vector<48x128xi1>, vector<48x128xf32>
    %25 = vector.extract_strided_slice %24 {offsets = [0, 0], sizes = [24, 128], strides = [1, 1]} : vector<48x128xf32> to vector<24x128xf32>
    %26 = vector.extract_strided_slice %24 {offsets = [24, 0], sizes = [24, 128], strides = [1, 1]} : vector<48x128xf32> to vector<24x128xf32>
    %27 = arith.subf %25, %26 : vector<24x128xf32>
    %28 = vector.extract_strided_slice %25 {offsets = [2, 0], sizes = [16, 128], strides = [1, 1]} : vector<24x128xf32> to vector<16x128xf32>
    %29 = vector.extract_strided_slice %27 {offsets = [2, 0], sizes = [16, 128], strides = [1, 1]} : vector<24x128xf32> to vector<16x128xf32>
    %c0_13 = arith.constant 0 : index
    %c0_14 = arith.constant 0 : index
    %c0_15 = arith.constant 0 : index
    %30 = vector.load %arg5[%c0_13, %c0_14, %c0_15] : memref<1x16x1xf32, #tpu.memory_space<vmem>>, vector<1x16x1xf32>
    %31 = vector.shape_cast %30 : vector<1x16x1xf32> to vector<16x1xf32>
    %c16_i32 = arith.constant 16 : i32
    %32 = arith.muli %arg1, %c16_i32 : i32
    %33 = tpu.iota {dimensions = array<i32: 0>} : vector<16x1xi32>
    %34 = vector.broadcast %32 : i32 to vector<16x1xi32>
    %35 = arith.addi %34, %33 : vector<16x1xi32>
    %c16_i32_16 = arith.constant 16 : i32
    %36 = vector.broadcast %c16_i32_16 : i32 to vector<16x1xi32>
    %37 = arith.cmpi slt, %35, %36 : vector<16x1xi32>
    %38 = arith.extui %37 : vector<16x1xi1> to vector<16x1xi32>
    %39 = arith.sitofp %38 : vector<16x1xi32> to vector<16x1xf32>
    %cst_17 = arith.constant 0.000000e+00 : f32
    %40 = vector.broadcast %cst_17 : f32 to vector<16x128xf32>
    %41 = arith.cmpf ogt, %29, %40 : vector<16x128xf32>
    %cst_18 = arith.constant 3.000000e+00 : f32
    %42 = vector.broadcast %cst_18 : f32 to vector<16x128xf32>
    %43 = arith.mulf %42, %29 : vector<16x128xf32>
    %44 = arith.select %41, %29, %43 : vector<16x128xi1>, vector<16x128xf32>
    %45 = math.absf %44 : vector<16x128xf32>
    %46 = vector.broadcast %31 : vector<16x1xf32> to vector<16x128xf32>
    %47 = arith.mulf %45, %46 : vector<16x128xf32>
    %cst_19 = arith.constant dense<0.000000e+00> : vector<128xf32>
    %48 = vector.multi_reduction <add>, %47, %cst_19 [0] : vector<16x128xf32> to vector<128xf32>
    %49 = vector.shape_cast %48 : vector<128xf32> to vector<1x128xf32>
    %cst_20 = arith.constant 0.000000e+00 : f32
    %50 = vector.broadcast %cst_20 : f32 to vector<16x128xf32>
    %cst_21 = arith.constant -3.571930e-01 : f32
    %51 = vector.broadcast %cst_21 : f32 to vector<16x128xf32>
    %52 = arith.mulf %51, %29 : vector<16x128xf32>
    %c1_i32 = arith.constant 1 : i32
    %53 = vector.broadcast %c1_i32 : i32 to vector<16x1xi32>
    %54 = arith.addi %35, %53 : vector<16x1xi32>
    %c16_i32_22 = arith.constant 16 : i32
    %55 = vector.broadcast %c16_i32_22 : i32 to vector<16x1xi32>
    %56 = arith.cmpi slt, %54, %55 : vector<16x1xi32>
    %57 = arith.extui %56 : vector<16x1xi1> to vector<16x1xi32>
    %58 = arith.sitofp %57 : vector<16x1xi32> to vector<16x1xf32>
    %59 = vector.extract_strided_slice %27 {offsets = [3, 0], sizes = [16, 128], strides = [1, 1]} : vector<24x128xf32> to vector<16x128xf32>
    %60 = arith.subf %59, %29 : vector<16x128xf32>
    %61 = vector.broadcast %58 : vector<16x1xf32> to vector<16x128xf32>
    %62 = arith.mulf %60, %61 : vector<16x128xf32>
    %cst_23 = arith.constant 2.500000e-01 : f32
    %63 = vector.broadcast %cst_23 : f32 to vector<16x128xf32>
    %64 = arith.mulf %63, %62 : vector<16x128xf32>
    %65 = arith.addf %50, %64 : vector<16x128xf32>
    %cst_24 = arith.constant -0.607142984 : f32
    %66 = vector.broadcast %cst_24 : f32 to vector<16x128xf32>
    %67 = arith.mulf %66, %62 : vector<16x128xf32>
    %68 = arith.addf %52, %67 : vector<16x128xf32>
    %c2_i32 = arith.constant 2 : i32
    %69 = vector.broadcast %c2_i32 : i32 to vector<16x1xi32>
    %70 = arith.addi %35, %69 : vector<16x1xi32>
    %c16_i32_25 = arith.constant 16 : i32
    %71 = vector.broadcast %c16_i32_25 : i32 to vector<16x1xi32>
    %72 = arith.cmpi slt, %70, %71 : vector<16x1xi32>
    %73 = arith.extui %72 : vector<16x1xi1> to vector<16x1xi32>
    %74 = arith.sitofp %73 : vector<16x1xi32> to vector<16x1xf32>
    %75 = vector.extract_strided_slice %27 {offsets = [4, 0], sizes = [16, 128], strides = [1, 1]} : vector<24x128xf32> to vector<16x128xf32>
    %76 = arith.subf %75, %29 : vector<16x128xf32>
    %77 = vector.broadcast %74 : vector<16x1xf32> to vector<16x128xf32>
    %78 = arith.mulf %76, %77 : vector<16x128xf32>
    %cst_26 = arith.constant 5.000000e-01 : f32
    %79 = vector.broadcast %cst_26 : f32 to vector<16x128xf32>
    %80 = arith.mulf %79, %78 : vector<16x128xf32>
    %81 = arith.addf %65, %80 : vector<16x128xf32>
    %cst_27 = arith.constant -2.857140e-01 : f32
    %82 = vector.broadcast %cst_27 : f32 to vector<16x128xf32>
    %83 = arith.mulf %82, %78 : vector<16x128xf32>
    %84 = arith.addf %68, %83 : vector<16x128xf32>
    %c3_i32 = arith.constant 3 : i32
    %85 = vector.broadcast %c3_i32 : i32 to vector<16x1xi32>
    %86 = arith.addi %35, %85 : vector<16x1xi32>
    %c16_i32_28 = arith.constant 16 : i32
    %87 = vector.broadcast %c16_i32_28 : i32 to vector<16x1xi32>
    %88 = arith.cmpi slt, %86, %87 : vector<16x1xi32>
    %89 = arith.extui %88 : vector<16x1xi1> to vector<16x1xi32>
    %90 = arith.sitofp %89 : vector<16x1xi32> to vector<16x1xf32>
    %91 = vector.extract_strided_slice %27 {offsets = [5, 0], sizes = [16, 128], strides = [1, 1]} : vector<24x128xf32> to vector<16x128xf32>
    %92 = arith.subf %91, %29 : vector<16x128xf32>
    %93 = vector.broadcast %90 : vector<16x1xf32> to vector<16x128xf32>
    %94 = arith.mulf %92, %93 : vector<16x128xf32>
    %cst_29 = arith.constant 7.500000e-01 : f32
    %95 = vector.broadcast %cst_29 : f32 to vector<16x128xf32>
    %96 = arith.mulf %95, %94 : vector<16x128xf32>
    %97 = arith.addf %81, %96 : vector<16x128xf32>
    %cst_30 = arith.constant 2.500000e-01 : f32
    %98 = vector.broadcast %cst_30 : f32 to vector<16x128xf32>
    %99 = arith.mulf %98, %94 : vector<16x128xf32>
    %100 = arith.addf %84, %99 : vector<16x128xf32>
    %c4_i32 = arith.constant 4 : i32
    %101 = vector.broadcast %c4_i32 : i32 to vector<16x1xi32>
    %102 = arith.addi %35, %101 : vector<16x1xi32>
    %c16_i32_31 = arith.constant 16 : i32
    %103 = vector.broadcast %c16_i32_31 : i32 to vector<16x1xi32>
    %104 = arith.cmpi slt, %102, %103 : vector<16x1xi32>
    %105 = arith.extui %104 : vector<16x1xi1> to vector<16x1xi32>
    %106 = arith.sitofp %105 : vector<16x1xi32> to vector<16x1xf32>
    %107 = vector.extract_strided_slice %27 {offsets = [6, 0], sizes = [16, 128], strides = [1, 1]} : vector<24x128xf32> to vector<16x128xf32>
    %108 = arith.subf %107, %29 : vector<16x128xf32>
    %109 = vector.broadcast %106 : vector<16x1xf32> to vector<16x128xf32>
    %110 = arith.mulf %108, %109 : vector<16x128xf32>
    %cst_32 = arith.constant 1.000000e+00 : f32
    %111 = vector.broadcast %cst_32 : f32 to vector<16x128xf32>
    %112 = arith.mulf %111, %110 : vector<16x128xf32>
    %113 = arith.addf %97, %112 : vector<16x128xf32>
    %cst_33 = arith.constant 1.000000e+00 : f32
    %114 = vector.broadcast %cst_33 : f32 to vector<16x128xf32>
    %115 = arith.mulf %114, %110 : vector<16x128xf32>
    %116 = arith.addf %100, %115 : vector<16x128xf32>
    %117 = math.absf %113 : vector<16x128xf32>
    %118 = math.absf %116 : vector<16x128xf32>
    %119 = arith.addf %117, %118 : vector<16x128xf32>
    %120 = vector.broadcast %31 : vector<16x1xf32> to vector<16x128xf32>
    %121 = arith.mulf %119, %120 : vector<16x128xf32>
    %cst_34 = arith.constant dense<0.000000e+00> : vector<128xf32>
    %122 = vector.multi_reduction <add>, %121, %cst_34 [0] : vector<16x128xf32> to vector<128xf32>
    %123 = vector.shape_cast %122 : vector<128xf32> to vector<1x128xf32>
    %cst_35 = arith.constant 1.000000e+00 : f32
    %124 = vector.broadcast %cst_35 : f32 to vector<16x1xf32>
    %125 = arith.subf %124, %31 : vector<16x1xf32>
    %126 = arith.mulf %125, %39 : vector<16x1xf32>
    %cst_36 = arith.constant 0.000000e+00 : f32
    %127 = vector.broadcast %cst_36 : f32 to vector<16x128xf32>
    %128 = vector.extract_strided_slice %25 {offsets = [0, 0], sizes = [16, 128], strides = [1, 1]} : vector<24x128xf32> to vector<16x128xf32>
    %129 = arith.subf %28, %128 : vector<16x128xf32>
    %130 = math.absf %129 : vector<16x128xf32>
    %131 = arith.addf %127, %130 : vector<16x128xf32>
    %132 = vector.extract_strided_slice %25 {offsets = [1, 0], sizes = [16, 128], strides = [1, 1]} : vector<24x128xf32> to vector<16x128xf32>
    %133 = arith.subf %28, %132 : vector<16x128xf32>
    %134 = math.absf %133 : vector<16x128xf32>
    %135 = arith.addf %131, %134 : vector<16x128xf32>
    %136 = vector.extract_strided_slice %25 {offsets = [3, 0], sizes = [16, 128], strides = [1, 1]} : vector<24x128xf32> to vector<16x128xf32>
    %137 = arith.subf %28, %136 : vector<16x128xf32>
    %138 = math.absf %137 : vector<16x128xf32>
    %139 = arith.addf %135, %138 : vector<16x128xf32>
    %140 = vector.extract_strided_slice %25 {offsets = [4, 0], sizes = [16, 128], strides = [1, 1]} : vector<24x128xf32> to vector<16x128xf32>
    %141 = arith.subf %28, %140 : vector<16x128xf32>
    %142 = math.absf %141 : vector<16x128xf32>
    %143 = arith.addf %139, %142 : vector<16x128xf32>
    %144 = vector.broadcast %126 : vector<16x1xf32> to vector<16x128xf32>
    %145 = arith.mulf %143, %144 : vector<16x128xf32>
    %cst_37 = arith.constant dense<0.000000e+00> : vector<128xf32>
    %146 = vector.multi_reduction <add>, %145, %cst_37 [0] : vector<16x128xf32> to vector<128xf32>
    %147 = vector.shape_cast %146 : vector<128xf32> to vector<1x128xf32>
    %cst_38 = arith.constant 0.000000e+00 : f32
    %148 = vector.broadcast %cst_38 : f32 to vector<5x128xf32>
    %149 = tpu.concatenate %49, %123, %147, %148 in 0 : vector<1x128xf32>, vector<1x128xf32>, vector<1x128xf32>, vector<5x128xf32> -> vector<8x128xf32>
    %c0_39 = arith.constant 0 : index
    %c0_40 = arith.constant 0 : index
    %150 = vector.load %arg7[%c0_39, %c0_40] : memref<8x128xf32, #tpu.memory_space<vmem>>, vector<8x128xf32>
    %151 = arith.addf %150, %149 : vector<8x128xf32>
    %c0_41 = arith.constant 0 : index
    %c0_42 = arith.constant 0 : index
    %152 = vector.load %arg7[%c0_41, %c0_42] : memref<8x128xf32, #tpu.memory_space<vmem>>, vector<8x128xf32>
    tpu.vector_store %arg7[%c0_41, %c0_42], %151 {strides = array<i32>} : memref<8x128xf32, #tpu.memory_space<vmem>>, vector<8x128xf32>,
    %c0_i32_43 = arith.constant 0 : i32
    %153 = arith.cmpi eq, %arg1, %c0_i32_43 : i32
    %154 = arith.extui %153 : i1 to i32
    %c0_i32_44 = arith.constant 0 : i32
    %155 = arith.cmpi ne, %154, %c0_i32_44 : i32
    scf.if %155 {
      %c0_45 = arith.constant 0 : index
      %c0_46 = arith.constant 0 : index
      %156 = vector.load %arg7[%c0_45, %c0_46] : memref<8x128xf32, #tpu.memory_space<vmem>>, vector<8x128xf32>
      %c0_47 = arith.constant 0 : index
      %c0_48 = arith.constant 0 : index
      %c0_49 = arith.constant 0 : index
      %157 = vector.load %arg6[%c0_47, %c0_48, %c0_49] : memref<1x8x128xf32, #tpu.memory_space<vmem>>, vector<1x8x128xf32>
      %158 = vector.shape_cast %157 : vector<1x8x128xf32> to vector<8x128xf32>
      %159 = vector.shape_cast %156 : vector<8x128xf32> to vector<1x8x128xf32>
      tpu.vector_store %arg6[%c0_47, %c0_48, %c0_49], %159 {strides = array<i32>} : memref<1x8x128xf32, #tpu.memory_space<vmem>>, vector<1x8x128xf32>,
    } else {
    }
    return
  }
  func.func @transform_0(%arg0: i32, %arg1: i32) -> (i32, i32, i32, i32) {
    %c0_i32 = arith.constant 0 : i32
    %c0_i32_0 = arith.constant 0 : i32
    %c0_i32_1 = arith.constant 0 : i32
    return %arg0, %arg1, %c0_i32, %c0_i32_0 : i32, i32, i32, i32
  }
  func.func @transform_1(%arg0: i32, %arg1: i32) -> (i32, i32) {
    %c0_i32 = arith.constant 0 : i32
    %c0_i32_0 = arith.constant 0 : i32
    %c0_i32_1 = arith.constant 0 : i32
    return %c0_i32, %c0_i32_0 : i32, i32
  }
  func.func @transform_2(%arg0: i32, %arg1: i32) -> (i32, i32) {
    %c0_i32 = arith.constant 0 : i32
    %c0_i32_0 = arith.constant 0 : i32
    %c0_i32_1 = arith.constant 0 : i32
    return %c0_i32, %c0_i32_0 : i32, i32
  }
  func.func @transform_3(%arg0: i32, %arg1: i32) -> (i32, i32, i32) {
    %c0_i32 = arith.constant 0 : i32
    %c0_i32_0 = arith.constant 0 : i32
    return %arg0, %arg1, %c0_i32 : i32, i32, i32
  }
  func.func @transform_4(%arg0: i32, %arg1: i32) -> (i32, i32, i32) {
    %c0_i32 = arith.constant 0 : i32
    %c0_i32_0 = arith.constant 0 : i32
    %c0_i32_1 = arith.constant 0 : i32
    return %arg0, %c0_i32, %c0_i32_0 : i32, i32, i32
  }
}

</mosaic_0001>

<bundles_post_ra>
// kernel: mul.1
= control target key start
LH: loop header
LB: loop body
LE: loop exit
PB: predicated region body
PF: predicated region fallthrough
CT: control target
= control target key end

     0   :  { %s13895_s0 = inlined_call_operand.vmem [shape: f32[4480,2], index: 0, kind: input, shape index: {}, may-alias: {0,1}]   ;;  %s13896_s1 = inlined_call_operand.vmem [shape: f32[4480,2], index: 1, kind: input, shape index: {}, may-alias: {0,1}]   ;;  %s13897_s2 = inlined_call_operand.vmem [shape: f32[4480,2], index: 2, kind: output, shape index: {}]  }
   0x1   :  { %v3_v0 = vld [vmem:[%s13895_s0] sm:$0xff]  ;;  %v5600_v2 = vld [vmem:[%s13895_s0 + $0x8] sm:$0xff]  ;;  %v5603_v5 = vld [vmem:[%s13895_s0 + $0x10] sm:$0xff] }
   0x2   :  { %v4_v1 = vld [vmem:[%s13896_s1] sm:$0xff]  ;;  %v5601_v4 = vld [vmem:[%s13896_s1 + $0x8] sm:$0xff]  ;;  %v5604_v6 = vld [vmem:[%s13896_s1 + $0x10] sm:$0xff] }
   0x3   :  { %v7_v3 = vmul.f32 %v4_v1, %v3_v0  ;;  %v16_v7 = vmul.f32 %v5601_v4, %v5600_v2  ;;  %v26_v8 = vmul.f32 %v5604_v6, %v5603_v5  ;;  %v5606_v9 = vld [vmem:[%s13895_s0 + $0x18] sm:$0xff]  ;;  %v5609_v11 = vld [vmem:[%s13895_s0 + $0x20] sm:$0xff]  ;;  %v5612_v14 = vld [vmem:[%s13895_s0 + $0x28] sm:$0xff] }
   0x4   :  { %v5607_v10 = vld [vmem:[%s13896_s1 + $0x18] sm:$0xff]  ;;  %v5610_v13 = vld [vmem:[%s13896_s1 + $0x20] sm:$0xff]  ;;  %v5613_v15 = vld [vmem:[%s13896_s1 + $0x28] sm:$0xff] }
   0x5   :  { %9 = vst [vmem:[%s13897_s2] sm:$0xff] %v7_v3  ;;  %v36_v12 = vmul.f32 %v5607_v10, %v5606_v9  ;;  %v46_v16 = vmul.f32 %v5610_v13, %v5609_v11  ;;  %v56_v17 = vmul.f32 %v5613_v15, %v5612_v14  ;;  %v5615_v18 = vld [vmem:[%s13895_s0 + $0x30] sm:$0xff]  ;;  %v5618_v20 = vld [vmem:[%s13895_s0 + $0x38] sm:$0xff]  ;;  %v5621_v23 = vld [vmem:[%s13895_s0 + $0x40] sm:$0xff] }
   0x6   :  { %5602 = vst [vmem:[%s13897_s2 + $0x8] sm:$0xff] %v16_v7  ;;  %v5616_v19 = vld [vmem:[%s13896_s1 + $0x30] sm:$0xff]  ;;  %v5619_v22 = vld [vmem:[%s13896_s1 + $0x38] sm:$0xff]  ;;  %v5622_v24 = vld [vmem:[%s13896_s1 + $0x40] sm:$0xff] }
   0x7   :  { %5605 = vst [vmem:[%s13897_s2 + $0x10] sm:$0xff] %v26_v8  ;;  %v66_v21 = vmul.f32 %v5616_v19, %v5615_v18  ;;  %v76_v25 = vmul.f32 %v5619_v22, %v5618_v20  ;;  %v86_v26 = vmul.f32 %v5622_v24, %v5621_v23  ;;  %v5624_v27 = vld [vmem:[%s13895_s0 + $0x48] sm:$0xff]  ;;  %v5627_v29 = vld [vmem:[%s13895_s0 + $0x50] sm:$0xff]  ;;  %v5630_v32 = vld [vmem:[%s13895_s0 + $0x58] sm:$0xff] }
   0x8   :  { %5608 = vst [vmem:[%s13897_s2 + $0x18] sm:$0xff] %v36_v12  ;;  %v5625_v28 = vld [vmem:[%s13896_s1 + $0x48] sm:$0xff]  ;;  %v5628_v31 = vld [vmem:[%s13896_s1 + $0x50] sm:$0xff]  ;;  %v5631_v33 = vld [vmem:[%s13896_s1 + $0x58] sm:$0xff] }
   0x9   :  { %5611 = vst [vmem:[%s13897_s2 + $0x20] sm:$0xff] %v46_v16  ;;  %v96_v30 = vmul.f32 %v5625_v28, %v5624_v27  ;;  %v106_v34 = vmul.f32 %v5628_v31, %v5627_v29  ;;  %v116_v35 = vmul.f32 %v5631_v33, %v5630_v32  ;;  %v5633_v36 = vld [vmem:[%s13895_s0 + $0x60] sm:$0xff]  ;;  %v5636_v38 = vld [vmem:[%s13895_s0 + $0x68] sm:$0xff]  ;;  %v5639_v41 = vld [vmem:[%s13895_s0 + $0x70] sm:$0xff] }
   0xa   :  { %5614 = vst [vmem:[%s13897_s2 + $0x28] sm:$0xff] %v56_v17  ;;  %v5634_v37 = vld [vmem:[%s13896_s1 + $0x60] sm:$0xff]  ;;  %v5637_v40 = vld [vmem:[%s13896_s1 + $0x68] sm:$0xff]  ;;  %v5640_v42 = vld [vmem:[%s13896_s1 + $0x70] sm:$0xff] }
   0xb   :  { %5617 = vst [vmem:[%s13897_s2 + $0x30] sm:$0xff] %v66_v21  ;;  %v126_v39 = vmul.f32 %v5634_v37, %v5633_v36  ;;  %v136_v43 = vmul.f32 %v5637_v40, %v5636_v38  ;;  %v146_v44 = vmul.f32 %v5640_v42, %v5639_v41  ;;  %v5642_v45 = vld [vmem:[%s13895_s0 + $0x78] sm:$0xff]  ;;  %v5645_v47 = vld [vmem:[%s13895_s0 + $0x80] sm:$0xff]  ;;  %v5648_v50 = vld [vmem:[%s13895_s0 + $0x88] sm:$0xff] }
   0xc   :  { %5620 = vst [vmem:[%s13897_s2 + $0x38] sm:$0xff] %v76_v25  ;;  %v5643_v46 = vld [vmem:[%s13896_s1 + $0x78] sm:$0xff]  ;;  %v5646_v49 = vld [vmem:[%s13896_s1 + $0x80] sm:$0xff]  ;;  %v5649_v51 = vld [vmem:[%s13896_s1 + $0x88] sm:$0xff] }
   0xd   :  { %5623 = vst [vmem:[%s13897_s2 + $0x40] sm:$0xff] %v86_v26  ;;  %v156_v48 = vmul.f32 %v5643_v46, %v5642_v45  ;;  %v166_v52 = vmul.f32 %v5646_v49, %v5645_v47  ;;  %v176_v53 = vmul.f32 %v5649_v51, %v5648_v50  ;;  %v5651_v54 = vld [vmem:[%s13895_s0 + $0x90] sm:$0xff]  ;;  %v5654_v56 = vld [vmem:[%s13895_s0 + $0x98] sm:$0xff]  ;;  %v5657_v59 = vld [vmem:[%s13895_s0 + $0xa0] sm:$0xff] }
   0xe   :  { %5626 = vst [vmem:[%s13897_s2 + $0x48] sm:$0xff] %v96_v30  ;;  %v5652_v55 = vld [vmem:[%s13896_s1 + $0x90] sm:$0xff]  ;;  %v5655_v58 = vld [vmem:[%s13896_s1 + $0x98] sm:$0xff]  ;;  %v5658_v60 = vld [vmem:[%s13896_s1 + $0xa0] sm:$0xff] }
   0xf   :  { %5629 = vst [vmem:[%s13897_s2 + $0x50] sm:$0xff] %v106_v34  ;;  %v186_v57 = vmul.f32 %v5652_v55, %v5651_v54  ;;  %v196_v61 = vmul.f32 %v5655_v58, %v5654_v56  ;;  %v206_v62 = vmul.f32 %v5658_v60, %v5657_v59  ;;  %v5660_v63 = vld [vmem:[%s13895_s0 + $0xa8] sm:$0xff]  ;;  %v5663_v1 = vld [vmem:[%s13895_s0 + $0xb0] sm:$0xff]  ;;  %v5666_v4 = vld [vmem:[%s13895_s0 + $0xb8] sm:$0xff] }
  0x10   :  { %5632 = vst [vmem:[%s13897_s2 + $0x58] sm:$0xff] %v116_v35  ;;  %v5661_v0 = vld [vmem:[%s13896_s1 + $0xa8] sm:$0xff]  ;;  %v5664_v3 = vld [vmem:[%s13896_s1 + $0xb0] sm:$0xff]  ;;  %v5667_v5 = vld [vmem:[%s13896_s1 + $0xb8] sm:$0xff] }
  0x11   :  { %5635 = vst [vmem:[%s13897_s2 + $0x60] sm:$0xff] %v126_v39  ;;  %v216_v2 = vmul.f32 %v5661_v0, %v5660_v63  ;;  %v226_v6 = vmul.f32 %v5664_v3, %v5663_v1  ;;  %v236_v7 = vmul.f32 %v5667_v5, %v5666_v4  ;;  %v5669_v8 = vld [vmem:[%s13895_s0 + $0xc0] sm:$0xff]  ;;  %v5672_v10 = vld [vmem:[%s13895_s0 + $0xc8] sm:$0xff]  ;;  %v5675_v13 = vld [vmem:[%s13895_s0 + $0xd0] sm:$0xff] }
  0x12   :  { %5638 = vst [vmem:[%s13897_s2 + $0x68] sm:$0xff] %v136_v43  ;;  %v5670_v9 = vld [vmem:[%s13896_s1 + $0xc0] sm:$0xff]  ;;  %v5673_v12 = vld [vmem:[%s13896_s1 + $0xc8] sm:$0xff]  ;;  %v5676_v14 = vld [vmem:[%s13896_s1 + $0xd0] sm:$0xff] }
  0x13   :  { %5641 = vst [vmem:[%s13897_s2 + $0x70] sm:$0xff] %v146_v44  ;;  %v246_v11 = vmul.f32 %v5670_v9, %v5669_v8  ;;  %v256_v15 = vmul.f32 %v5673_v12, %v5672_v10  ;;  %v266_v16 = vmul.f32 %v5676_v14, %v5675_v13  ;;  %v5678_v17 = vld [vmem:[%s13895_s0 + $0xd8] sm:$0xff]  ;;  %v5681_v19 = vld [vmem:[%s13895_s0 + $0xe0] sm:$0xff]  ;;  %v5684_v22 = vld [vmem:[%s13895_s0 + $0xe8] sm:$0xff] }
  0x14   :  { %5644 = vst [vmem:[%s13897_s2 + $0x78] sm:$0xff] %v156_v48  ;;  %v5679_v18 = vld [vmem:[%s13896_s1 + $0xd8] sm:$0xff]  ;;  %v5682_v21 = vld [vmem:[%s13896_s1 + $0xe0] sm:$0xff]  ;;  %v5685_v23 = vld [vmem:[%s13896_s1 + $0xe8] sm:$0xff] }
  0x15   :  { %5647 = vst [vmem:[%s13897_s2 + $0x80] sm:$0xff] %v166_v52  ;;  %v276_v20 = vmul.f32 %v5679_v18, %v5678_v17  ;;  %v286_v24 = vmul.f32 %v5682_v21, %v5681_v19  ;;  %v7526_v25 = vmul.f32 %v5685_v23, %v5684_v22  ;;  %v5687_v26 = vld [vmem:[%s13895_s0 + $0xf0] sm:$0xff]  ;;  %v5690_v28 = vld [vmem:[%s13895_s0 + $0xf8] sm:$0xff]  ;;  %v5693_v31 = vld [vmem:[%s13895_s0 + $0x100] sm:$0xff] }
  0x16   :  { %5650 = vst [vmem:[%s13897_s2 + $0x88] sm:$0xff] %v176_v53  ;;  %v5688_v27 = vld [vmem:[%s13896_s1 + $0xf0] sm:$0xff]  ;;  %v5691_v30 = vld [vmem:[%s13896_s1 + $0xf8] sm:$0xff]  ;;  %v5694_v32 = vld [vmem:[%s13896_s1 + $0x100] sm:$0xff] }
  0x17   :  { %5653 = vst [vmem:[%s13897_s2 + $0x90] sm:$0xff] %v186_v57  ;;  %v7540_v29 = vmul.f32 %v5688_v27, %v5687_v26  ;;  %v7554_v33 = vmul.f32 %v5691_v30, %v5690_v28  ;;  %v7556_v34 = vmul.f32 %v5694_v32, %v5693_v31  ;;  %v5696_v35 = vld [vmem:[%s13895_s0 + $0x108] sm:$0xff]  ;;  %v5699_v37 = vld [vmem:[%s13895_s0 + $0x110] sm:$0xff]  ;;  %v5702_v40 = vld [vmem:[%s13895_s0 + $0x118] sm:$0xff] }
  0x18   :  { %5656 = vst [vmem:[%s13897_s2 + $0x98] sm:$0xff] %v196_v61  ;;  %v5697_v36 = vld [vmem:[%s13896_s1 + $0x108] sm:$0xff]  ;;  %v5700_v39 = vld [vmem:[%s13896_s1 + $0x110] sm:$0xff]  ;;  %v5703_v41 = vld [vmem:[%s13896_s1 + $0x118] sm:$0xff] }
  0x19   :  { %5659 = vst [vmem:[%s13897_s2 + $0xa0] sm:$0xff] %v206_v62  ;;  %v7570_v38 = vmul.f32 %v5697_v36, %v5696_v35  ;;  %v7584_v42 = vmul.f32 %v5700_v39, %v5699_v37  ;;  %v7586_v43 = vmul.f32 %v5703_v41, %v5702_v40  ;;  %v5705_v44 = vld [vmem:[%s13895_s0 + $0x120] sm:$0xff]  ;;  %v5708_v46 = vld [vmem:[%s13895_s0 + $0x128] sm:$0xff]  ;;  %v5711_v49 = vld [vmem:[%s13895_s0 + $0x130] sm:$0xff] }
  0x1a   :  { %5662 = vst [vmem:[%s13897_s2 + $0xa8] sm:$0xff] %v216_v2  ;;  %v5706_v45 = vld [vmem:[%s13896_s1 + $0x120] sm:$0xff]  ;;  %v5709_v48 = vld [vmem:[%s13896_s1 + $0x128] sm:$0xff]  ;;  %v5712_v50 = vld [vmem:[%s13896_s1 + $0x130] sm:$0xff] }
  0x1b   :  { %5665 = vst [vmem:[%s13897_s2 + $0xb0] sm:$0xff] %v226_v6  ;;  %v7600_v47 = vmul.f32 %v5706_v45, %v5705_v44  ;;  %v7614_v51 = vmul.f32 %v5709_v48, %v5708_v46  ;;  %v7616_v52 = vmul.f32 %v5712_v50, %v5711_v49  ;;  %v5714_v53 = vld [vmem:[%s13895_s0 + $0x138] sm:$0xff]  ;;  %v5717_v55 = vld [vmem:[%s13895_s0 + $0x140] sm:$0xff]  ;;  %v5720_v58 = vld [vmem:[%s13895_s0 + $0x148] sm:$0xff] }
  0x1c   :  { %5668 = vst [vmem:[%s13897_s2 + $0xb8] sm:$0xff] %v236_v7  ;;  %v5715_v54 = vld [vmem:[%s13896_s1 + $0x138] sm:$0xff]  ;;  %v5718_v57 = vld [vmem:[%s13896_s1 + $0x140] sm:$0xff]  ;;  %v5721_v59 = vld [vmem:[%s13896_s1 + $0x148] sm:$0xff] }
  0x1d   :  { %5671 = vst [vmem:[%s13897_s2 + $0xc0] sm:$0xff] %v246_v11  ;;  %v7630_v56 = vmul.f32 %v5715_v54, %v5714_v53  ;;  %v7644_v60 = vmul.f32 %v5718_v57, %v5717_v55  ;;  %v7646_v61 = vmul.f32 %v5721_v59, %v5720_v58  ;;  %v5723_v62 = vld [vmem:[%s13895_s0 + $0x150] sm:$0xff]  ;;  %v5726_v0 = vld [vmem:[%s13895_s0 + $0x158] sm:$0xff]  ;;  %v5729_v3 = vld [vmem:[%s13895_s0 + $0x160] sm:$0xff] }
  0x1e   :  { %5674 = vst [vmem:[%s13897_s2 + $0xc8] sm:$0xff] %v256_v15  ;;  %v5724_v63 = vld [vmem:[%s13896_s1 + $0x150] sm:$0xff]  ;;  %v5727_v2 = vld [vmem:[%s13896_s1 + $0x158] sm:$0xff]  ;;  %v5730_v4 = vld [vmem:[%s13896_s1 + $0x160] sm:$0xff] }
  0x1f   :  { %5677 = vst [vmem:[%s13897_s2 + $0xd0] sm:$0xff] %v266_v16  ;;  %v7660_v1 = vmul.f32 %v5724_v63, %v5723_v62  ;;  %v7674_v5 = vmul.f32 %v5727_v2, %v5726_v0  ;;  %v7676_v6 = vmul.f32 %v5730_v4, %v5729_v3  ;;  %v5732_v7 = vld [vmem:[%s13895_s0 + $0x168] sm:$0xff]  ;;  %v5735_v9 = vld [vmem:[%s13895_s0 + $0x170] sm:$0xff]  ;;  %v5738_v12 = vld [vmem:[%s13895_s0 + $0x178] sm:$0xff] }
  0x20   :  { %5680 = vst [vmem:[%s13897_s2 + $0xd8] sm:$0xff] %v276_v20  ;;  %v5733_v8 = vld [vmem:[%s13896_s1 + $0x168] sm:$0xff]  ;;  %v5736_v11 = vld [vmem:[%s13896_s1 + $0x170] sm:$0xff]  ;;  %v5739_v13 = vld [vmem:[%s13896_s1 + $0x178] sm:$0xff] }
  0x21   :  { %5683 = vst [vmem:[%s13897_s2 + $0xe0] sm:$0xff] %v286_v24  ;;  %v7690_v10 = vmul.f32 %v5733_v8, %v5732_v7  ;;  %v7705_v14 = vmul.f32 %v5736_v11, %v5735_v9  ;;  %v7707_v15 = vmul.f32 %v5739_v13, %v5738_v12  ;;  %v5741_v16 = vld [vmem:[%s13895_s0 + $0x180] sm:$0xff]  ;;  %v5744_v18 = vld [vmem:[%s13895_s0 + $0x188] sm:$0xff]  ;;  %v5747_v21 = vld [vmem:[%s13895_s0 + $0x190] sm:$0xff] }
  0x22   :  { %5686 = vst [vmem:[%s13897_s2 + $0xe8] sm:$0xff] %v7526_v25  ;;  %v5742_v17 = vld [vmem:[%s13896_s1 + $0x180] sm:$0xff]  ;;  %v5745_v20 = vld [vmem:[%s13896_s1 + $0x188] sm:$0xff]  ;;  %v5748_v22 = vld [vmem:[%s13896_s1 + $0x190] sm:$0xff] }
  0x23   :  { %5689 = vst [vmem:[%s13897_s2 + $0xf0] sm:$0xff] %v7540_v29  ;;  %v7722_v19 = vmul.f32 %v5742_v17, %v5741_v16  ;;  %v7737_v23 = vmul.f32 %v5745_v20, %v5744_v18  ;;  %v7739_v24 = vmul.f32 %v5748_v22, %v5747_v21  ;;  %v5750_v25 = vld [vmem:[%s13895_s0 + $0x198] sm:$0xff]  ;;  %v5753_v27 = vld [vmem:[%s13895_s0 + $0x1a0] sm:$0xff]  ;;  %v5756_v30 = vld [vmem:[%s13895_s0 + $0x1a8] sm:$0xff] }
  0x24   :  { %5692 = vst [vmem:[%s13897_s2 + $0xf8] sm:$0xff] %v7554_v33  ;;  %v5751_v26 = vld [vmem:[%s13896_s1 + $0x198] sm:$0xff]  ;;  %v5754_v29 = vld [vmem:[%s13896_s1 + $0x1a0] sm:$0xff]  ;;  %v5757_v31 = vld [vmem:[%s13896_s1 + $0x1a8] sm:$0xff] }
  0x25   :  { %5695 = vst [vmem:[%s13897_s2 + $0x100] sm:$0xff] %v7556_v34  ;;  %v7754_v28 = vmul.f32 %v5751_v26, %v5750_v25  ;;  %v7769_v32 = vmul.f32 %v5754_v29, %v5753_v27  ;;  %v7771_v33 = vmul.f32 %v5757_v31, %v5756_v30  ;;  %v5759_v34 = vld [vmem:[%s13895_s0 + $0x1b0] sm:$0xff]  ;;  %v5762_v36 = vld [vmem:[%s13895_s0 + $0x1b8] sm:$0xff]  ;;  %v5765_v39 = vld [vmem:[%s13895_s0 + $0x1c0] sm:$0xff] }
  0x26   :  { %5698 = vst [vmem:[%s13897_s2 + $0x108] sm:$0xff] %v7570_v38  ;;  %v5760_v35 = vld [vmem:[%s13896_s1 + $0x1b0] sm:$0xff]  ;;  %v5763_v38 = vld [vmem:[%s13896_s1 + $0x1b8] sm:$0xff]  ;;  %v5766_v40 = vld [vmem:[%s13896_s1 + $0x1c0] sm:$0xff] }
  0x27   :  { %5701 = vst [vmem:[%s13897_s2 + $0x110] sm:$0xff] %v7584_v42  ;;  %v7786_v37 = vmul.f32 %v5760_v35, %v5759_v34  ;;  %v7801_v41 = vmul.f32 %v5763_v38, %v5762_v36  ;;  %v7803_v42 = vmul.f32 %v5766_v40, %v5765_v39  ;;  %v5769_v44 = vld [vmem:[%s13896_s1 + $0x1c8] sm:$0xff]  ;;  %v5771_v45 = vld [vmem:[%s13895_s0 + $0x1d0] sm:$0xff]  ;;  %v5774_v48 = vld [vmem:[%s13895_s0 + $0x1d8] sm:$0xff] }
  0x28   :  { %5704 = vst [vmem:[%s13897_s2 + $0x118] sm:$0xff] %v7586_v43  ;;  %v5768_v43 = vld [vmem:[%s13895_s0 + $0x1c8] sm:$0xff]  ;;  %v5775_v49 = vld [vmem:[%s13896_s1 + $0x1d8] sm:$0xff]  ;;  %v5777_v53 = vld [vmem:[%s13895_s0 + $0x1e0] sm:$0xff] }
  0x29   :  { %5707 = vst [vmem:[%s13897_s2 + $0x120] sm:$0xff] %v7600_v47  ;;  %v7818_v46 = vmul.f32 %v5769_v44, %v5768_v43  ;;  %v5772_v47 = vld [vmem:[%s13896_s1 + $0x1d0] sm:$0xff]  ;;  %v5778_v54 = vld [vmem:[%s13896_s1 + $0x1e0] sm:$0xff]  ;;  %v5780_v55 = vld [vmem:[%s13895_s0 + $0x1e8] sm:$0xff] }
  0x2a   :  { %5710 = vst [vmem:[%s13897_s2 + $0x128] sm:$0xff] %v7614_v51  ;;  %v7833_v50 = vmul.f32 %v5772_v47, %v5771_v45  ;;  %v7835_v51 = vmul.f32 %v5775_v49, %v5774_v48  ;;  %v5781_v57 = vld [vmem:[%s13896_s1 + $0x1e8] sm:$0xff]  ;;  %v5783_v58 = vld [vmem:[%s13895_s0 + $0x1f0] sm:$0xff]  ;;  %v5786_v63 = vld [vmem:[%s13895_s0 + $0x1f8] sm:$0xff] }
  0x2b   :  { %5713 = vst [vmem:[%s13897_s2 + $0x130] sm:$0xff] %v7616_v52  ;;  %v7850_v52 = vmul.f32 %v5778_v54, %v5777_v53  ;;  %v5784_v59 = vld [vmem:[%s13896_s1 + $0x1f0] sm:$0xff]  ;;  %v5787_v0 = vld [vmem:[%s13896_s1 + $0x1f8] sm:$0xff]  ;;  %v5789_v2 = vld [vmem:[%s13895_s0 + $0x200] sm:$0xff] }
  0x2c   :  { %5716 = vst [vmem:[%s13897_s2 + $0x138] sm:$0xff] %v7630_v56  ;;  %v7865_v56 = vmul.f32 %v5781_v57, %v5780_v55  ;;  %v7867_v62 = vmul.f32 %v5784_v59, %v5783_v58  ;;  %v5790_v3 = vld [vmem:[%s13896_s1 + $0x200] sm:$0xff]  ;;  %v5792_v4 = vld [vmem:[%s13895_s0 + $0x208] sm:$0xff]  ;;  %v5795_v9 = vld [vmem:[%s13895_s0 + $0x210] sm:$0xff] }
  0x2d   :  { %5719 = vst [vmem:[%s13897_s2 + $0x140] sm:$0xff] %v7644_v60  ;;  %v7882_v60 = vmul.f32 %v5787_v0, %v5786_v63  ;;  %v5793_v7 = vld [vmem:[%s13896_s1 + $0x208] sm:$0xff]  ;;  %v5796_v11 = vld [vmem:[%s13896_s1 + $0x210] sm:$0xff]  ;;  %v5798_v12 = vld [vmem:[%s13895_s0 + $0x218] sm:$0xff] }
  0x2e   :  { %5722 = vst [vmem:[%s13897_s2 + $0x148] sm:$0xff] %v7646_v61  ;;  %v7897_v61 = vmul.f32 %v5790_v3, %v5789_v2  ;;  %v7899_v8 = vmul.f32 %v5793_v7, %v5792_v4  ;;  %v5799_v13 = vld [vmem:[%s13896_s1 + $0x218] sm:$0xff]  ;;  %v5801_v16 = vld [vmem:[%s13895_s0 + $0x220] sm:$0xff]  ;;  %v5804_v20 = vld [vmem:[%s13895_s0 + $0x228] sm:$0xff] }
  0x2f   :  { %5725 = vst [vmem:[%s13897_s2 + $0x150] sm:$0xff] %v7660_v1  ;;  %v7914_v1 = vmul.f32 %v5796_v11, %v5795_v9  ;;  %v5802_v17 = vld [vmem:[%s13896_s1 + $0x220] sm:$0xff]  ;;  %v5805_v21 = vld [vmem:[%s13896_s1 + $0x228] sm:$0xff]  ;;  %v5807_v22 = vld [vmem:[%s13895_s0 + $0x230] sm:$0xff] }
  0x30   :  { %5728 = vst [vmem:[%s13897_s2 + $0x158] sm:$0xff] %v7674_v5  ;;  %v7929_v5 = vmul.f32 %v5799_v13, %v5798_v12  ;;  %v7931_v18 = vmul.f32 %v5802_v17, %v5801_v16  ;;  %v5808_v25 = vld [vmem:[%s13896_s1 + $0x230] sm:$0xff]  ;;  %v5810_v26 = vld [vmem:[%s13895_s0 + $0x238] sm:$0xff]  ;;  %v5813_v30 = vld [vmem:[%s13895_s0 + $0x240] sm:$0xff] }
  0x31   :  { %5731 = vst [vmem:[%s13897_s2 + $0x160] sm:$0xff] %v7676_v6  ;;  %v7946_v6 = vmul.f32 %v5805_v21, %v5804_v20  ;;  %v5811_v27 = vld [vmem:[%s13896_s1 + $0x238] sm:$0xff]  ;;  %v5814_v31 = vld [vmem:[%s13896_s1 + $0x240] sm:$0xff]  ;;  %v5816_v34 = vld [vmem:[%s13895_s0 + $0x248] sm:$0xff] }
  0x32   :  { %5734 = vst [vmem:[%s13897_s2 + $0x168] sm:$0xff] %v7690_v10  ;;  %v7961_v10 = vmul.f32 %v5808_v25, %v5807_v22  ;;  %v7963_v29 = vmul.f32 %v5811_v27, %v5810_v26  ;;  %v5817_v35 = vld [vmem:[%s13896_s1 + $0x248] sm:$0xff]  ;;  %v5819_v36 = vld [vmem:[%s13895_s0 + $0x250] sm:$0xff]  ;;  %v5822_v40 = vld [vmem:[%s13895_s0 + $0x258] sm:$0xff] }
  0x33   :  { %5737 = vst [vmem:[%s13897_s2 + $0x170] sm:$0xff] %v7705_v14  ;;  %v7978_v14 = vmul.f32 %v5814_v31, %v5813_v30  ;;  %v5820_v38 = vld [vmem:[%s13896_s1 + $0x250] sm:$0xff]  ;;  %v5823_v43 = vld [vmem:[%s13896_s1 + $0x258] sm:$0xff]  ;;  %v5825_v44 = vld [vmem:[%s13895_s0 + $0x260] sm:$0xff] }
  0x34   :  { %5740 = vst [vmem:[%s13897_s2 + $0x178] sm:$0xff] %v7707_v15  ;;  %v7993_v15 = vmul.f32 %v5817_v35, %v5816_v34  ;;  %v7995_v39 = vmul.f32 %v5820_v38, %v5819_v36  ;;  %v5826_v45 = vld [vmem:[%s13896_s1 + $0x260] sm:$0xff]  ;;  %v5828_v47 = vld [vmem:[%s13895_s0 + $0x268] sm:$0xff]  ;;  %v5831_v53 = vld [vmem:[%s13895_s0 + $0x270] sm:$0xff] }
  0x35   :  { %5743 = vst [vmem:[%s13897_s2 + $0x180] sm:$0xff] %v7722_v19  ;;  %v8010_v19 = vmul.f32 %v5823_v43, %v5822_v40  ;;  %v5829_v48 = vld [vmem:[%s13896_s1 + $0x268] sm:$0xff]  ;;  %v5832_v54 = vld [vmem:[%s13896_s1 + $0x270] sm:$0xff]  ;;  %v5834_v55 = vld [vmem:[%s13895_s0 + $0x278] sm:$0xff] }
  0x36   :  { %5746 = vst [vmem:[%s13897_s2 + $0x188] sm:$0xff] %v7737_v23  ;;  %v8025_v23 = vmul.f32 %v5826_v45, %v5825_v44  ;;  %v8027_v49 = vmul.f32 %v5829_v48, %v5828_v47  ;;  %v5835_v57 = vld [vmem:[%s13896_s1 + $0x278] sm:$0xff]  ;;  %v5837_v58 = vld [vmem:[%s13895_s0 + $0x280] sm:$0xff]  ;;  %v5840_v0 = vld [vmem:[%s13895_s0 + $0x288] sm:$0xff] }
  0x37   :  { %5749 = vst [vmem:[%s13897_s2 + $0x190] sm:$0xff] %v7739_v24  ;;  %v8042_v24 = vmul.f32 %v5832_v54, %v5831_v53  ;;  %v5838_v59 = vld [vmem:[%s13896_s1 + $0x280] sm:$0xff]  ;;  %v5841_v2 = vld [vmem:[%s13896_s1 + $0x288] sm:$0xff]  ;;  %v5843_v3 = vld [vmem:[%s13895_s0 + $0x290] sm:$0xff] }
  0x38   :  { %5752 = vst [vmem:[%s13897_s2 + $0x198] sm:$0xff] %v7754_v28  ;;  %v8057_v28 = vmul.f32 %v5835_v57, %v5834_v55  ;;  %v8059_v63 = vmul.f32 %v5838_v59, %v5837_v58  ;;  %v5844_v4 = vld [vmem:[%s13896_s1 + $0x290] sm:$0xff]  ;;  %v5846_v7 = vld [vmem:[%s13895_s0 + $0x298] sm:$0xff]  ;;  %v5849_v12 = vld [vmem:[%s13895_s0 + $0x2a0] sm:$0xff] }
  0x39   :  { %5755 = vst [vmem:[%s13897_s2 + $0x1a0] sm:$0xff] %v7769_v32  ;;  %v8074_v32 = vmul.f32 %v5841_v2, %v5840_v0  ;;  %v5847_v9 = vld [vmem:[%s13896_s1 + $0x298] sm:$0xff]  ;;  %v5850_v13 = vld [vmem:[%s13896_s1 + $0x2a0] sm:$0xff]  ;;  %v5852_v16 = vld [vmem:[%s13895_s0 + $0x2a8] sm:$0xff] }
  0x3a   :  { %5758 = vst [vmem:[%s13897_s2 + $0x1a8] sm:$0xff] %v7771_v33  ;;  %v8089_v33 = vmul.f32 %v5844_v4, %v5843_v3  ;;  %v8091_v11 = vmul.f32 %v5847_v9, %v5846_v7  ;;  %v5853_v17 = vld [vmem:[%s13896_s1 + $0x2a8] sm:$0xff]  ;;  %v5855_v20 = vld [vmem:[%s13895_s0 + $0x2b0] sm:$0xff]  ;;  %v5858_v25 = vld [vmem:[%s13895_s0 + $0x2b8] sm:$0xff] }
  0x3b   :  { %5761 = vst [vmem:[%s13897_s2 + $0x1b0] sm:$0xff] %v7786_v37  ;;  %v8106_v37 = vmul.f32 %v5850_v13, %v5849_v12  ;;  %v5856_v21 = vld [vmem:[%s13896_s1 + $0x2b0] sm:$0xff]  ;;  %v5859_v26 = vld [vmem:[%s13896_s1 + $0x2b8] sm:$0xff]  ;;  %v5861_v27 = vld [vmem:[%s13895_s0 + $0x2c0] sm:$0xff] }
  0x3c   :  { %5764 = vst [vmem:[%s13897_s2 + $0x1b8] sm:$0xff] %v7801_v41  ;;  %v8121_v41 = vmul.f32 %v5853_v17, %v5852_v16  ;;  %v8123_v22 = vmul.f32 %v5856_v21, %v5855_v20  ;;  %v5862_v30 = vld [vmem:[%s13896_s1 + $0x2c0] sm:$0xff]  ;;  %v5864_v31 = vld [vmem:[%s13895_s0 + $0x2c8] sm:$0xff]  ;;  %v5867_v36 = vld [vmem:[%s13895_s0 + $0x2d0] sm:$0xff] }
  0x3d   :  { %5767 = vst [vmem:[%s13897_s2 + $0x1c0] sm:$0xff] %v7803_v42  ;;  %v8138_v42 = vmul.f32 %v5859_v26, %v5858_v25  ;;  %v5865_v34 = vld [vmem:[%s13896_s1 + $0x2c8] sm:$0xff]  ;;  %v5868_v38 = vld [vmem:[%s13896_s1 + $0x2d0] sm:$0xff]  ;;  %v5870_v40 = vld [vmem:[%s13895_s0 + $0x2d8] sm:$0xff] }
  0x3e   :  { %5770 = vst [vmem:[%s13897_s2 + $0x1c8] sm:$0xff] %v7818_v46  ;;  %v8153_v46 = vmul.f32 %v5862_v30, %v5861_v27  ;;  %v8155_v35 = vmul.f32 %v5865_v34, %v5864_v31  ;;  %v5871_v43 = vld [vmem:[%s13896_s1 + $0x2d8] sm:$0xff]  ;;  %v5873_v44 = vld [vmem:[%s13895_s0 + $0x2e0] sm:$0xff]  ;;  %v5876_v48 = vld [vmem:[%s13895_s0 + $0x2e8] sm:$0xff] }
  0x3f   :  { %5773 = vst [vmem:[%s13897_s2 + $0x1d0] sm:$0xff] %v7833_v50  ;;  %v8170_v50 = vmul.f32 %v5868_v38, %v5867_v36  ;;  %v5874_v45 = vld [vmem:[%s13896_s1 + $0x2e0] sm:$0xff]  ;;  %v5877_v53 = vld [vmem:[%s13896_s1 + $0x2e8] sm:$0xff]  ;;  %v5879_v54 = vld [vmem:[%s13895_s0 + $0x2f0] sm:$0xff] }
  0x40   :  { %5776 = vst [vmem:[%s13897_s2 + $0x1d8] sm:$0xff] %v7835_v51  ;;  %v8185_v51 = vmul.f32 %v5871_v43, %v5870_v40  ;;  %v8187_v47 = vmul.f32 %v5874_v45, %v5873_v44  ;;  %v5880_v55 = vld [vmem:[%s13896_s1 + $0x2f0] sm:$0xff]  ;;  %v5882_v57 = vld [vmem:[%s13895_s0 + $0x2f8] sm:$0xff]  ;;  %v5885_v0 = vld [vmem:[%s13895_s0 + $0x300] sm:$0xff] }
  0x41   :  { %5779 = vst [vmem:[%s13897_s2 + $0x1e0] sm:$0xff] %v7850_v52  ;;  %v8202_v52 = vmul.f32 %v5877_v53, %v5876_v48  ;;  %v5883_v58 = vld [vmem:[%s13896_s1 + $0x2f8] sm:$0xff]  ;;  %v5886_v2 = vld [vmem:[%s13896_s1 + $0x300] sm:$0xff]  ;;  %v5888_v3 = vld [vmem:[%s13895_s0 + $0x308] sm:$0xff] }
  0x42   :  { %5782 = vst [vmem:[%s13897_s2 + $0x1e8] sm:$0xff] %v7865_v56  ;;  %v8217_v56 = vmul.f32 %v5880_v55, %v5879_v54  ;;  %v8219_v59 = vmul.f32 %v5883_v58, %v5882_v57  ;;  %v5889_v4 = vld [vmem:[%s13896_s1 + $0x308] sm:$0xff]  ;;  %v5891_v7 = vld [vmem:[%s13895_s0 + $0x310] sm:$0xff]  ;;  %v5894_v13 = vld [vmem:[%s13895_s0 + $0x318] sm:$0xff] }
  0x43   :  { %5785 = vst [vmem:[%s13897_s2 + $0x1f0] sm:$0xff] %v7867_v62  ;;  %v8234_v62 = vmul.f32 %v5886_v2, %v5885_v0  ;;  %v5892_v9 = vld [vmem:[%s13896_s1 + $0x310] sm:$0xff]  ;;  %v5895_v16 = vld [vmem:[%s13896_s1 + $0x318] sm:$0xff]  ;;  %v5897_v17 = vld [vmem:[%s13895_s0 + $0x320] sm:$0xff] }
  0x44   :  { %5788 = vst [vmem:[%s13897_s2 + $0x1f8] sm:$0xff] %v7882_v60  ;;  %v8249_v60 = vmul.f32 %v5889_v4, %v5888_v3  ;;  %v8251_v12 = vmul.f32 %v5892_v9, %v5891_v7  ;;  %v5898_v20 = vld [vmem:[%s13896_s1 + $0x320] sm:$0xff]  ;;  %v5900_v21 = vld [vmem:[%s13895_s0 + $0x328] sm:$0xff]  ;;  %v5903_v26 = vld [vmem:[%s13895_s0 + $0x330] sm:$0xff] }
  0x45   :  { %5791 = vst [vmem:[%s13897_s2 + $0x200] sm:$0xff] %v7897_v61  ;;  %v8263_v61 = vmul.f32 %v5895_v16, %v5894_v13  ;;  %v5901_v25 = vld [vmem:[%s13896_s1 + $0x328] sm:$0xff]  ;;  %v5904_v27 = vld [vmem:[%s13896_s1 + $0x330] sm:$0xff]  ;;  %v5906_v30 = vld [vmem:[%s13895_s0 + $0x338] sm:$0xff] }
  0x46   :  { %5794 = vst [vmem:[%s13897_s2 + $0x208] sm:$0xff] %v7899_v8  ;;  %v8275_v8 = vmul.f32 %v5898_v20, %v5897_v17  ;;  %v5907_v31 = vld [vmem:[%s13896_s1 + $0x338] sm:$0xff]  ;;  %v5909_v34 = vld [vmem:[%s13895_s0 + $0x340] sm:$0xff]  ;;  %v5912_v38 = vld [vmem:[%s13895_s0 + $0x348] sm:$0xff] }
  0x47   :  { %5797 = vst [vmem:[%s13897_s2 + $0x210] sm:$0xff] %v7914_v1  ;;  %v8287_v1 = vmul.f32 %v5901_v25, %v5900_v21  ;;  %v5910_v36 = vld [vmem:[%s13896_s1 + $0x340] sm:$0xff]  ;;  %v5913_v40 = vld [vmem:[%s13896_s1 + $0x348] sm:$0xff]  ;;  %v5915_v43 = vld [vmem:[%s13895_s0 + $0x350] sm:$0xff] }
  0x48   :  { %5800 = vst [vmem:[%s13897_s2 + $0x218] sm:$0xff] %v7929_v5  ;;  %v8299_v5 = vmul.f32 %v5904_v27, %v5903_v26  ;;  %v5916_v44 = vld [vmem:[%s13896_s1 + $0x350] sm:$0xff]  ;;  %v5918_v45 = vld [vmem:[%s13895_s0 + $0x358] sm:$0xff]  ;;  %v5921_v53 = vld [vmem:[%s13895_s0 + $0x360] sm:$0xff] }
  0x49   :  { %5803 = vst [vmem:[%s13897_s2 + $0x220] sm:$0xff] %v7931_v18  ;;  %v8311_v18 = vmul.f32 %v5907_v31, %v5906_v30  ;;  %v5919_v48 = vld [vmem:[%s13896_s1 + $0x358] sm:$0xff]  ;;  %v5922_v54 = vld [vmem:[%s13896_s1 + $0x360] sm:$0xff]  ;;  %v5924_v55 = vld [vmem:[%s13895_s0 + $0x368] sm:$0xff] }
  0x4a   :  { %5806 = vst [vmem:[%s13897_s2 + $0x228] sm:$0xff] %v7946_v6  ;;  %v8323_v6 = vmul.f32 %v5910_v36, %v5909_v34  ;;  %v5925_v57 = vld [vmem:[%s13896_s1 + $0x368] sm:$0xff]  ;;  %v5927_v58 = vld [vmem:[%s13895_s0 + $0x370] sm:$0xff]  ;;  %v5930_v2 = vld [vmem:[%s13895_s0 + $0x378] sm:$0xff] }
  0x4b   :  { %5809 = vst [vmem:[%s13897_s2 + $0x230] sm:$0xff] %v7961_v10  ;;  %v8335_v10 = vmul.f32 %v5913_v40, %v5912_v38  ;;  %v5928_v0 = vld [vmem:[%s13896_s1 + $0x370] sm:$0xff]  ;;  %v5931_v3 = vld [vmem:[%s13896_s1 + $0x378] sm:$0xff]  ;;  %v5933_v4 = vld [vmem:[%s13895_s0 + $0x380] sm:$0xff] }
  0x4c   :  { %5812 = vst [vmem:[%s13897_s2 + $0x238] sm:$0xff] %v7963_v29  ;;  %v8347_v29 = vmul.f32 %v5916_v44, %v5915_v43  ;;  %v5934_v7 = vld [vmem:[%s13896_s1 + $0x380] sm:$0xff]  ;;  %v5936_v9 = vld [vmem:[%s13895_s0 + $0x388] sm:$0xff]  ;;  %v5939_v16 = vld [vmem:[%s13895_s0 + $0x390] sm:$0xff] }
  0x4d   :  { %5815 = vst [vmem:[%s13897_s2 + $0x240] sm:$0xff] %v7978_v14  ;;  %v8359_v14 = vmul.f32 %v5919_v48, %v5918_v45  ;;  %v5937_v13 = vld [vmem:[%s13896_s1 + $0x388] sm:$0xff]  ;;  %v5940_v17 = vld [vmem:[%s13896_s1 + $0x390] sm:$0xff]  ;;  %v5942_v20 = vld [vmem:[%s13895_s0 + $0x398] sm:$0xff] }
  0x4e   :  { %5818 = vst [vmem:[%s13897_s2 + $0x248] sm:$0xff] %v7993_v15  ;;  %v8371_v15 = vmul.f32 %v5922_v54, %v5921_v53  ;;  %v5943_v21 = vld [vmem:[%s13896_s1 + $0x398] sm:$0xff]  ;;  %v5945_v25 = vld [vmem:[%s13895_s0 + $0x3a0] sm:$0xff]  ;;  %v5948_v27 = vld [vmem:[%s13895_s0 + $0x3a8] sm:$0xff] }
  0x4f   :  { %5821 = vst [vmem:[%s13897_s2 + $0x250] sm:$0xff] %v7995_v39  ;;  %v8383_v39 = vmul.f32 %v5925_v57, %v5924_v55  ;;  %v5946_v26 = vld [vmem:[%s13896_s1 + $0x3a0] sm:$0xff]  ;;  %v5949_v30 = vld [vmem:[%s13896_s1 + $0x3a8] sm:$0xff]  ;;  %v5951_v31 = vld [vmem:[%s13895_s0 + $0x3b0] sm:$0xff] }
  0x50   :  { %5824 = vst [vmem:[%s13897_s2 + $0x258] sm:$0xff] %v8010_v19  ;;  %v8395_v19 = vmul.f32 %v5928_v0, %v5927_v58  ;;  %v5952_v34 = vld [vmem:[%s13896_s1 + $0x3b0] sm:$0xff]  ;;  %v5954_v36 = vld [vmem:[%s13895_s0 + $0x3b8] sm:$0xff]  ;;  %v5957_v40 = vld [vmem:[%s13895_s0 + $0x3c0] sm:$0xff] }
  0x51   :  { %5827 = vst [vmem:[%s13897_s2 + $0x260] sm:$0xff] %v8025_v23  ;;  %v8407_v23 = vmul.f32 %v5931_v3, %v5930_v2  ;;  %v5955_v38 = vld [vmem:[%s13896_s1 + $0x3b8] sm:$0xff]  ;;  %v5958_v43 = vld [vmem:[%s13896_s1 + $0x3c0] sm:$0xff]  ;;  %v5960_v44 = vld [vmem:[%s13895_s0 + $0x3c8] sm:$0xff] }
  0x52   :  { %5830 = vst [vmem:[%s13897_s2 + $0x268] sm:$0xff] %v8027_v49  ;;  %v8419_v49 = vmul.f32 %v5934_v7, %v5933_v4  ;;  %v5961_v45 = vld [vmem:[%s13896_s1 + $0x3c8] sm:$0xff]  ;;  %v5963_v48 = vld [vmem:[%s13895_s0 + $0x3d0] sm:$0xff]  ;;  %v5966_v54 = vld [vmem:[%s13895_s0 + $0x3d8] sm:$0xff] }
  0x53   :  { %5833 = vst [vmem:[%s13897_s2 + $0x270] sm:$0xff] %v8042_v24  ;;  %v8431_v24 = vmul.f32 %v5937_v13, %v5936_v9  ;;  %v5964_v53 = vld [vmem:[%s13896_s1 + $0x3d0] sm:$0xff]  ;;  %v5967_v55 = vld [vmem:[%s13896_s1 + $0x3d8] sm:$0xff]  ;;  %v5969_v57 = vld [vmem:[%s13895_s0 + $0x3e0] sm:$0xff] }
  0x54   :  { %5836 = vst [vmem:[%s13897_s2 + $0x278] sm:$0xff] %v8057_v28  ;;  %v8443_v28 = vmul.f32 %v5940_v17, %v5939_v16  ;;  %v5970_v58 = vld [vmem:[%s13896_s1 + $0x3e0] sm:$0xff]  ;;  %v5972_v0 = vld [vmem:[%s13895_s0 + $0x3e8] sm:$0xff]  ;;  %v5975_v3 = vld [vmem:[%s13895_s0 + $0x3f0] sm:$0xff] }
  0x55   :  { %5839 = vst [vmem:[%s13897_s2 + $0x280] sm:$0xff] %v8059_v63  ;;  %v8455_v63 = vmul.f32 %v5943_v21, %v5942_v20  ;;  %v5973_v2 = vld [vmem:[%s13896_s1 + $0x3e8] sm:$0xff]  ;;  %v5976_v4 = vld [vmem:[%s13896_s1 + $0x3f0] sm:$0xff]  ;;  %v5978_v7 = vld [vmem:[%s13895_s0 + $0x3f8] sm:$0xff] }
  0x56   :  { %5842 = vst [vmem:[%s13897_s2 + $0x288] sm:$0xff] %v8074_v32  ;;  %v8467_v32 = vmul.f32 %v5946_v26, %v5945_v25  ;;  %v5979_v9 = vld [vmem:[%s13896_s1 + $0x3f8] sm:$0xff]  ;;  %v5981_v13 = vld [vmem:[%s13895_s0 + $0x400] sm:$0xff]  ;;  %v5984_v17 = vld [vmem:[%s13895_s0 + $0x408] sm:$0xff] }
  0x57   :  { %5845 = vst [vmem:[%s13897_s2 + $0x290] sm:$0xff] %v8089_v33  ;;  %v8479_v33 = vmul.f32 %v5949_v30, %v5948_v27  ;;  %v5982_v16 = vld [vmem:[%s13896_s1 + $0x400] sm:$0xff]  ;;  %v5985_v20 = vld [vmem:[%s13896_s1 + $0x408] sm:$0xff]  ;;  %v5987_v21 = vld [vmem:[%s13895_s0 + $0x410] sm:$0xff] }
  0x58   :  { %5848 = vst [vmem:[%s13897_s2 + $0x298] sm:$0xff] %v8091_v11  ;;  %v8491_v11 = vmul.f32 %v5952_v34, %v5951_v31  ;;  %v5988_v25 = vld [vmem:[%s13896_s1 + $0x410] sm:$0xff]  ;;  %v5990_v26 = vld [vmem:[%s13895_s0 + $0x418] sm:$0xff]  ;;  %v5993_v30 = vld [vmem:[%s13895_s0 + $0x420] sm:$0xff] }
  0x59   :  { %5851 = vst [vmem:[%s13897_s2 + $0x2a0] sm:$0xff] %v8106_v37  ;;  %v8503_v37 = vmul.f32 %v5955_v38, %v5954_v36  ;;  %v5991_v27 = vld [vmem:[%s13896_s1 + $0x418] sm:$0xff]  ;;  %v5994_v31 = vld [vmem:[%s13896_s1 + $0x420] sm:$0xff]  ;;  %v5996_v34 = vld [vmem:[%s13895_s0 + $0x428] sm:$0xff] }
  0x5a   :  { %5854 = vst [vmem:[%s13897_s2 + $0x2a8] sm:$0xff] %v8121_v41  ;;  %v8515_v41 = vmul.f32 %v5958_v43, %v5957_v40  ;;  %v5997_v36 = vld [vmem:[%s13896_s1 + $0x428] sm:$0xff]  ;;  %v5999_v38 = vld [vmem:[%s13895_s0 + $0x430] sm:$0xff]  ;;  %v6002_v43 = vld [vmem:[%s13895_s0 + $0x438] sm:$0xff] }
  0x5b   :  { %5857 = vst [vmem:[%s13897_s2 + $0x2b0] sm:$0xff] %v8123_v22  ;;  %v8527_v22 = vmul.f32 %v5961_v45, %v5960_v44  ;;  %v6000_v40 = vld [vmem:[%s13896_s1 + $0x430] sm:$0xff]  ;;  %v6003_v44 = vld [vmem:[%s13896_s1 + $0x438] sm:$0xff]  ;;  %v6005_v45 = vld [vmem:[%s13895_s0 + $0x440] sm:$0xff] }
  0x5c   :  { %5860 = vst [vmem:[%s13897_s2 + $0x2b8] sm:$0xff] %v8138_v42  ;;  %v8539_v42 = vmul.f32 %v5964_v53, %v5963_v48  ;;  %v6006_v48 = vld [vmem:[%s13896_s1 + $0x440] sm:$0xff]  ;;  %v6008_v53 = vld [vmem:[%s13895_s0 + $0x448] sm:$0xff] }
  0x5d   :  { %5863 = vst [vmem:[%s13897_s2 + $0x2c0] sm:$0xff] %v8153_v46  ;;  %v8551_v46 = vmul.f32 %v5967_v55, %v5966_v54  ;;  %v6009_v54 = vld [vmem:[%s13896_s1 + $0x448] sm:$0xff]  ;;  %v6011_v55 = vld [vmem:[%s13895_s0 + $0x450] sm:$0xff] }
  0x5e   :  { %5866 = vst [vmem:[%s13897_s2 + $0x2c8] sm:$0xff] %v8155_v35  ;;  %v8563_v35 = vmul.f32 %v5970_v58, %v5969_v57  ;;  %v6012_v57 = vld [vmem:[%s13896_s1 + $0x450] sm:$0xff]  ;;  %v6014_v58 = vld [vmem:[%s13895_s0 + $0x458] sm:$0xff] }
  0x5f   :  { %5869 = vst [vmem:[%s13897_s2 + $0x2d0] sm:$0xff] %v8170_v50  ;;  %v8575_v50 = vmul.f32 %v5973_v2, %v5972_v0  ;;  %v6015_v0 = vld [vmem:[%s13896_s1 + $0x458] sm:$0xff]  ;;  %v6017_v2 = vld [vmem:[%s13895_s0 + $0x460] sm:$0xff] }
  0x60   :  { %5872 = vst [vmem:[%s13897_s2 + $0x2d8] sm:$0xff] %v8185_v51  ;;  %v8587_v51 = vmul.f32 %v5976_v4, %v5975_v3  ;;  %v6018_v3 = vld [vmem:[%s13896_s1 + $0x460] sm:$0xff]  ;;  %v6020_v4 = vld [vmem:[%s13895_s0 + $0x468] sm:$0xff] }
  0x61   :  { %5875 = vst [vmem:[%s13897_s2 + $0x2e0] sm:$0xff] %v8187_v47  ;;  %v8599_v47 = vmul.f32 %v5979_v9, %v5978_v7  ;;  %v6021_v7 = vld [vmem:[%s13896_s1 + $0x468] sm:$0xff]  ;;  %v6023_v9 = vld [vmem:[%s13895_s0 + $0x470] sm:$0xff] }
  0x62   :  { %5878 = vst [vmem:[%s13897_s2 + $0x2e8] sm:$0xff] %v8202_v52  ;;  %v8611_v52 = vmul.f32 %v5982_v16, %v5981_v13  ;;  %v6024_v13 = vld [vmem:[%s13896_s1 + $0x470] sm:$0xff]  ;;  %v6026_v16 = vld [vmem:[%s13895_s0 + $0x478] sm:$0xff] }
  0x63   :  { %5881 = vst [vmem:[%s13897_s2 + $0x2f0] sm:$0xff] %v8217_v56  ;;  %v8623_v56 = vmul.f32 %v5985_v20, %v5984_v17  ;;  %v6027_v17 = vld [vmem:[%s13896_s1 + $0x478] sm:$0xff]  ;;  %v6029_v20 = vld [vmem:[%s13895_s0 + $0x480] sm:$0xff] }
  0x64   :  { %5884 = vst [vmem:[%s13897_s2 + $0x2f8] sm:$0xff] %v8219_v59  ;;  %v8635_v59 = vmul.f32 %v5988_v25, %v5987_v21  ;;  %v6030_v21 = vld [vmem:[%s13896_s1 + $0x480] sm:$0xff]  ;;  %v6032_v25 = vld [vmem:[%s13895_s0 + $0x488] sm:$0xff] }
  0x65   :  { %5887 = vst [vmem:[%s13897_s2 + $0x300] sm:$0xff] %v8234_v62  ;;  %v8647_v62 = vmul.f32 %v5991_v27, %v5990_v26  ;;  %v6033_v26 = vld [vmem:[%s13896_s1 + $0x488] sm:$0xff]  ;;  %v6035_v27 = vld [vmem:[%s13895_s0 + $0x490] sm:$0xff] }
  0x66   :  { %5890 = vst [vmem:[%s13897_s2 + $0x308] sm:$0xff] %v8249_v60  ;;  %v8659_v60 = vmul.f32 %v5994_v31, %v5993_v30  ;;  %v6036_v30 = vld [vmem:[%s13896_s1 + $0x490] sm:$0xff]  ;;  %v6038_v31 = vld [vmem:[%s13895_s0 + $0x498] sm:$0xff] }
  0x67   :  { %5893 = vst [vmem:[%s13897_s2 + $0x310] sm:$0xff] %v8251_v12  ;;  %v8671_v12 = vmul.f32 %v5997_v36, %v5996_v34  ;;  %v6039_v34 = vld [vmem:[%s13896_s1 + $0x498] sm:$0xff]  ;;  %v6041_v36 = vld [vmem:[%s13895_s0 + $0x4a0] sm:$0xff] }
  0x68   :  { %5896 = vst [vmem:[%s13897_s2 + $0x318] sm:$0xff] %v8263_v61  ;;  %v8683_v61 = vmul.f32 %v6000_v40, %v5999_v38  ;;  %v6042_v38 = vld [vmem:[%s13896_s1 + $0x4a0] sm:$0xff]  ;;  %v6044_v40 = vld [vmem:[%s13895_s0 + $0x4a8] sm:$0xff] }
  0x69   :  { %5899 = vst [vmem:[%s13897_s2 + $0x320] sm:$0xff] %v8275_v8  ;;  %v8695_v8 = vmul.f32 %v6003_v44, %v6002_v43  ;;  %v6045_v43 = vld [vmem:[%s13896_s1 + $0x4a8] sm:$0xff]  ;;  %v6047_v44 = vld [vmem:[%s13895_s0 + $0x4b0] sm:$0xff] }
  0x6a   :  { %5902 = vst [vmem:[%s13897_s2 + $0x328] sm:$0xff] %v8287_v1  ;;  %v8707_v1 = vmul.f32 %v6006_v48, %v6005_v45  ;;  %v6048_v45 = vld [vmem:[%s13896_s1 + $0x4b0] sm:$0xff]  ;;  %v6050_v48 = vld [vmem:[%s13895_s0 + $0x4b8] sm:$0xff] }
  0x6b   :  { %5905 = vst [vmem:[%s13897_s2 + $0x330] sm:$0xff] %v8299_v5  ;;  %v8719_v5 = vmul.f32 %v6009_v54, %v6008_v53  ;;  %v6051_v53 = vld [vmem:[%s13896_s1 + $0x4b8] sm:$0xff]  ;;  %v6053_v54 = vld [vmem:[%s13895_s0 + $0x4c0] sm:$0xff] }
  0x6c   :  { %5908 = vst [vmem:[%s13897_s2 + $0x338] sm:$0xff] %v8311_v18  ;;  %v8731_v18 = vmul.f32 %v6012_v57, %v6011_v55  ;;  %v6054_v55 = vld [vmem:[%s13896_s1 + $0x4c0] sm:$0xff]  ;;  %v6056_v57 = vld [vmem:[%s13895_s0 + $0x4c8] sm:$0xff] }
  0x6d   :  { %5911 = vst [vmem:[%s13897_s2 + $0x340] sm:$0xff] %v8323_v6  ;;  %v8743_v6 = vmul.f32 %v6015_v0, %v6014_v58  ;;  %v6057_v58 = vld [vmem:[%s13896_s1 + $0x4c8] sm:$0xff]  ;;  %v6059_v0 = vld [vmem:[%s13895_s0 + $0x4d0] sm:$0xff] }
  0x6e   :  { %5914 = vst [vmem:[%s13897_s2 + $0x348] sm:$0xff] %v8335_v10  ;;  %v8755_v10 = vmul.f32 %v6018_v3, %v6017_v2  ;;  %v6060_v2 = vld [vmem:[%s13896_s1 + $0x4d0] sm:$0xff]  ;;  %v6062_v3 = vld [vmem:[%s13895_s0 + $0x4d8] sm:$0xff] }
  0x6f   :  { %5917 = vst [vmem:[%s13897_s2 + $0x350] sm:$0xff] %v8347_v29  ;;  %v8767_v29 = vmul.f32 %v6021_v7, %v6020_v4  ;;  %v6063_v4 = vld [vmem:[%s13896_s1 + $0x4d8] sm:$0xff]  ;;  %v6065_v7 = vld [vmem:[%s13895_s0 + $0x4e0] sm:$0xff] }
  0x70   :  { %5920 = vst [vmem:[%s13897_s2 + $0x358] sm:$0xff] %v8359_v14  ;;  %v8779_v14 = vmul.f32 %v6024_v13, %v6023_v9  ;;  %v6066_v9 = vld [vmem:[%s13896_s1 + $0x4e0] sm:$0xff]  ;;  %v6068_v13 = vld [vmem:[%s13895_s0 + $0x4e8] sm:$0xff] }
  0x71   :  { %5923 = vst [vmem:[%s13897_s2 + $0x360] sm:$0xff] %v8371_v15  ;;  %v8791_v15 = vmul.f32 %v6027_v17, %v6026_v16  ;;  %v6069_v16 = vld [vmem:[%s13896_s1 + $0x4e8] sm:$0xff]  ;;  %v6071_v17 = vld [vmem:[%s13895_s0 + $0x4f0] sm:$0xff] }
  0x72   :  { %5926 = vst [vmem:[%s13897_s2 + $0x368] sm:$0xff] %v8383_v39  ;;  %v8803_v39 = vmul.f32 %v6030_v21, %v6029_v20  ;;  %v6072_v20 = vld [vmem:[%s13896_s1 + $0x4f0] sm:$0xff]  ;;  %v6074_v21 = vld [vmem:[%s13895_s0 + $0x4f8] sm:$0xff] }
  0x73   :  { %5929 = vst [vmem:[%s13897_s2 + $0x370] sm:$0xff] %v8395_v19  ;;  %v8815_v19 = vmul.f32 %v6033_v26, %v6032_v25  ;;  %v6075_v25 = vld [vmem:[%s13896_s1 + $0x4f8] sm:$0xff]  ;;  %v6077_v26 = vld [vmem:[%s13895_s0 + $0x500] sm:$0xff] }
  0x74   :  { %5932 = vst [vmem:[%s13897_s2 + $0x378] sm:$0xff] %v8407_v23  ;;  %v8827_v23 = vmul.f32 %v6036_v30, %v6035_v27  ;;  %v6078_v27 = vld [vmem:[%s13896_s1 + $0x500] sm:$0xff]  ;;  %v6080_v30 = vld [vmem:[%s13895_s0 + $0x508] sm:$0xff] }
  0x75   :  { %5935 = vst [vmem:[%s13897_s2 + $0x380] sm:$0xff] %v8419_v49  ;;  %v8839_v49 = vmul.f32 %v6039_v34, %v6038_v31  ;;  %v6081_v31 = vld [vmem:[%s13896_s1 + $0x508] sm:$0xff]  ;;  %v6083_v34 = vld [vmem:[%s13895_s0 + $0x510] sm:$0xff] }
  0x76   :  { %5938 = vst [vmem:[%s13897_s2 + $0x388] sm:$0xff] %v8431_v24  ;;  %v8851_v24 = vmul.f32 %v6042_v38, %v6041_v36  ;;  %v6084_v36 = vld [vmem:[%s13896_s1 + $0x510] sm:$0xff]  ;;  %v6086_v38 = vld [vmem:[%s13895_s0 + $0x518] sm:$0xff] }
  0x77   :  { %5941 = vst [vmem:[%s13897_s2 + $0x390] sm:$0xff] %v8443_v28  ;;  %v8863_v28 = vmul.f32 %v6045_v43, %v6044_v40  ;;  %v6087_v40 = vld [vmem:[%s13896_s1 + $0x518] sm:$0xff]  ;;  %v6089_v43 = vld [vmem:[%s13895_s0 + $0x520] sm:$0xff] }
  0x78   :  { %5944 = vst [vmem:[%s13897_s2 + $0x398] sm:$0xff] %v8455_v63  ;;  %v8875_v63 = vmul.f32 %v6048_v45, %v6047_v44  ;;  %v6090_v44 = vld [vmem:[%s13896_s1 + $0x520] sm:$0xff]  ;;  %v6092_v45 = vld [vmem:[%s13895_s0 + $0x528] sm:$0xff] }
  0x79   :  { %5947 = vst [vmem:[%s13897_s2 + $0x3a0] sm:$0xff] %v8467_v32  ;;  %v8887_v32 = vmul.f32 %v6051_v53, %v6050_v48  ;;  %v6093_v48 = vld [vmem:[%s13896_s1 + $0x528] sm:$0xff]  ;;  %v6095_v53 = vld [vmem:[%s13895_s0 + $0x530] sm:$0xff] }
  0x7a   :  { %5950 = vst [vmem:[%s13897_s2 + $0x3a8] sm:$0xff] %v8479_v33  ;;  %v8899_v33 = vmul.f32 %v6054_v55, %v6053_v54  ;;  %v6096_v54 = vld [vmem:[%s13896_s1 + $0x530] sm:$0xff]  ;;  %v6098_v55 = vld [vmem:[%s13895_s0 + $0x538] sm:$0xff] }
  0x7b   :  { %5953 = vst [vmem:[%s13897_s2 + $0x3b0] sm:$0xff] %v8491_v11  ;;  %v8911_v11 = vmul.f32 %v6057_v58, %v6056_v57  ;;  %v6099_v57 = vld [vmem:[%s13896_s1 + $0x538] sm:$0xff]  ;;  %v6101_v58 = vld [vmem:[%s13895_s0 + $0x540] sm:$0xff] }
  0x7c   :  { %5956 = vst [vmem:[%s13897_s2 + $0x3b8] sm:$0xff] %v8503_v37  ;;  %v8923_v37 = vmul.f32 %v6060_v2, %v6059_v0  ;;  %v6102_v0 = vld [vmem:[%s13896_s1 + $0x540] sm:$0xff]  ;;  %v6104_v2 = vld [vmem:[%s13895_s0 + $0x548] sm:$0xff] }
  0x7d   :  { %5959 = vst [vmem:[%s13897_s2 + $0x3c0] sm:$0xff] %v8515_v41  ;;  %v8935_v41 = vmul.f32 %v6063_v4, %v6062_v3  ;;  %v6105_v3 = vld [vmem:[%s13896_s1 + $0x548] sm:$0xff]  ;;  %v6107_v4 = vld [vmem:[%s13895_s0 + $0x550] sm:$0xff] }
  0x7e   :  { %5962 = vst [vmem:[%s13897_s2 + $0x3c8] sm:$0xff] %v8527_v22  ;;  %v8947_v22 = vmul.f32 %v6066_v9, %v6065_v7  ;;  %v6108_v7 = vld [vmem:[%s13896_s1 + $0x550] sm:$0xff]  ;;  %v6110_v9 = vld [vmem:[%s13895_s0 + $0x558] sm:$0xff] }
  0x7f   :  { %5965 = vst [vmem:[%s13897_s2 + $0x3d0] sm:$0xff] %v8539_v42  ;;  %v8959_v42 = vmul.f32 %v6069_v16, %v6068_v13  ;;  %v6111_v13 = vld [vmem:[%s13896_s1 + $0x558] sm:$0xff]  ;;  %v6113_v16 = vld [vmem:[%s13895_s0 + $0x560] sm:$0xff] }
  0x80   :  { %5968 = vst [vmem:[%s13897_s2 + $0x3d8] sm:$0xff] %v8551_v46  ;;  %v8971_v46 = vmul.f32 %v6072_v20, %v6071_v17  ;;  %v6114_v17 = vld [vmem:[%s13896_s1 + $0x560] sm:$0xff]  ;;  %v6116_v20 = vld [vmem:[%s13895_s0 + $0x568] sm:$0xff] }
  0x81   :  { %5971 = vst [vmem:[%s13897_s2 + $0x3e0] sm:$0xff] %v8563_v35  ;;  %v8983_v35 = vmul.f32 %v6075_v25, %v6074_v21  ;;  %v6117_v21 = vld [vmem:[%s13896_s1 + $0x568] sm:$0xff]  ;;  %v6119_v25 = vld [vmem:[%s13895_s0 + $0x570] sm:$0xff] }
  0x82   :  { %5974 = vst [vmem:[%s13897_s2 + $0x3e8] sm:$0xff] %v8575_v50  ;;  %v8995_v50 = vmul.f32 %v6078_v27, %v6077_v26  ;;  %v6120_v26 = vld [vmem:[%s13896_s1 + $0x570] sm:$0xff]  ;;  %v6122_v27 = vld [vmem:[%s13895_s0 + $0x578] sm:$0xff] }
  0x83   :  { %5977 = vst [vmem:[%s13897_s2 + $0x3f0] sm:$0xff] %v8587_v51  ;;  %v9007_v51 = vmul.f32 %v6081_v31, %v6080_v30  ;;  %v6123_v30 = vld [vmem:[%s13896_s1 + $0x578] sm:$0xff]  ;;  %v6125_v31 = vld [vmem:[%s13895_s0 + $0x580] sm:$0xff] }
  0x84   :  { %5980 = vst [vmem:[%s13897_s2 + $0x3f8] sm:$0xff] %v8599_v47  ;;  %v9019_v47 = vmul.f32 %v6084_v36, %v6083_v34  ;;  %v6126_v34 = vld [vmem:[%s13896_s1 + $0x580] sm:$0xff]  ;;  %v6128_v36 = vld [vmem:[%s13895_s0 + $0x588] sm:$0xff] }
  0x85   :  { %5983 = vst [vmem:[%s13897_s2 + $0x400] sm:$0xff] %v8611_v52  ;;  %v9031_v52 = vmul.f32 %v6087_v40, %v6086_v38  ;;  %v6129_v38 = vld [vmem:[%s13896_s1 + $0x588] sm:$0xff]  ;;  %v6131_v40 = vld [vmem:[%s13895_s0 + $0x590] sm:$0xff] }
  0x86   :  { %5986 = vst [vmem:[%s13897_s2 + $0x408] sm:$0xff] %v8623_v56  ;;  %v9043_v56 = vmul.f32 %v6090_v44, %v6089_v43  ;;  %v6132_v43 = vld [vmem:[%s13896_s1 + $0x590] sm:$0xff]  ;;  %v6134_v44 = vld [vmem:[%s13895_s0 + $0x598] sm:$0xff] }
  0x87   :  { %5989 = vst [vmem:[%s13897_s2 + $0x410] sm:$0xff] %v8635_v59  ;;  %v9055_v59 = vmul.f32 %v6093_v48, %v6092_v45  ;;  %v6135_v45 = vld [vmem:[%s13896_s1 + $0x598] sm:$0xff]  ;;  %v6137_v48 = vld [vmem:[%s13895_s0 + $0x5a0] sm:$0xff] }
  0x88   :  { %5992 = vst [vmem:[%s13897_s2 + $0x418] sm:$0xff] %v8647_v62  ;;  %v9067_v62 = vmul.f32 %v6096_v54, %v6095_v53  ;;  %v6138_v53 = vld [vmem:[%s13896_s1 + $0x5a0] sm:$0xff]  ;;  %v6140_v54 = vld [vmem:[%s13895_s0 + $0x5a8] sm:$0xff] }
  0x89   :  { %5995 = vst [vmem:[%s13897_s2 + $0x420] sm:$0xff] %v8659_v60  ;;  %v9079_v60 = vmul.f32 %v6099_v57, %v6098_v55  ;;  %v6141_v55 = vld [vmem:[%s13896_s1 + $0x5a8] sm:$0xff]  ;;  %v6143_v57 = vld [vmem:[%s13895_s0 + $0x5b0] sm:$0xff] }
  0x8a   :  { %5998 = vst [vmem:[%s13897_s2 + $0x428] sm:$0xff] %v8671_v12  ;;  %v9091_v12 = vmul.f32 %v6102_v0, %v6101_v58  ;;  %v6144_v58 = vld [vmem:[%s13896_s1 + $0x5b0] sm:$0xff]  ;;  %v6146_v0 = vld [vmem:[%s13895_s0 + $0x5b8] sm:$0xff] }
  0x8b   :  { %6001 = vst [vmem:[%s13897_s2 + $0x430] sm:$0xff] %v8683_v61  ;;  %v9103_v61 = vmul.f32 %v6105_v3, %v6104_v2  ;;  %v6147_v2 = vld [vmem:[%s13896_s1 + $0x5b8] sm:$0xff]  ;;  %v6149_v3 = vld [vmem:[%s13895_s0 + $0x5c0] sm:$0xff] }
  0x8c   :  { %6004 = vst [vmem:[%s13897_s2 + $0x438] sm:$0xff] %v8695_v8  ;;  %v9115_v8 = vmul.f32 %v6108_v7, %v6107_v4  ;;  %v6150_v4 = vld [vmem:[%s13896_s1 + $0x5c0] sm:$0xff]  ;;  %v6152_v7 = vld [vmem:[%s13895_s0 + $0x5c8] sm:$0xff] }
  0x8d   :  { %6007 = vst [vmem:[%s13897_s2 + $0x440] sm:$0xff] %v8707_v1  ;;  %v9127_v1 = vmul.f32 %v6111_v13, %v6110_v9  ;;  %v6153_v9 = vld [vmem:[%s13896_s1 + $0x5c8] sm:$0xff]  ;;  %v6155_v13 = vld [vmem:[%s13895_s0 + $0x5d0] sm:$0xff] }
  0x8e   :  { %6010 = vst [vmem:[%s13897_s2 + $0x448] sm:$0xff] %v8719_v5  ;;  %v9139_v5 = vmul.f32 %v6114_v17, %v6113_v16  ;;  %v6156_v16 = vld [vmem:[%s13896_s1 + $0x5d0] sm:$0xff]  ;;  %v6158_v17 = vld [vmem:[%s13895_s0 + $0x5d8] sm:$0xff] }
  0x8f   :  { %6013 = vst [vmem:[%s13897_s2 + $0x450] sm:$0xff] %v8731_v18  ;;  %v9151_v18 = vmul.f32 %v6117_v21, %v6116_v20  ;;  %v6159_v20 = vld [vmem:[%s13896_s1 + $0x5d8] sm:$0xff]  ;;  %v6161_v21 = vld [vmem:[%s13895_s0 + $0x5e0] sm:$0xff] }
  0x90   :  { %6016 = vst [vmem:[%s13897_s2 + $0x458] sm:$0xff] %v8743_v6  ;;  %v9163_v6 = vmul.f32 %v6120_v26, %v6119_v25  ;;  %v6162_v25 = vld [vmem:[%s13896_s1 + $0x5e0] sm:$0xff]  ;;  %v6164_v26 = vld [vmem:[%s13895_s0 + $0x5e8] sm:$0xff] }
  0x91   :  { %6019 = vst [vmem:[%s13897_s2 + $0x460] sm:$0xff] %v8755_v10  ;;  %v9175_v10 = vmul.f32 %v6123_v30, %v6122_v27  ;;  %v6165_v27 = vld [vmem:[%s13896_s1 + $0x5e8] sm:$0xff]  ;;  %v6167_v30 = vld [vmem:[%s13895_s0 + $0x5f0] sm:$0xff] }
  0x92   :  { %6022 = vst [vmem:[%s13897_s2 + $0x468] sm:$0xff] %v8767_v29  ;;  %v9187_v29 = vmul.f32 %v6126_v34, %v6125_v31  ;;  %v6168_v31 = vld [vmem:[%s13896_s1 + $0x5f0] sm:$0xff]  ;;  %v6170_v34 = vld [vmem:[%s13895_s0 + $0x5f8] sm:$0xff] }
  0x93   :  { %6025 = vst [vmem:[%s13897_s2 + $0x470] sm:$0xff] %v8779_v14  ;;  %v9199_v14 = vmul.f32 %v6129_v38, %v6128_v36  ;;  %v6171_v36 = vld [vmem:[%s13896_s1 + $0x5f8] sm:$0xff]  ;;  %v6173_v38 = vld [vmem:[%s13895_s0 + $0x600] sm:$0xff] }
  0x94   :  { %6028 = vst [vmem:[%s13897_s2 + $0x478] sm:$0xff] %v8791_v15  ;;  %v9211_v15 = vmul.f32 %v6132_v43, %v6131_v40  ;;  %v6174_v40 = vld [vmem:[%s13896_s1 + $0x600] sm:$0xff]  ;;  %v6176_v43 = vld [vmem:[%s13895_s0 + $0x608] sm:$0xff] }
  0x95   :  { %6031 = vst [vmem:[%s13897_s2 + $0x480] sm:$0xff] %v8803_v39  ;;  %v9223_v39 = vmul.f32 %v6135_v45, %v6134_v44  ;;  %v6177_v44 = vld [vmem:[%s13896_s1 + $0x608] sm:$0xff]  ;;  %v6179_v45 = vld [vmem:[%s13895_s0 + $0x610] sm:$0xff] }
  0x96   :  { %6034 = vst [vmem:[%s13897_s2 + $0x488] sm:$0xff] %v8815_v19  ;;  %v9235_v19 = vmul.f32 %v6138_v53, %v6137_v48  ;;  %v6180_v48 = vld [vmem:[%s13896_s1 + $0x610] sm:$0xff]  ;;  %v6182_v53 = vld [vmem:[%s13895_s0 + $0x618] sm:$0xff] }
  0x97   :  { %6037 = vst [vmem:[%s13897_s2 + $0x490] sm:$0xff] %v8827_v23  ;;  %v9247_v23 = vmul.f32 %v6141_v55, %v6140_v54  ;;  %v6183_v54 = vld [vmem:[%s13896_s1 + $0x618] sm:$0xff]  ;;  %v6185_v55 = vld [vmem:[%s13895_s0 + $0x620] sm:$0xff] }
  0x98   :  { %6040 = vst [vmem:[%s13897_s2 + $0x498] sm:$0xff] %v8839_v49  ;;  %v9259_v49 = vmul.f32 %v6144_v58, %v6143_v57  ;;  %v6186_v57 = vld [vmem:[%s13896_s1 + $0x620] sm:$0xff]  ;;  %v6188_v58 = vld [vmem:[%s13895_s0 + $0x628] sm:$0xff] }
  0x99   :  { %6043 = vst [vmem:[%s13897_s2 + $0x4a0] sm:$0xff] %v8851_v24  ;;  %v9271_v24 = vmul.f32 %v6147_v2, %v6146_v0  ;;  %v6189_v0 = vld [vmem:[%s13896_s1 + $0x628] sm:$0xff]  ;;  %v6191_v2 = vld [vmem:[%s13895_s0 + $0x630] sm:$0xff] }
  0x9a   :  { %6046 = vst [vmem:[%s13897_s2 + $0x4a8] sm:$0xff] %v8863_v28  ;;  %v9283_v28 = vmul.f32 %v6150_v4, %v6149_v3  ;;  %v6192_v3 = vld [vmem:[%s13896_s1 + $0x630] sm:$0xff]  ;;  %v6194_v4 = vld [vmem:[%s13895_s0 + $0x638] sm:$0xff] }
  0x9b   :  { %6049 = vst [vmem:[%s13897_s2 + $0x4b0] sm:$0xff] %v8875_v63  ;;  %v9295_v63 = vmul.f32 %v6153_v9, %v6152_v7  ;;  %v6195_v7 = vld [vmem:[%s13896_s1 + $0x638] sm:$0xff]  ;;  %v6197_v9 = vld [vmem:[%s13895_s0 + $0x640] sm:$0xff] }
  0x9c   :  { %6052 = vst [vmem:[%s13897_s2 + $0x4b8] sm:$0xff] %v8887_v32  ;;  %v9307_v32 = vmul.f32 %v6156_v16, %v6155_v13  ;;  %v6198_v13 = vld [vmem:[%s13896_s1 + $0x640] sm:$0xff]  ;;  %v6200_v16 = vld [vmem:[%s13895_s0 + $0x648] sm:$0xff] }
  0x9d   :  { %6055 = vst [vmem:[%s13897_s2 + $0x4c0] sm:$0xff] %v8899_v33  ;;  %v9319_v33 = vmul.f32 %v6159_v20, %v6158_v17  ;;  %v6201_v17 = vld [vmem:[%s13896_s1 + $0x648] sm:$0xff]  ;;  %v6203_v20 = vld [vmem:[%s13895_s0 + $0x650] sm:$0xff] }
  0x9e   :  { %6058 = vst [vmem:[%s13897_s2 + $0x4c8] sm:$0xff] %v8911_v11  ;;  %v9331_v11 = vmul.f32 %v6162_v25, %v6161_v21  ;;  %v6204_v21 = vld [vmem:[%s13896_s1 + $0x650] sm:$0xff]  ;;  %v6206_v25 = vld [vmem:[%s13895_s0 + $0x658] sm:$0xff] }
  0x9f   :  { %6061 = vst [vmem:[%s13897_s2 + $0x4d0] sm:$0xff] %v8923_v37  ;;  %v9343_v37 = vmul.f32 %v6165_v27, %v6164_v26  ;;  %v6207_v26 = vld [vmem:[%s13896_s1 + $0x658] sm:$0xff]  ;;  %v6209_v27 = vld [vmem:[%s13895_s0 + $0x660] sm:$0xff] }
  0xa0   :  { %6064 = vst [vmem:[%s13897_s2 + $0x4d8] sm:$0xff] %v8935_v41  ;;  %v9355_v41 = vmul.f32 %v6168_v31, %v6167_v30  ;;  %v6210_v30 = vld [vmem:[%s13896_s1 + $0x660] sm:$0xff]  ;;  %v6212_v31 = vld [vmem:[%s13895_s0 + $0x668] sm:$0xff] }
  0xa1   :  { %6067 = vst [vmem:[%s13897_s2 + $0x4e0] sm:$0xff] %v8947_v22  ;;  %v9367_v22 = vmul.f32 %v6171_v36, %v6170_v34  ;;  %v6213_v34 = vld [vmem:[%s13896_s1 + $0x668] sm:$0xff]  ;;  %v6215_v36 = vld [vmem:[%s13895_s0 + $0x670] sm:$0xff] }
  0xa2   :  { %6070 = vst [vmem:[%s13897_s2 + $0x4e8] sm:$0xff] %v8959_v42  ;;  %v9379_v42 = vmul.f32 %v6174_v40, %v6173_v38  ;;  %v6216_v38 = vld [vmem:[%s13896_s1 + $0x670] sm:$0xff]  ;;  %v6218_v40 = vld [vmem:[%s13895_s0 + $0x678] sm:$0xff] }
  0xa3   :  { %6073 = vst [vmem:[%s13897_s2 + $0x4f0] sm:$0xff] %v8971_v46  ;;  %v9391_v46 = vmul.f32 %v6177_v44, %v6176_v43  ;;  %v6219_v43 = vld [vmem:[%s13896_s1 + $0x678] sm:$0xff]  ;;  %v6221_v44 = vld [vmem:[%s13895_s0 + $0x680] sm:$0xff] }
  0xa4   :  { %6076 = vst [vmem:[%s13897_s2 + $0x4f8] sm:$0xff] %v8983_v35  ;;  %v9403_v35 = vmul.f32 %v6180_v48, %v6179_v45  ;;  %v6222_v45 = vld [vmem:[%s13896_s1 + $0x680] sm:$0xff]  ;;  %v6224_v48 = vld [vmem:[%s13895_s0 + $0x688] sm:$0xff] }
  0xa5   :  { %6079 = vst [vmem:[%s13897_s2 + $0x500] sm:$0xff] %v8995_v50  ;;  %v9415_v50 = vmul.f32 %v6183_v54, %v6182_v53  ;;  %v6225_v53 = vld [vmem:[%s13896_s1 + $0x688] sm:$0xff]  ;;  %v6227_v54 = vld [vmem:[%s13895_s0 + $0x690] sm:$0xff] }
  0xa6   :  { %6082 = vst [vmem:[%s13897_s2 + $0x508] sm:$0xff] %v9007_v51  ;;  %v9427_v51 = vmul.f32 %v6186_v57, %v6185_v55  ;;  %v6228_v55 = vld [vmem:[%s13896_s1 + $0x690] sm:$0xff]  ;;  %v6230_v57 = vld [vmem:[%s13895_s0 + $0x698] sm:$0xff] }
  0xa7   :  { %6085 = vst [vmem:[%s13897_s2 + $0x510] sm:$0xff] %v9019_v47  ;;  %v9439_v47 = vmul.f32 %v6189_v0, %v6188_v58  ;;  %v6231_v58 = vld [vmem:[%s13896_s1 + $0x698] sm:$0xff]  ;;  %v6233_v0 = vld [vmem:[%s13895_s0 + $0x6a0] sm:$0xff] }
  0xa8   :  { %6088 = vst [vmem:[%s13897_s2 + $0x518] sm:$0xff] %v9031_v52  ;;  %v9451_v52 = vmul.f32 %v6192_v3, %v6191_v2  ;;  %v6234_v2 = vld [vmem:[%s13896_s1 + $0x6a0] sm:$0xff]  ;;  %v6236_v3 = vld [vmem:[%s13895_s0 + $0x6a8] sm:$0xff] }
  0xa9   :  { %6091 = vst [vmem:[%s13897_s2 + $0x520] sm:$0xff] %v9043_v56  ;;  %v9463_v56 = vmul.f32 %v6195_v7, %v6194_v4  ;;  %v6237_v4 = vld [vmem:[%s13896_s1 + $0x6a8] sm:$0xff]  ;;  %v6239_v7 = vld [vmem:[%s13895_s0 + $0x6b0] sm:$0xff] }
  0xaa   :  { %6094 = vst [vmem:[%s13897_s2 + $0x528] sm:$0xff] %v9055_v59  ;;  %v9475_v59 = vmul.f32 %v6198_v13, %v6197_v9  ;;  %v6240_v9 = vld [vmem:[%s13896_s1 + $0x6b0] sm:$0xff]  ;;  %v6242_v13 = vld [vmem:[%s13895_s0 + $0x6b8] sm:$0xff] }
  0xab   :  { %6097 = vst [vmem:[%s13897_s2 + $0x530] sm:$0xff] %v9067_v62  ;;  %v9487_v62 = vmul.f32 %v6201_v17, %v6200_v16  ;;  %v6243_v16 = vld [vmem:[%s13896_s1 + $0x6b8] sm:$0xff]  ;;  %v6245_v17 = vld [vmem:[%s13895_s0 + $0x6c0] sm:$0xff] }
  0xac   :  { %6100 = vst [vmem:[%s13897_s2 + $0x538] sm:$0xff] %v9079_v60  ;;  %v9499_v60 = vmul.f32 %v6204_v21, %v6203_v20  ;;  %v6246_v20 = vld [vmem:[%s13896_s1 + $0x6c0] sm:$0xff]  ;;  %v6248_v21 = vld [vmem:[%s13895_s0 + $0x6c8] sm:$0xff] }
  0xad   :  { %6103 = vst [vmem:[%s13897_s2 + $0x540] sm:$0xff] %v9091_v12  ;;  %v9511_v12 = vmul.f32 %v6207_v26, %v6206_v25  ;;  %v6249_v25 = vld [vmem:[%s13896_s1 + $0x6c8] sm:$0xff]  ;;  %v6251_v26 = vld [vmem:[%s13895_s0 + $0x6d0] sm:$0xff] }
  0xae   :  { %6106 = vst [vmem:[%s13897_s2 + $0x548] sm:$0xff] %v9103_v61  ;;  %v9523_v61 = vmul.f32 %v6210_v30, %v6209_v27  ;;  %v6252_v27 = vld [vmem:[%s13896_s1 + $0x6d0] sm:$0xff]  ;;  %v6254_v30 = vld [vmem:[%s13895_s0 + $0x6d8] sm:$0xff] }
  0xaf   :  { %6109 = vst [vmem:[%s13897_s2 + $0x550] sm:$0xff] %v9115_v8  ;;  %v9535_v8 = vmul.f32 %v6213_v34, %v6212_v31  ;;  %v6255_v31 = vld [vmem:[%s13896_s1 + $0x6d8] sm:$0xff]  ;;  %v6257_v34 = vld [vmem:[%s13895_s0 + $0x6e0] sm:$0xff] }
  0xb0   :  { %6112 = vst [vmem:[%s13897_s2 + $0x558] sm:$0xff] %v9127_v1  ;;  %v9547_v1 = vmul.f32 %v6216_v38, %v6215_v36  ;;  %v6258_v36 = vld [vmem:[%s13896_s1 + $0x6e0] sm:$0xff]  ;;  %v6260_v38 = vld [vmem:[%s13895_s0 + $0x6e8] sm:$0xff] }
  0xb1   :  { %6115 = vst [vmem:[%s13897_s2 + $0x560] sm:$0xff] %v9139_v5  ;;  %v9559_v5 = vmul.f32 %v6219_v43, %v6218_v40  ;;  %v6261_v40 = vld [vmem:[%s13896_s1 + $0x6e8] sm:$0xff]  ;;  %v6263_v43 = vld [vmem:[%s13895_s0 + $0x6f0] sm:$0xff] }
  0xb2   :  { %6118 = vst [vmem:[%s13897_s2 + $0x568] sm:$0xff] %v9151_v18  ;;  %v9571_v18 = vmul.f32 %v6222_v45, %v6221_v44  ;;  %v6264_v44 = vld [vmem:[%s13896_s1 + $0x6f0] sm:$0xff]  ;;  %v6266_v45 = vld [vmem:[%s13895_s0 + $0x6f8] sm:$0xff] }
  0xb3   :  { %6121 = vst [vmem:[%s13897_s2 + $0x570] sm:$0xff] %v9163_v6  ;;  %v9583_v6 = vmul.f32 %v6225_v53, %v6224_v48  ;;  %v6267_v48 = vld [vmem:[%s13896_s1 + $0x6f8] sm:$0xff]  ;;  %v6269_v53 = vld [vmem:[%s13895_s0 + $0x700] sm:$0xff] }
  0xb4   :  { %6124 = vst [vmem:[%s13897_s2 + $0x578] sm:$0xff] %v9175_v10  ;;  %v9595_v10 = vmul.f32 %v6228_v55, %v6227_v54  ;;  %v6270_v54 = vld [vmem:[%s13896_s1 + $0x700] sm:$0xff]  ;;  %v6272_v55 = vld [vmem:[%s13895_s0 + $0x708] sm:$0xff] }
  0xb5   :  { %6127 = vst [vmem:[%s13897_s2 + $0x580] sm:$0xff] %v9187_v29  ;;  %v9607_v29 = vmul.f32 %v6231_v58, %v6230_v57  ;;  %v6273_v57 = vld [vmem:[%s13896_s1 + $0x708] sm:$0xff]  ;;  %v6275_v58 = vld [vmem:[%s13895_s0 + $0x710] sm:$0xff] }
  0xb6   :  { %6130 = vst [vmem:[%s13897_s2 + $0x588] sm:$0xff] %v9199_v14  ;;  %v9619_v14 = vmul.f32 %v6234_v2, %v6233_v0  ;;  %v6276_v0 = vld [vmem:[%s13896_s1 + $0x710] sm:$0xff]  ;;  %v6278_v2 = vld [vmem:[%s13895_s0 + $0x718] sm:$0xff] }
  0xb7   :  { %6133 = vst [vmem:[%s13897_s2 + $0x590] sm:$0xff] %v9211_v15  ;;  %v9631_v15 = vmul.f32 %v6237_v4, %v6236_v3  ;;  %v6279_v3 = vld [vmem:[%s13896_s1 + $0x718] sm:$0xff]  ;;  %v6281_v4 = vld [vmem:[%s13895_s0 + $0x720] sm:$0xff] }
  0xb8   :  { %6136 = vst [vmem:[%s13897_s2 + $0x598] sm:$0xff] %v9223_v39  ;;  %v9643_v39 = vmul.f32 %v6240_v9, %v6239_v7  ;;  %v6282_v7 = vld [vmem:[%s13896_s1 + $0x720] sm:$0xff]  ;;  %v6284_v9 = vld [vmem:[%s13895_s0 + $0x728] sm:$0xff] }
  0xb9   :  { %6139 = vst [vmem:[%s13897_s2 + $0x5a0] sm:$0xff] %v9235_v19  ;;  %v9655_v19 = vmul.f32 %v6243_v16, %v6242_v13  ;;  %v6285_v13 = vld [vmem:[%s13896_s1 + $0x728] sm:$0xff]  ;;  %v6287_v16 = vld [vmem:[%s13895_s0 + $0x730] sm:$0xff] }
  0xba   :  { %6142 = vst [vmem:[%s13897_s2 + $0x5a8] sm:$0xff] %v9247_v23  ;;  %v9667_v23 = vmul.f32 %v6246_v20, %v6245_v17  ;;  %v6288_v17 = vld [vmem:[%s13896_s1 + $0x730] sm:$0xff]  ;;  %v6290_v20 = vld [vmem:[%s13895_s0 + $0x738] sm:$0xff] }
  0xbb   :  { %6145 = vst [vmem:[%s13897_s2 + $0x5b0] sm:$0xff] %v9259_v49  ;;  %v9679_v49 = vmul.f32 %v6249_v25, %v6248_v21  ;;  %v6291_v21 = vld [vmem:[%s13896_s1 + $0x738] sm:$0xff]  ;;  %v6293_v25 = vld [vmem:[%s13895_s0 + $0x740] sm:$0xff] }
  0xbc   :  { %6148 = vst [vmem:[%s13897_s2 + $0x5b8] sm:$0xff] %v9271_v24  ;;  %v9691_v24 = vmul.f32 %v6252_v27, %v6251_v26  ;;  %v6294_v26 = vld [vmem:[%s13896_s1 + $0x740] sm:$0xff]  ;;  %v6296_v27 = vld [vmem:[%s13895_s0 + $0x748] sm:$0xff] }
  0xbd   :  { %6151 = vst [vmem:[%s13897_s2 + $0x5c0] sm:$0xff] %v9283_v28  ;;  %v9703_v28 = vmul.f32 %v6255_v31, %v6254_v30  ;;  %v6297_v30 = vld [vmem:[%s13896_s1 + $0x748] sm:$0xff]  ;;  %v6299_v31 = vld [vmem:[%s13895_s0 + $0x750] sm:$0xff] }
  0xbe   :  { %6154 = vst [vmem:[%s13897_s2 + $0x5c8] sm:$0xff] %v9295_v63  ;;  %v9715_v63 = vmul.f32 %v6258_v36, %v6257_v34  ;;  %v6300_v34 = vld [vmem:[%s13896_s1 + $0x750] sm:$0xff]  ;;  %v6302_v36 = vld [vmem:[%s13895_s0 + $0x758] sm:$0xff] }
  0xbf   :  { %6157 = vst [vmem:[%s13897_s2 + $0x5d0] sm:$0xff] %v9307_v32  ;;  %v9727_v32 = vmul.f32 %v6261_v40, %v6260_v38  ;;  %v6303_v38 = vld [vmem:[%s13896_s1 + $0x758] sm:$0xff]  ;;  %v6305_v40 = vld [vmem:[%s13895_s0 + $0x760] sm:$0xff] }
  0xc0   :  { %6160 = vst [vmem:[%s13897_s2 + $0x5d8] sm:$0xff] %v9319_v33  ;;  %v9739_v33 = vmul.f32 %v6264_v44, %v6263_v43  ;;  %v6306_v43 = vld [vmem:[%s13896_s1 + $0x760] sm:$0xff]  ;;  %v6308_v44 = vld [vmem:[%s13895_s0 + $0x768] sm:$0xff] }
  0xc1   :  { %6163 = vst [vmem:[%s13897_s2 + $0x5e0] sm:$0xff] %v9331_v11  ;;  %v9751_v11 = vmul.f32 %v6267_v48, %v6266_v45  ;;  %v6309_v45 = vld [vmem:[%s13896_s1 + $0x768] sm:$0xff]  ;;  %v6311_v48 = vld [vmem:[%s13895_s0 + $0x770] sm:$0xff] }
  0xc2   :  { %6166 = vst [vmem:[%s13897_s2 + $0x5e8] sm:$0xff] %v9343_v37  ;;  %v9763_v37 = vmul.f32 %v6270_v54, %v6269_v53  ;;  %v6312_v53 = vld [vmem:[%s13896_s1 + $0x770] sm:$0xff]  ;;  %v6314_v54 = vld [vmem:[%s13895_s0 + $0x778] sm:$0xff] }
  0xc3   :  { %6169 = vst [vmem:[%s13897_s2 + $0x5f0] sm:$0xff] %v9355_v41  ;;  %v9775_v41 = vmul.f32 %v6273_v57, %v6272_v55  ;;  %v6315_v55 = vld [vmem:[%s13896_s1 + $0x778] sm:$0xff]  ;;  %v6317_v57 = vld [vmem:[%s13895_s0 + $0x780] sm:$0xff] }
  0xc4   :  { %6172 = vst [vmem:[%s13897_s2 + $0x5f8] sm:$0xff] %v9367_v22  ;;  %v9787_v22 = vmul.f32 %v6276_v0, %v6275_v58  ;;  %v6318_v58 = vld [vmem:[%s13896_s1 + $0x780] sm:$0xff]  ;;  %v6320_v0 = vld [vmem:[%s13895_s0 + $0x788] sm:$0xff] }
  0xc5   :  { %6175 = vst [vmem:[%s13897_s2 + $0x600] sm:$0xff] %v9379_v42  ;;  %v9799_v42 = vmul.f32 %v6279_v3, %v6278_v2  ;;  %v6321_v2 = vld [vmem:[%s13896_s1 + $0x788] sm:$0xff]  ;;  %v6323_v3 = vld [vmem:[%s13895_s0 + $0x790] sm:$0xff] }
  0xc6   :  { %6178 = vst [vmem:[%s13897_s2 + $0x608] sm:$0xff] %v9391_v46  ;;  %v9811_v46 = vmul.f32 %v6282_v7, %v6281_v4  ;;  %v6324_v4 = vld [vmem:[%s13896_s1 + $0x790] sm:$0xff]  ;;  %v6326_v7 = vld [vmem:[%s13895_s0 + $0x798] sm:$0xff] }
  0xc7   :  { %6181 = vst [vmem:[%s13897_s2 + $0x610] sm:$0xff] %v9403_v35  ;;  %v9823_v35 = vmul.f32 %v6285_v13, %v6284_v9  ;;  %v6327_v9 = vld [vmem:[%s13896_s1 + $0x798] sm:$0xff]  ;;  %v6329_v13 = vld [vmem:[%s13895_s0 + $0x7a0] sm:$0xff] }
  0xc8   :  { %6184 = vst [vmem:[%s13897_s2 + $0x618] sm:$0xff] %v9415_v50  ;;  %v9835_v50 = vmul.f32 %v6288_v17, %v6287_v16  ;;  %v6330_v16 = vld [vmem:[%s13896_s1 + $0x7a0] sm:$0xff]  ;;  %v6332_v17 = vld [vmem:[%s13895_s0 + $0x7a8] sm:$0xff] }
  0xc9   :  { %6187 = vst [vmem:[%s13897_s2 + $0x620] sm:$0xff] %v9427_v51  ;;  %v9847_v51 = vmul.f32 %v6291_v21, %v6290_v20  ;;  %v6333_v20 = vld [vmem:[%s13896_s1 + $0x7a8] sm:$0xff]  ;;  %v6335_v21 = vld [vmem:[%s13895_s0 + $0x7b0] sm:$0xff] }
  0xca   :  { %6190 = vst [vmem:[%s13897_s2 + $0x628] sm:$0xff] %v9439_v47  ;;  %v9859_v47 = vmul.f32 %v6294_v26, %v6293_v25  ;;  %v6336_v25 = vld [vmem:[%s13896_s1 + $0x7b0] sm:$0xff]  ;;  %v6338_v26 = vld [vmem:[%s13895_s0 + $0x7b8] sm:$0xff] }
  0xcb   :  { %6193 = vst [vmem:[%s13897_s2 + $0x630] sm:$0xff] %v9451_v52  ;;  %v9871_v52 = vmul.f32 %v6297_v30, %v6296_v27  ;;  %v6339_v27 = vld [vmem:[%s13896_s1 + $0x7b8] sm:$0xff]  ;;  %v6341_v30 = vld [vmem:[%s13895_s0 + $0x7c0] sm:$0xff] }
  0xcc   :  { %6196 = vst [vmem:[%s13897_s2 + $0x638] sm:$0xff] %v9463_v56  ;;  %v9883_v56 = vmul.f32 %v6300_v34, %v6299_v31  ;;  %v6342_v31 = vld [vmem:[%s13896_s1 + $0x7c0] sm:$0xff]  ;;  %v6344_v34 = vld [vmem:[%s13895_s0 + $0x7c8] sm:$0xff] }
  0xcd   :  { %6199 = vst [vmem:[%s13897_s2 + $0x640] sm:$0xff] %v9475_v59  ;;  %v9895_v59 = vmul.f32 %v6303_v38, %v6302_v36  ;;  %v6345_v36 = vld [vmem:[%s13896_s1 + $0x7c8] sm:$0xff]  ;;  %v6347_v38 = vld [vmem:[%s13895_s0 + $0x7d0] sm:$0xff] }
  0xce   :  { %6202 = vst [vmem:[%s13897_s2 + $0x648] sm:$0xff] %v9487_v62  ;;  %v9907_v62 = vmul.f32 %v6306_v43, %v6305_v40  ;;  %v6348_v40 = vld [vmem:[%s13896_s1 + $0x7d0] sm:$0xff]  ;;  %v6350_v43 = vld [vmem:[%s13895_s0 + $0x7d8] sm:$0xff] }
  0xcf   :  { %6205 = vst [vmem:[%s13897_s2 + $0x650] sm:$0xff] %v9499_v60  ;;  %v9919_v60 = vmul.f32 %v6309_v45, %v6308_v44  ;;  %v6351_v44 = vld [vmem:[%s13896_s1 + $0x7d8] sm:$0xff]  ;;  %v6353_v45 = vld [vmem:[%s13895_s0 + $0x7e0] sm:$0xff] }
  0xd0   :  { %6208 = vst [vmem:[%s13897_s2 + $0x658] sm:$0xff] %v9511_v12  ;;  %v9931_v12 = vmul.f32 %v6312_v53, %v6311_v48  ;;  %v6354_v48 = vld [vmem:[%s13896_s1 + $0x7e0] sm:$0xff]  ;;  %v6356_v53 = vld [vmem:[%s13895_s0 + $0x7e8] sm:$0xff] }
  0xd1   :  { %6211 = vst [vmem:[%s13897_s2 + $0x660] sm:$0xff] %v9523_v61  ;;  %v9943_v61 = vmul.f32 %v6315_v55, %v6314_v54  ;;  %v6357_v54 = vld [vmem:[%s13896_s1 + $0x7e8] sm:$0xff]  ;;  %v6359_v55 = vld [vmem:[%s13895_s0 + $0x7f0] sm:$0xff] }
  0xd2   :  { %6214 = vst [vmem:[%s13897_s2 + $0x668] sm:$0xff] %v9535_v8  ;;  %v9955_v8 = vmul.f32 %v6318_v58, %v6317_v57  ;;  %v6360_v57 = vld [vmem:[%s13896_s1 + $0x7f0] sm:$0xff]  ;;  %v6362_v58 = vld [vmem:[%s13895_s0 + $0x7f8] sm:$0xff] }
  0xd3   :  { %6217 = vst [vmem:[%s13897_s2 + $0x670] sm:$0xff] %v9547_v1  ;;  %v9967_v1 = vmul.f32 %v6321_v2, %v6320_v0  ;;  %v6363_v0 = vld [vmem:[%s13896_s1 + $0x7f8] sm:$0xff]  ;;  %v6365_v2 = vld [vmem:[%s13895_s0 + $0x800] sm:$0xff] }
  0xd4   :  { %6220 = vst [vmem:[%s13897_s2 + $0x678] sm:$0xff] %v9559_v5  ;;  %v9979_v5 = vmul.f32 %v6324_v4, %v6323_v3  ;;  %v6366_v3 = vld [vmem:[%s13896_s1 + $0x800] sm:$0xff]  ;;  %v6368_v4 = vld [vmem:[%s13895_s0 + $0x808] sm:$0xff] }
  0xd5   :  { %6223 = vst [vmem:[%s13897_s2 + $0x680] sm:$0xff] %v9571_v18  ;;  %v9991_v18 = vmul.f32 %v6327_v9, %v6326_v7  ;;  %v6369_v7 = vld [vmem:[%s13896_s1 + $0x808] sm:$0xff]  ;;  %v6371_v9 = vld [vmem:[%s13895_s0 + $0x810] sm:$0xff] }
  0xd6   :  { %6226 = vst [vmem:[%s13897_s2 + $0x688] sm:$0xff] %v9583_v6  ;;  %v10003_v6 = vmul.f32 %v6330_v16, %v6329_v13  ;;  %v6372_v13 = vld [vmem:[%s13896_s1 + $0x810] sm:$0xff]  ;;  %v6374_v16 = vld [vmem:[%s13895_s0 + $0x818] sm:$0xff] }
  0xd7   :  { %6229 = vst [vmem:[%s13897_s2 + $0x690] sm:$0xff] %v9595_v10  ;;  %v10015_v10 = vmul.f32 %v6333_v20, %v6332_v17  ;;  %v6375_v17 = vld [vmem:[%s13896_s1 + $0x818] sm:$0xff]  ;;  %v6377_v20 = vld [vmem:[%s13895_s0 + $0x820] sm:$0xff] }
  0xd8   :  { %6232 = vst [vmem:[%s13897_s2 + $0x698] sm:$0xff] %v9607_v29  ;;  %v10027_v29 = vmul.f32 %v6336_v25, %v6335_v21  ;;  %v6378_v21 = vld [vmem:[%s13896_s1 + $0x820] sm:$0xff]  ;;  %v6380_v25 = vld [vmem:[%s13895_s0 + $0x828] sm:$0xff] }
  0xd9   :  { %6235 = vst [vmem:[%s13897_s2 + $0x6a0] sm:$0xff] %v9619_v14  ;;  %v10039_v14 = vmul.f32 %v6339_v27, %v6338_v26  ;;  %v6381_v26 = vld [vmem:[%s13896_s1 + $0x828] sm:$0xff]  ;;  %v6383_v27 = vld [vmem:[%s13895_s0 + $0x830] sm:$0xff] }
  0xda   :  { %6238 = vst [vmem:[%s13897_s2 + $0x6a8] sm:$0xff] %v9631_v15  ;;  %v10051_v15 = vmul.f32 %v6342_v31, %v6341_v30  ;;  %v6384_v30 = vld [vmem:[%s13896_s1 + $0x830] sm:$0xff]  ;;  %v6386_v31 = vld [vmem:[%s13895_s0 + $0x838] sm:$0xff] }
  0xdb   :  { %6241 = vst [vmem:[%s13897_s2 + $0x6b0] sm:$0xff] %v9643_v39  ;;  %v10063_v39 = vmul.f32 %v6345_v36, %v6344_v34  ;;  %v6387_v34 = vld [vmem:[%s13896_s1 + $0x838] sm:$0xff]  ;;  %v6389_v36 = vld [vmem:[%s13895_s0 + $0x840] sm:$0xff] }
  0xdc   :  { %6244 = vst [vmem:[%s13897_s2 + $0x6b8] sm:$0xff] %v9655_v19  ;;  %v10075_v19 = vmul.f32 %v6348_v40, %v6347_v38  ;;  %v6390_v38 = vld [vmem:[%s13896_s1 + $0x840] sm:$0xff]  ;;  %v6392_v40 = vld [vmem:[%s13895_s0 + $0x848] sm:$0xff] }
  0xdd   :  { %6247 = vst [vmem:[%s13897_s2 + $0x6c0] sm:$0xff] %v9667_v23  ;;  %v10087_v23 = vmul.f32 %v6351_v44, %v6350_v43  ;;  %v6393_v43 = vld [vmem:[%s13896_s1 + $0x848] sm:$0xff]  ;;  %v6395_v44 = vld [vmem:[%s13895_s0 + $0x850] sm:$0xff] }
  0xde   :  { %6250 = vst [vmem:[%s13897_s2 + $0x6c8] sm:$0xff] %v9679_v49  ;;  %v10099_v49 = vmul.f32 %v6354_v48, %v6353_v45  ;;  %v6396_v45 = vld [vmem:[%s13896_s1 + $0x850] sm:$0xff]  ;;  %v6398_v48 = vld [vmem:[%s13895_s0 + $0x858] sm:$0xff] }
  0xdf   :  { %6253 = vst [vmem:[%s13897_s2 + $0x6d0] sm:$0xff] %v9691_v24  ;;  %v10111_v24 = vmul.f32 %v6357_v54, %v6356_v53  ;;  %v6399_v53 = vld [vmem:[%s13896_s1 + $0x858] sm:$0xff]  ;;  %v6401_v54 = vld [vmem:[%s13895_s0 + $0x860] sm:$0xff] }
  0xe0   :  { %6256 = vst [vmem:[%s13897_s2 + $0x6d8] sm:$0xff] %v9703_v28  ;;  %v10123_v28 = vmul.f32 %v6360_v57, %v6359_v55  ;;  %v6402_v55 = vld [vmem:[%s13896_s1 + $0x860] sm:$0xff]  ;;  %v6404_v57 = vld [vmem:[%s13895_s0 + $0x868] sm:$0xff] }
  0xe1   :  { %6259 = vst [vmem:[%s13897_s2 + $0x6e0] sm:$0xff] %v9715_v63  ;;  %v10135_v63 = vmul.f32 %v6363_v0, %v6362_v58  ;;  %v6405_v58 = vld [vmem:[%s13896_s1 + $0x868] sm:$0xff]  ;;  %v6407_v0 = vld [vmem:[%s13895_s0 + $0x870] sm:$0xff] }
  0xe2   :  { %6262 = vst [vmem:[%s13897_s2 + $0x6e8] sm:$0xff] %v9727_v32  ;;  %v10147_v32 = vmul.f32 %v6366_v3, %v6365_v2  ;;  %v6408_v2 = vld [vmem:[%s13896_s1 + $0x870] sm:$0xff]  ;;  %v6410_v3 = vld [vmem:[%s13895_s0 + $0x878] sm:$0xff] }
  0xe3   :  { %6265 = vst [vmem:[%s13897_s2 + $0x6f0] sm:$0xff] %v9739_v33  ;;  %v10159_v33 = vmul.f32 %v6369_v7, %v6368_v4  ;;  %v6411_v4 = vld [vmem:[%s13896_s1 + $0x878] sm:$0xff]  ;;  %v6413_v7 = vld [vmem:[%s13895_s0 + $0x880] sm:$0xff] }
  0xe4   :  { %6268 = vst [vmem:[%s13897_s2 + $0x6f8] sm:$0xff] %v9751_v11  ;;  %v10171_v11 = vmul.f32 %v6372_v13, %v6371_v9  ;;  %v6414_v9 = vld [vmem:[%s13896_s1 + $0x880] sm:$0xff]  ;;  %v6416_v13 = vld [vmem:[%s13895_s0 + $0x888] sm:$0xff] }
  0xe5   :  { %6271 = vst [vmem:[%s13897_s2 + $0x700] sm:$0xff] %v9763_v37  ;;  %v10183_v37 = vmul.f32 %v6375_v17, %v6374_v16  ;;  %v6417_v16 = vld [vmem:[%s13896_s1 + $0x888] sm:$0xff]  ;;  %v6419_v17 = vld [vmem:[%s13895_s0 + $0x890] sm:$0xff] }
  0xe6   :  { %6274 = vst [vmem:[%s13897_s2 + $0x708] sm:$0xff] %v9775_v41  ;;  %v10195_v41 = vmul.f32 %v6378_v21, %v6377_v20  ;;  %v6420_v20 = vld [vmem:[%s13896_s1 + $0x890] sm:$0xff]  ;;  %v6422_v21 = vld [vmem:[%s13895_s0 + $0x898] sm:$0xff] }
  0xe7   :  { %6277 = vst [vmem:[%s13897_s2 + $0x710] sm:$0xff] %v9787_v22  ;;  %v10207_v22 = vmul.f32 %v6381_v26, %v6380_v25  ;;  %v6423_v25 = vld [vmem:[%s13896_s1 + $0x898] sm:$0xff]  ;;  %v6425_v26 = vld [vmem:[%s13895_s0 + $0x8a0] sm:$0xff] }
  0xe8   :  { %6280 = vst [vmem:[%s13897_s2 + $0x718] sm:$0xff] %v9799_v42  ;;  %v10219_v42 = vmul.f32 %v6384_v30, %v6383_v27  ;;  %v6426_v27 = vld [vmem:[%s13896_s1 + $0x8a0] sm:$0xff]  ;;  %v6428_v30 = vld [vmem:[%s13895_s0 + $0x8a8] sm:$0xff] }
  0xe9   :  { %6283 = vst [vmem:[%s13897_s2 + $0x720] sm:$0xff] %v9811_v46  ;;  %v10231_v46 = vmul.f32 %v6387_v34, %v6386_v31  ;;  %v6429_v31 = vld [vmem:[%s13896_s1 + $0x8a8] sm:$0xff]  ;;  %v6431_v34 = vld [vmem:[%s13895_s0 + $0x8b0] sm:$0xff] }
  0xea   :  { %6286 = vst [vmem:[%s13897_s2 + $0x728] sm:$0xff] %v9823_v35  ;;  %v10243_v35 = vmul.f32 %v6390_v38, %v6389_v36  ;;  %v6432_v36 = vld [vmem:[%s13896_s1 + $0x8b0] sm:$0xff]  ;;  %v6434_v38 = vld [vmem:[%s13895_s0 + $0x8b8] sm:$0xff] }
  0xeb   :  { %6289 = vst [vmem:[%s13897_s2 + $0x730] sm:$0xff] %v9835_v50  ;;  %v10255_v50 = vmul.f32 %v6393_v43, %v6392_v40  ;;  %v6435_v40 = vld [vmem:[%s13896_s1 + $0x8b8] sm:$0xff]  ;;  %v6437_v43 = vld [vmem:[%s13895_s0 + $0x8c0] sm:$0xff] }
  0xec   :  { %6292 = vst [vmem:[%s13897_s2 + $0x738] sm:$0xff] %v9847_v51  ;;  %v10267_v51 = vmul.f32 %v6396_v45, %v6395_v44  ;;  %v6438_v44 = vld [vmem:[%s13896_s1 + $0x8c0] sm:$0xff]  ;;  %v6440_v45 = vld [vmem:[%s13895_s0 + $0x8c8] sm:$0xff] }
  0xed   :  { %6295 = vst [vmem:[%s13897_s2 + $0x740] sm:$0xff] %v9859_v47  ;;  %v10279_v47 = vmul.f32 %v6399_v53, %v6398_v48  ;;  %v6441_v48 = vld [vmem:[%s13896_s1 + $0x8c8] sm:$0xff]  ;;  %v6443_v53 = vld [vmem:[%s13895_s0 + $0x8d0] sm:$0xff] }
  0xee   :  { %6298 = vst [vmem:[%s13897_s2 + $0x748] sm:$0xff] %v9871_v52  ;;  %v10291_v52 = vmul.f32 %v6402_v55, %v6401_v54  ;;  %v6444_v54 = vld [vmem:[%s13896_s1 + $0x8d0] sm:$0xff]  ;;  %v6446_v55 = vld [vmem:[%s13895_s0 + $0x8d8] sm:$0xff] }
  0xef   :  { %6301 = vst [vmem:[%s13897_s2 + $0x750] sm:$0xff] %v9883_v56  ;;  %v10303_v56 = vmul.f32 %v6405_v58, %v6404_v57  ;;  %v6447_v57 = vld [vmem:[%s13896_s1 + $0x8d8] sm:$0xff]  ;;  %v6449_v58 = vld [vmem:[%s13895_s0 + $0x8e0] sm:$0xff] }
  0xf0   :  { %6304 = vst [vmem:[%s13897_s2 + $0x758] sm:$0xff] %v9895_v59  ;;  %v10315_v59 = vmul.f32 %v6408_v2, %v6407_v0  ;;  %v6450_v0 = vld [vmem:[%s13896_s1 + $0x8e0] sm:$0xff]  ;;  %v6452_v2 = vld [vmem:[%s13895_s0 + $0x8e8] sm:$0xff] }
  0xf1   :  { %6307 = vst [vmem:[%s13897_s2 + $0x760] sm:$0xff] %v9907_v62  ;;  %v10327_v62 = vmul.f32 %v6411_v4, %v6410_v3  ;;  %v6453_v3 = vld [vmem:[%s13896_s1 + $0x8e8] sm:$0xff]  ;;  %v6455_v4 = vld [vmem:[%s13895_s0 + $0x8f0] sm:$0xff] }
  0xf2   :  { %6310 = vst [vmem:[%s13897_s2 + $0x768] sm:$0xff] %v9919_v60  ;;  %v10339_v60 = vmul.f32 %v6414_v9, %v6413_v7  ;;  %v6456_v7 = vld [vmem:[%s13896_s1 + $0x8f0] sm:$0xff]  ;;  %v6458_v9 = vld [vmem:[%s13895_s0 + $0x8f8] sm:$0xff] }
  0xf3   :  { %6313 = vst [vmem:[%s13897_s2 + $0x770] sm:$0xff] %v9931_v12  ;;  %v10351_v12 = vmul.f32 %v6417_v16, %v6416_v13  ;;  %v6459_v13 = vld [vmem:[%s13896_s1 + $0x8f8] sm:$0xff]  ;;  %v6461_v16 = vld [vmem:[%s13895_s0 + $0x900] sm:$0xff] }
  0xf4   :  { %6316 = vst [vmem:[%s13897_s2 + $0x778] sm:$0xff] %v9943_v61  ;;  %v10363_v61 = vmul.f32 %v6420_v20, %v6419_v17  ;;  %v6462_v17 = vld [vmem:[%s13896_s1 + $0x900] sm:$0xff]  ;;  %v6464_v20 = vld [vmem:[%s13895_s0 + $0x908] sm:$0xff] }
  0xf5   :  { %6319 = vst [vmem:[%s13897_s2 + $0x780] sm:$0xff] %v9955_v8  ;;  %v10375_v8 = vmul.f32 %v6423_v25, %v6422_v21  ;;  %v6465_v21 = vld [vmem:[%s13896_s1 + $0x908] sm:$0xff]  ;;  %v6467_v25 = vld [vmem:[%s13895_s0 + $0x910] sm:$0xff] }
  0xf6   :  { %6322 = vst [vmem:[%s13897_s2 + $0x788] sm:$0xff] %v9967_v1  ;;  %v10387_v1 = vmul.f32 %v6426_v27, %v6425_v26  ;;  %v6468_v26 = vld [vmem:[%s13896_s1 + $0x910] sm:$0xff]  ;;  %v6470_v27 = vld [vmem:[%s13895_s0 + $0x918] sm:$0xff] }
  0xf7   :  { %6325 = vst [vmem:[%s13897_s2 + $0x790] sm:$0xff] %v9979_v5  ;;  %v10399_v5 = vmul.f32 %v6429_v31, %v6428_v30  ;;  %v6471_v30 = vld [vmem:[%s13896_s1 + $0x918] sm:$0xff]  ;;  %v6473_v31 = vld [vmem:[%s13895_s0 + $0x920] sm:$0xff] }
  0xf8   :  { %6328 = vst [vmem:[%s13897_s2 + $0x798] sm:$0xff] %v9991_v18  ;;  %v10411_v18 = vmul.f32 %v6432_v36, %v6431_v34  ;;  %v6474_v34 = vld [vmem:[%s13896_s1 + $0x920] sm:$0xff]  ;;  %v6476_v36 = vld [vmem:[%s13895_s0 + $0x928] sm:$0xff] }
  0xf9   :  { %6331 = vst [vmem:[%s13897_s2 + $0x7a0] sm:$0xff] %v10003_v6  ;;  %v10423_v6 = vmul.f32 %v6435_v40, %v6434_v38  ;;  %v6477_v38 = vld [vmem:[%s13896_s1 + $0x928] sm:$0xff]  ;;  %v6479_v40 = vld [vmem:[%s13895_s0 + $0x930] sm:$0xff] }
  0xfa   :  { %6334 = vst [vmem:[%s13897_s2 + $0x7a8] sm:$0xff] %v10015_v10  ;;  %v10435_v10 = vmul.f32 %v6438_v44, %v6437_v43  ;;  %v6480_v43 = vld [vmem:[%s13896_s1 + $0x930] sm:$0xff]  ;;  %v6482_v44 = vld [vmem:[%s13895_s0 + $0x938] sm:$0xff] }
  0xfb   :  { %6337 = vst [vmem:[%s13897_s2 + $0x7b0] sm:$0xff] %v10027_v29  ;;  %v10447_v29 = vmul.f32 %v6441_v48, %v6440_v45  ;;  %v6483_v45 = vld [vmem:[%s13896_s1 + $0x938] sm:$0xff]  ;;  %v6485_v48 = vld [vmem:[%s13895_s0 + $0x940] sm:$0xff] }
  0xfc   :  { %6340 = vst [vmem:[%s13897_s2 + $0x7b8] sm:$0xff] %v10039_v14  ;;  %v10459_v14 = vmul.f32 %v6444_v54, %v6443_v53  ;;  %v6486_v53 = vld [vmem:[%s13896_s1 + $0x940] sm:$0xff]  ;;  %v6488_v54 = vld [vmem:[%s13895_s0 + $0x948] sm:$0xff] }
  0xfd   :  { %6343 = vst [vmem:[%s13897_s2 + $0x7c0] sm:$0xff] %v10051_v15  ;;  %v10471_v15 = vmul.f32 %v6447_v57, %v6446_v55  ;;  %v6489_v55 = vld [vmem:[%s13896_s1 + $0x948] sm:$0xff]  ;;  %v6491_v57 = vld [vmem:[%s13895_s0 + $0x950] sm:$0xff] }
  0xfe   :  { %6346 = vst [vmem:[%s13897_s2 + $0x7c8] sm:$0xff] %v10063_v39  ;;  %v10483_v39 = vmul.f32 %v6450_v0, %v6449_v58  ;;  %v6492_v58 = vld [vmem:[%s13896_s1 + $0x950] sm:$0xff]  ;;  %v6494_v0 = vld [vmem:[%s13895_s0 + $0x958] sm:$0xff] }
  0xff   :  { %6349 = vst [vmem:[%s13897_s2 + $0x7d0] sm:$0xff] %v10075_v19  ;;  %v10495_v19 = vmul.f32 %v6453_v3, %v6452_v2  ;;  %v6495_v2 = vld [vmem:[%s13896_s1 + $0x958] sm:$0xff]  ;;  %v6497_v3 = vld [vmem:[%s13895_s0 + $0x960] sm:$0xff] }
 0x100   :  { %6352 = vst [vmem:[%s13897_s2 + $0x7d8] sm:$0xff] %v10087_v23  ;;  %v10507_v23 = vmul.f32 %v6456_v7, %v6455_v4  ;;  %v6498_v4 = vld [vmem:[%s13896_s1 + $0x960] sm:$0xff]  ;;  %v6500_v7 = vld [vmem:[%s13895_s0 + $0x968] sm:$0xff] }
 0x101   :  { %6355 = vst [vmem:[%s13897_s2 + $0x7e0] sm:$0xff] %v10099_v49  ;;  %v10519_v49 = vmul.f32 %v6459_v13, %v6458_v9  ;;  %v6501_v9 = vld [vmem:[%s13896_s1 + $0x968] sm:$0xff]  ;;  %v6503_v13 = vld [vmem:[%s13895_s0 + $0x970] sm:$0xff] }
 0x102   :  { %6358 = vst [vmem:[%s13897_s2 + $0x7e8] sm:$0xff] %v10111_v24  ;;  %v10531_v24 = vmul.f32 %v6462_v17, %v6461_v16  ;;  %v6504_v16 = vld [vmem:[%s13896_s1 + $0x970] sm:$0xff]  ;;  %v6506_v17 = vld [vmem:[%s13895_s0 + $0x978] sm:$0xff] }
 0x103   :  { %6361 = vst [vmem:[%s13897_s2 + $0x7f0] sm:$0xff] %v10123_v28  ;;  %v10543_v28 = vmul.f32 %v6465_v21, %v6464_v20  ;;  %v6507_v20 = vld [vmem:[%s13896_s1 + $0x978] sm:$0xff]  ;;  %v6509_v21 = vld [vmem:[%s13895_s0 + $0x980] sm:$0xff] }
 0x104   :  { %6364 = vst [vmem:[%s13897_s2 + $0x7f8] sm:$0xff] %v10135_v63  ;;  %v10555_v63 = vmul.f32 %v6468_v26, %v6467_v25  ;;  %v6510_v25 = vld [vmem:[%s13896_s1 + $0x980] sm:$0xff]  ;;  %v6512_v26 = vld [vmem:[%s13895_s0 + $0x988] sm:$0xff] }
 0x105   :  { %6367 = vst [vmem:[%s13897_s2 + $0x800] sm:$0xff] %v10147_v32  ;;  %v10567_v32 = vmul.f32 %v6471_v30, %v6470_v27  ;;  %v6513_v27 = vld [vmem:[%s13896_s1 + $0x988] sm:$0xff]  ;;  %v6515_v30 = vld [vmem:[%s13895_s0 + $0x990] sm:$0xff] }
 0x106   :  { %6370 = vst [vmem:[%s13897_s2 + $0x808] sm:$0xff] %v10159_v33  ;;  %v10579_v33 = vmul.f32 %v6474_v34, %v6473_v31  ;;  %v6516_v31 = vld [vmem:[%s13896_s1 + $0x990] sm:$0xff]  ;;  %v6518_v34 = vld [vmem:[%s13895_s0 + $0x998] sm:$0xff] }
 0x107   :  { %6373 = vst [vmem:[%s13897_s2 + $0x810] sm:$0xff] %v10171_v11  ;;  %v10591_v11 = vmul.f32 %v6477_v38, %v6476_v36  ;;  %v6519_v36 = vld [vmem:[%s13896_s1 + $0x998] sm:$0xff]  ;;  %v6521_v38 = vld [vmem:[%s13895_s0 + $0x9a0] sm:$0xff] }
 0x108   :  { %6376 = vst [vmem:[%s13897_s2 + $0x818] sm:$0xff] %v10183_v37  ;;  %v10603_v37 = vmul.f32 %v6480_v43, %v6479_v40  ;;  %v6522_v40 = vld [vmem:[%s13896_s1 + $0x9a0] sm:$0xff]  ;;  %v6524_v43 = vld [vmem:[%s13895_s0 + $0x9a8] sm:$0xff] }
 0x109   :  { %6379 = vst [vmem:[%s13897_s2 + $0x820] sm:$0xff] %v10195_v41  ;;  %v10615_v41 = vmul.f32 %v6483_v45, %v6482_v44  ;;  %v6525_v44 = vld [vmem:[%s13896_s1 + $0x9a8] sm:$0xff]  ;;  %v6527_v45 = vld [vmem:[%s13895_s0 + $0x9b0] sm:$0xff] }
 0x10a   :  { %6382 = vst [vmem:[%s13897_s2 + $0x828] sm:$0xff] %v10207_v22  ;;  %v10627_v22 = vmul.f32 %v6486_v53, %v6485_v48  ;;  %v6528_v48 = vld [vmem:[%s13896_s1 + $0x9b0] sm:$0xff]  ;;  %v6530_v53 = vld [vmem:[%s13895_s0 + $0x9b8] sm:$0xff] }
 0x10b   :  { %6385 = vst [vmem:[%s13897_s2 + $0x830] sm:$0xff] %v10219_v42  ;;  %v10639_v42 = vmul.f32 %v6489_v55, %v6488_v54  ;;  %v6531_v54 = vld [vmem:[%s13896_s1 + $0x9b8] sm:$0xff]  ;;  %v6533_v55 = vld [vmem:[%s13895_s0 + $0x9c0] sm:$0xff] }
 0x10c   :  { %6388 = vst [vmem:[%s13897_s2 + $0x838] sm:$0xff] %v10231_v46  ;;  %v10651_v46 = vmul.f32 %v6492_v58, %v6491_v57  ;;  %v6534_v57 = vld [vmem:[%s13896_s1 + $0x9c0] sm:$0xff]  ;;  %v6536_v58 = vld [vmem:[%s13895_s0 + $0x9c8] sm:$0xff] }
 0x10d   :  { %6391 = vst [vmem:[%s13897_s2 + $0x840] sm:$0xff] %v10243_v35  ;;  %v10663_v35 = vmul.f32 %v6495_v2, %v6494_v0  ;;  %v6537_v0 = vld [vmem:[%s13896_s1 + $0x9c8] sm:$0xff]  ;;  %v6539_v2 = vld [vmem:[%s13895_s0 + $0x9d0] sm:$0xff] }
 0x10e   :  { %6394 = vst [vmem:[%s13897_s2 + $0x848] sm:$0xff] %v10255_v50  ;;  %v10675_v50 = vmul.f32 %v6498_v4, %v6497_v3  ;;  %v6540_v3 = vld [vmem:[%s13896_s1 + $0x9d0] sm:$0xff]  ;;  %v6542_v4 = vld [vmem:[%s13895_s0 + $0x9d8] sm:$0xff] }
 0x10f   :  { %6397 = vst [vmem:[%s13897_s2 + $0x850] sm:$0xff] %v10267_v51  ;;  %v10687_v51 = vmul.f32 %v6501_v9, %v6500_v7  ;;  %v6543_v7 = vld [vmem:[%s13896_s1 + $0x9d8] sm:$0xff]  ;;  %v6545_v9 = vld [vmem:[%s13895_s0 + $0x9e0] sm:$0xff] }
 0x110   :  { %6400 = vst [vmem:[%s13897_s2 + $0x858] sm:$0xff] %v10279_v47  ;;  %v10699_v47 = vmul.f32 %v6504_v16, %v6503_v13  ;;  %v6546_v13 = vld [vmem:[%s13896_s1 + $0x9e0] sm:$0xff]  ;;  %v6548_v16 = vld [vmem:[%s13895_s0 + $0x9e8] sm:$0xff] }
 0x111   :  { %6403 = vst [vmem:[%s13897_s2 + $0x860] sm:$0xff] %v10291_v52  ;;  %v10711_v52 = vmul.f32 %v6507_v20, %v6506_v17  ;;  %v6549_v17 = vld [vmem:[%s13896_s1 + $0x9e8] sm:$0xff]  ;;  %v6551_v20 = vld [vmem:[%s13895_s0 + $0x9f0] sm:$0xff] }
 0x112   :  { %6406 = vst [vmem:[%s13897_s2 + $0x868] sm:$0xff] %v10303_v56  ;;  %v10723_v56 = vmul.f32 %v6510_v25, %v6509_v21  ;;  %v6552_v21 = vld [vmem:[%s13896_s1 + $0x9f0] sm:$0xff]  ;;  %v6554_v25 = vld [vmem:[%s13895_s0 + $0x9f8] sm:$0xff] }
 0x113   :  { %6409 = vst [vmem:[%s13897_s2 + $0x870] sm:$0xff] %v10315_v59  ;;  %v10735_v59 = vmul.f32 %v6513_v27, %v6512_v26  ;;  %v6555_v26 = vld [vmem:[%s13896_s1 + $0x9f8] sm:$0xff]  ;;  %v6557_v27 = vld [vmem:[%s13895_s0 + $0xa00] sm:$0xff] }
 0x114   :  { %6412 = vst [vmem:[%s13897_s2 + $0x878] sm:$0xff] %v10327_v62  ;;  %v10747_v62 = vmul.f32 %v6516_v31, %v6515_v30  ;;  %v6558_v30 = vld [vmem:[%s13896_s1 + $0xa00] sm:$0xff]  ;;  %v6560_v31 = vld [vmem:[%s13895_s0 + $0xa08] sm:$0xff] }
 0x115   :  { %6415 = vst [vmem:[%s13897_s2 + $0x880] sm:$0xff] %v10339_v60  ;;  %v10759_v60 = vmul.f32 %v6519_v36, %v6518_v34  ;;  %v6561_v34 = vld [vmem:[%s13896_s1 + $0xa08] sm:$0xff]  ;;  %v6563_v36 = vld [vmem:[%s13895_s0 + $0xa10] sm:$0xff] }
 0x116   :  { %6418 = vst [vmem:[%s13897_s2 + $0x888] sm:$0xff] %v10351_v12  ;;  %v10771_v12 = vmul.f32 %v6522_v40, %v6521_v38  ;;  %v6564_v38 = vld [vmem:[%s13896_s1 + $0xa10] sm:$0xff]  ;;  %v6566_v40 = vld [vmem:[%s13895_s0 + $0xa18] sm:$0xff] }
 0x117   :  { %6421 = vst [vmem:[%s13897_s2 + $0x890] sm:$0xff] %v10363_v61  ;;  %v10783_v61 = vmul.f32 %v6525_v44, %v6524_v43  ;;  %v6567_v43 = vld [vmem:[%s13896_s1 + $0xa18] sm:$0xff]  ;;  %v6569_v44 = vld [vmem:[%s13895_s0 + $0xa20] sm:$0xff] }
 0x118   :  { %6424 = vst [vmem:[%s13897_s2 + $0x898] sm:$0xff] %v10375_v8  ;;  %v10795_v8 = vmul.f32 %v6528_v48, %v6527_v45  ;;  %v6570_v45 = vld [vmem:[%s13896_s1 + $0xa20] sm:$0xff]  ;;  %v6572_v48 = vld [vmem:[%s13895_s0 + $0xa28] sm:$0xff] }
 0x119   :  { %6427 = vst [vmem:[%s13897_s2 + $0x8a0] sm:$0xff] %v10387_v1  ;;  %v10807_v1 = vmul.f32 %v6531_v54, %v6530_v53  ;;  %v6573_v53 = vld [vmem:[%s13896_s1 + $0xa28] sm:$0xff]  ;;  %v6575_v54 = vld [vmem:[%s13895_s0 + $0xa30] sm:$0xff] }
 0x11a   :  { %6430 = vst [vmem:[%s13897_s2 + $0x8a8] sm:$0xff] %v10399_v5  ;;  %v10819_v5 = vmul.f32 %v6534_v57, %v6533_v55  ;;  %v6576_v55 = vld [vmem:[%s13896_s1 + $0xa30] sm:$0xff]  ;;  %v6578_v57 = vld [vmem:[%s13895_s0 + $0xa38] sm:$0xff] }
 0x11b   :  { %6433 = vst [vmem:[%s13897_s2 + $0x8b0] sm:$0xff] %v10411_v18  ;;  %v10831_v18 = vmul.f32 %v6537_v0, %v6536_v58  ;;  %v6579_v58 = vld [vmem:[%s13896_s1 + $0xa38] sm:$0xff]  ;;  %v6581_v0 = vld [vmem:[%s13895_s0 + $0xa40] sm:$0xff] }
 0x11c   :  { %6436 = vst [vmem:[%s13897_s2 + $0x8b8] sm:$0xff] %v10423_v6  ;;  %v10843_v6 = vmul.f32 %v6540_v3, %v6539_v2  ;;  %v6582_v2 = vld [vmem:[%s13896_s1 + $0xa40] sm:$0xff]  ;;  %v6584_v3 = vld [vmem:[%s13895_s0 + $0xa48] sm:$0xff] }
 0x11d   :  { %6439 = vst [vmem:[%s13897_s2 + $0x8c0] sm:$0xff] %v10435_v10  ;;  %v10855_v10 = vmul.f32 %v6543_v7, %v6542_v4  ;;  %v6585_v4 = vld [vmem:[%s13896_s1 + $0xa48] sm:$0xff]  ;;  %v6587_v7 = vld [vmem:[%s13895_s0 + $0xa50] sm:$0xff] }
 0x11e   :  { %6442 = vst [vmem:[%s13897_s2 + $0x8c8] sm:$0xff] %v10447_v29  ;;  %v10867_v29 = vmul.f32 %v6546_v13, %v6545_v9  ;;  %v6588_v9 = vld [vmem:[%s13896_s1 + $0xa50] sm:$0xff]  ;;  %v6590_v13 = vld [vmem:[%s13895_s0 + $0xa58] sm:$0xff] }
 0x11f   :  { %6445 = vst [vmem:[%s13897_s2 + $0x8d0] sm:$0xff] %v10459_v14  ;;  %v10879_v14 = vmul.f32 %v6549_v17, %v6548_v16  ;;  %v6591_v16 = vld [vmem:[%s13896_s1 + $0xa58] sm:$0xff]  ;;  %v6593_v17 = vld [vmem:[%s13895_s0 + $0xa60] sm:$0xff] }
 0x120   :  { %6448 = vst [vmem:[%s13897_s2 + $0x8d8] sm:$0xff] %v10471_v15  ;;  %v10891_v15 = vmul.f32 %v6552_v21, %v6551_v20  ;;  %v6594_v20 = vld [vmem:[%s13896_s1 + $0xa60] sm:$0xff]  ;;  %v6596_v21 = vld [vmem:[%s13895_s0 + $0xa68] sm:$0xff] }
 0x121   :  { %6451 = vst [vmem:[%s13897_s2 + $0x8e0] sm:$0xff] %v10483_v39  ;;  %v10903_v39 = vmul.f32 %v6555_v26, %v6554_v25  ;;  %v6597_v25 = vld [vmem:[%s13896_s1 + $0xa68] sm:$0xff]  ;;  %v6599_v26 = vld [vmem:[%s13895_s0 + $0xa70] sm:$0xff] }
 0x122   :  { %6454 = vst [vmem:[%s13897_s2 + $0x8e8] sm:$0xff] %v10495_v19  ;;  %v10915_v19 = vmul.f32 %v6558_v30, %v6557_v27  ;;  %v6600_v27 = vld [vmem:[%s13896_s1 + $0xa70] sm:$0xff]  ;;  %v6602_v30 = vld [vmem:[%s13895_s0 + $0xa78] sm:$0xff] }
 0x123   :  { %6457 = vst [vmem:[%s13897_s2 + $0x8f0] sm:$0xff] %v10507_v23  ;;  %v10927_v23 = vmul.f32 %v6561_v34, %v6560_v31  ;;  %v6603_v31 = vld [vmem:[%s13896_s1 + $0xa78] sm:$0xff]  ;;  %v6605_v34 = vld [vmem:[%s13895_s0 + $0xa80] sm:$0xff] }
 0x124   :  { %6460 = vst [vmem:[%s13897_s2 + $0x8f8] sm:$0xff] %v10519_v49  ;;  %v10939_v49 = vmul.f32 %v6564_v38, %v6563_v36  ;;  %v6606_v36 = vld [vmem:[%s13896_s1 + $0xa80] sm:$0xff]  ;;  %v6608_v38 = vld [vmem:[%s13895_s0 + $0xa88] sm:$0xff] }
 0x125   :  { %6463 = vst [vmem:[%s13897_s2 + $0x900] sm:$0xff] %v10531_v24  ;;  %v10951_v24 = vmul.f32 %v6567_v43, %v6566_v40  ;;  %v6609_v40 = vld [vmem:[%s13896_s1 + $0xa88] sm:$0xff]  ;;  %v6611_v43 = vld [vmem:[%s13895_s0 + $0xa90] sm:$0xff] }
 0x126   :  { %6466 = vst [vmem:[%s13897_s2 + $0x908] sm:$0xff] %v10543_v28  ;;  %v10963_v28 = vmul.f32 %v6570_v45, %v6569_v44  ;;  %v6612_v44 = vld [vmem:[%s13896_s1 + $0xa90] sm:$0xff]  ;;  %v6614_v45 = vld [vmem:[%s13895_s0 + $0xa98] sm:$0xff] }
 0x127   :  { %6469 = vst [vmem:[%s13897_s2 + $0x910] sm:$0xff] %v10555_v63  ;;  %v10975_v63 = vmul.f32 %v6573_v53, %v6572_v48  ;;  %v6615_v48 = vld [vmem:[%s13896_s1 + $0xa98] sm:$0xff]  ;;  %v6617_v53 = vld [vmem:[%s13895_s0 + $0xaa0] sm:$0xff] }
 0x128   :  { %6472 = vst [vmem:[%s13897_s2 + $0x918] sm:$0xff] %v10567_v32  ;;  %v10987_v32 = vmul.f32 %v6576_v55, %v6575_v54  ;;  %v6618_v54 = vld [vmem:[%s13896_s1 + $0xaa0] sm:$0xff]  ;;  %v6620_v55 = vld [vmem:[%s13895_s0 + $0xaa8] sm:$0xff] }
 0x129   :  { %6475 = vst [vmem:[%s13897_s2 + $0x920] sm:$0xff] %v10579_v33  ;;  %v10999_v33 = vmul.f32 %v6579_v58, %v6578_v57  ;;  %v6621_v57 = vld [vmem:[%s13896_s1 + $0xaa8] sm:$0xff]  ;;  %v6623_v58 = vld [vmem:[%s13895_s0 + $0xab0] sm:$0xff] }
 0x12a   :  { %6478 = vst [vmem:[%s13897_s2 + $0x928] sm:$0xff] %v10591_v11  ;;  %v11011_v11 = vmul.f32 %v6582_v2, %v6581_v0  ;;  %v6624_v0 = vld [vmem:[%s13896_s1 + $0xab0] sm:$0xff]  ;;  %v6626_v2 = vld [vmem:[%s13895_s0 + $0xab8] sm:$0xff] }
 0x12b   :  { %6481 = vst [vmem:[%s13897_s2 + $0x930] sm:$0xff] %v10603_v37  ;;  %v11023_v37 = vmul.f32 %v6585_v4, %v6584_v3  ;;  %v6627_v3 = vld [vmem:[%s13896_s1 + $0xab8] sm:$0xff]  ;;  %v6629_v4 = vld [vmem:[%s13895_s0 + $0xac0] sm:$0xff] }
 0x12c   :  { %6484 = vst [vmem:[%s13897_s2 + $0x938] sm:$0xff] %v10615_v41  ;;  %v11035_v41 = vmul.f32 %v6588_v9, %v6587_v7  ;;  %v6630_v7 = vld [vmem:[%s13896_s1 + $0xac0] sm:$0xff]  ;;  %v6632_v9 = vld [vmem:[%s13895_s0 + $0xac8] sm:$0xff] }
 0x12d   :  { %6487 = vst [vmem:[%s13897_s2 + $0x940] sm:$0xff] %v10627_v22  ;;  %v11047_v22 = vmul.f32 %v6591_v16, %v6590_v13  ;;  %v6633_v13 = vld [vmem:[%s13896_s1 + $0xac8] sm:$0xff]  ;;  %v6635_v16 = vld [vmem:[%s13895_s0 + $0xad0] sm:$0xff] }
 0x12e   :  { %6490 = vst [vmem:[%s13897_s2 + $0x948] sm:$0xff] %v10639_v42  ;;  %v11059_v42 = vmul.f32 %v6594_v20, %v6593_v17  ;;  %v6636_v17 = vld [vmem:[%s13896_s1 + $0xad0] sm:$0xff]  ;;  %v6638_v20 = vld [vmem:[%s13895_s0 + $0xad8] sm:$0xff] }
 0x12f   :  { %6493 = vst [vmem:[%s13897_s2 + $0x950] sm:$0xff] %v10651_v46  ;;  %v11071_v46 = vmul.f32 %v6597_v25, %v6596_v21  ;;  %v6639_v21 = vld [vmem:[%s13896_s1 + $0xad8] sm:$0xff]  ;;  %v6641_v25 = vld [vmem:[%s13895_s0 + $0xae0] sm:$0xff] }
 0x130   :  { %6496 = vst [vmem:[%s13897_s2 + $0x958] sm:$0xff] %v10663_v35  ;;  %v11083_v35 = vmul.f32 %v6600_v27, %v6599_v26  ;;  %v6642_v26 = vld [vmem:[%s13896_s1 + $0xae0] sm:$0xff]  ;;  %v6644_v27 = vld [vmem:[%s13895_s0 + $0xae8] sm:$0xff] }
 0x131   :  { %6499 = vst [vmem:[%s13897_s2 + $0x960] sm:$0xff] %v10675_v50  ;;  %v11095_v50 = vmul.f32 %v6603_v31, %v6602_v30  ;;  %v6645_v30 = vld [vmem:[%s13896_s1 + $0xae8] sm:$0xff]  ;;  %v6647_v31 = vld [vmem:[%s13895_s0 + $0xaf0] sm:$0xff] }
 0x132   :  { %6502 = vst [vmem:[%s13897_s2 + $0x968] sm:$0xff] %v10687_v51  ;;  %v11107_v51 = vmul.f32 %v6606_v36, %v6605_v34  ;;  %v6648_v34 = vld [vmem:[%s13896_s1 + $0xaf0] sm:$0xff]  ;;  %v6650_v36 = vld [vmem:[%s13895_s0 + $0xaf8] sm:$0xff] }
 0x133   :  { %6505 = vst [vmem:[%s13897_s2 + $0x970] sm:$0xff] %v10699_v47  ;;  %v11119_v47 = vmul.f32 %v6609_v40, %v6608_v38  ;;  %v6651_v38 = vld [vmem:[%s13896_s1 + $0xaf8] sm:$0xff]  ;;  %v6653_v40 = vld [vmem:[%s13895_s0 + $0xb00] sm:$0xff] }
 0x134   :  { %6508 = vst [vmem:[%s13897_s2 + $0x978] sm:$0xff] %v10711_v52  ;;  %v11131_v52 = vmul.f32 %v6612_v44, %v6611_v43  ;;  %v6654_v43 = vld [vmem:[%s13896_s1 + $0xb00] sm:$0xff]  ;;  %v6656_v44 = vld [vmem:[%s13895_s0 + $0xb08] sm:$0xff] }
 0x135   :  { %6511 = vst [vmem:[%s13897_s2 + $0x980] sm:$0xff] %v10723_v56  ;;  %v11143_v56 = vmul.f32 %v6615_v48, %v6614_v45  ;;  %v6657_v45 = vld [vmem:[%s13896_s1 + $0xb08] sm:$0xff]  ;;  %v6659_v48 = vld [vmem:[%s13895_s0 + $0xb10] sm:$0xff] }
 0x136   :  { %6514 = vst [vmem:[%s13897_s2 + $0x988] sm:$0xff] %v10735_v59  ;;  %v11155_v59 = vmul.f32 %v6618_v54, %v6617_v53  ;;  %v6660_v53 = vld [vmem:[%s13896_s1 + $0xb10] sm:$0xff]  ;;  %v6662_v54 = vld [vmem:[%s13895_s0 + $0xb18] sm:$0xff] }
 0x137   :  { %6517 = vst [vmem:[%s13897_s2 + $0x990] sm:$0xff] %v10747_v62  ;;  %v11167_v62 = vmul.f32 %v6621_v57, %v6620_v55  ;;  %v6663_v55 = vld [vmem:[%s13896_s1 + $0xb18] sm:$0xff]  ;;  %v6665_v57 = vld [vmem:[%s13895_s0 + $0xb20] sm:$0xff] }
 0x138   :  { %6520 = vst [vmem:[%s13897_s2 + $0x998] sm:$0xff] %v10759_v60  ;;  %v11179_v60 = vmul.f32 %v6624_v0, %v6623_v58  ;;  %v6666_v58 = vld [vmem:[%s13896_s1 + $0xb20] sm:$0xff]  ;;  %v6668_v0 = vld [vmem:[%s13895_s0 + $0xb28] sm:$0xff] }
 0x139   :  { %6523 = vst [vmem:[%s13897_s2 + $0x9a0] sm:$0xff] %v10771_v12  ;;  %v11191_v12 = vmul.f32 %v6627_v3, %v6626_v2  ;;  %v6669_v2 = vld [vmem:[%s13896_s1 + $0xb28] sm:$0xff]  ;;  %v6671_v3 = vld [vmem:[%s13895_s0 + $0xb30] sm:$0xff] }
 0x13a   :  { %6526 = vst [vmem:[%s13897_s2 + $0x9a8] sm:$0xff] %v10783_v61  ;;  %v11203_v61 = vmul.f32 %v6630_v7, %v6629_v4  ;;  %v6672_v4 = vld [vmem:[%s13896_s1 + $0xb30] sm:$0xff]  ;;  %v6674_v7 = vld [vmem:[%s13895_s0 + $0xb38] sm:$0xff] }
 0x13b   :  { %6529 = vst [vmem:[%s13897_s2 + $0x9b0] sm:$0xff] %v10795_v8  ;;  %v11215_v8 = vmul.f32 %v6633_v13, %v6632_v9  ;;  %v6675_v9 = vld [vmem:[%s13896_s1 + $0xb38] sm:$0xff]  ;;  %v6677_v13 = vld [vmem:[%s13895_s0 + $0xb40] sm:$0xff] }
 0x13c   :  { %6532 = vst [vmem:[%s13897_s2 + $0x9b8] sm:$0xff] %v10807_v1  ;;  %v11227_v1 = vmul.f32 %v6636_v17, %v6635_v16  ;;  %v6678_v16 = vld [vmem:[%s13896_s1 + $0xb40] sm:$0xff]  ;;  %v6680_v17 = vld [vmem:[%s13895_s0 + $0xb48] sm:$0xff] }
 0x13d   :  { %6535 = vst [vmem:[%s13897_s2 + $0x9c0] sm:$0xff] %v10819_v5  ;;  %v11239_v5 = vmul.f32 %v6639_v21, %v6638_v20  ;;  %v6681_v20 = vld [vmem:[%s13896_s1 + $0xb48] sm:$0xff]  ;;  %v6683_v21 = vld [vmem:[%s13895_s0 + $0xb50] sm:$0xff] }
 0x13e   :  { %6538 = vst [vmem:[%s13897_s2 + $0x9c8] sm:$0xff] %v10831_v18  ;;  %v11251_v18 = vmul.f32 %v6642_v26, %v6641_v25  ;;  %v6684_v25 = vld [vmem:[%s13896_s1 + $0xb50] sm:$0xff]  ;;  %v6686_v26 = vld [vmem:[%s13895_s0 + $0xb58] sm:$0xff] }
 0x13f   :  { %6541 = vst [vmem:[%s13897_s2 + $0x9d0] sm:$0xff] %v10843_v6  ;;  %v11263_v6 = vmul.f32 %v6645_v30, %v6644_v27  ;;  %v6687_v27 = vld [vmem:[%s13896_s1 + $0xb58] sm:$0xff]  ;;  %v6689_v30 = vld [vmem:[%s13895_s0 + $0xb60] sm:$0xff] }
 0x140   :  { %6544 = vst [vmem:[%s13897_s2 + $0x9d8] sm:$0xff] %v10855_v10  ;;  %v11275_v10 = vmul.f32 %v6648_v34, %v6647_v31  ;;  %v6690_v31 = vld [vmem:[%s13896_s1 + $0xb60] sm:$0xff]  ;;  %v6692_v34 = vld [vmem:[%s13895_s0 + $0xb68] sm:$0xff] }
 0x141   :  { %6547 = vst [vmem:[%s13897_s2 + $0x9e0] sm:$0xff] %v10867_v29  ;;  %v11287_v29 = vmul.f32 %v6651_v38, %v6650_v36  ;;  %v6693_v36 = vld [vmem:[%s13896_s1 + $0xb68] sm:$0xff]  ;;  %v6695_v38 = vld [vmem:[%s13895_s0 + $0xb70] sm:$0xff] }
 0x142   :  { %6550 = vst [vmem:[%s13897_s2 + $0x9e8] sm:$0xff] %v10879_v14  ;;  %v11299_v14 = vmul.f32 %v6654_v43, %v6653_v40  ;;  %v6696_v40 = vld [vmem:[%s13896_s1 + $0xb70] sm:$0xff]  ;;  %v6698_v43 = vld [vmem:[%s13895_s0 + $0xb78] sm:$0xff] }
 0x143   :  { %6553 = vst [vmem:[%s13897_s2 + $0x9f0] sm:$0xff] %v10891_v15  ;;  %v11311_v15 = vmul.f32 %v6657_v45, %v6656_v44  ;;  %v6699_v44 = vld [vmem:[%s13896_s1 + $0xb78] sm:$0xff]  ;;  %v6701_v45 = vld [vmem:[%s13895_s0 + $0xb80] sm:$0xff] }
 0x144   :  { %6556 = vst [vmem:[%s13897_s2 + $0x9f8] sm:$0xff] %v10903_v39  ;;  %v11323_v39 = vmul.f32 %v6660_v53, %v6659_v48  ;;  %v6702_v48 = vld [vmem:[%s13896_s1 + $0xb80] sm:$0xff]  ;;  %v6704_v53 = vld [vmem:[%s13895_s0 + $0xb88] sm:$0xff] }
 0x145   :  { %6559 = vst [vmem:[%s13897_s2 + $0xa00] sm:$0xff] %v10915_v19  ;;  %v11335_v19 = vmul.f32 %v6663_v55, %v6662_v54  ;;  %v6705_v54 = vld [vmem:[%s13896_s1 + $0xb88] sm:$0xff]  ;;  %v6707_v55 = vld [vmem:[%s13895_s0 + $0xb90] sm:$0xff] }
 0x146   :  { %6562 = vst [vmem:[%s13897_s2 + $0xa08] sm:$0xff] %v10927_v23  ;;  %v11347_v23 = vmul.f32 %v6666_v58, %v6665_v57  ;;  %v6708_v57 = vld [vmem:[%s13896_s1 + $0xb90] sm:$0xff]  ;;  %v6710_v58 = vld [vmem:[%s13895_s0 + $0xb98] sm:$0xff] }
 0x147   :  { %6565 = vst [vmem:[%s13897_s2 + $0xa10] sm:$0xff] %v10939_v49  ;;  %v11359_v49 = vmul.f32 %v6669_v2, %v6668_v0  ;;  %v6711_v0 = vld [vmem:[%s13896_s1 + $0xb98] sm:$0xff]  ;;  %v6713_v2 = vld [vmem:[%s13895_s0 + $0xba0] sm:$0xff] }
 0x148   :  { %6568 = vst [vmem:[%s13897_s2 + $0xa18] sm:$0xff] %v10951_v24  ;;  %v11371_v24 = vmul.f32 %v6672_v4, %v6671_v3  ;;  %v6714_v3 = vld [vmem:[%s13896_s1 + $0xba0] sm:$0xff]  ;;  %v6716_v4 = vld [vmem:[%s13895_s0 + $0xba8] sm:$0xff] }
 0x149   :  { %6571 = vst [vmem:[%s13897_s2 + $0xa20] sm:$0xff] %v10963_v28  ;;  %v11383_v28 = vmul.f32 %v6675_v9, %v6674_v7  ;;  %v6717_v7 = vld [vmem:[%s13896_s1 + $0xba8] sm:$0xff]  ;;  %v6719_v9 = vld [vmem:[%s13895_s0 + $0xbb0] sm:$0xff] }
 0x14a   :  { %6574 = vst [vmem:[%s13897_s2 + $0xa28] sm:$0xff] %v10975_v63  ;;  %v11395_v63 = vmul.f32 %v6678_v16, %v6677_v13  ;;  %v6720_v13 = vld [vmem:[%s13896_s1 + $0xbb0] sm:$0xff]  ;;  %v6722_v16 = vld [vmem:[%s13895_s0 + $0xbb8] sm:$0xff] }
 0x14b   :  { %6577 = vst [vmem:[%s13897_s2 + $0xa30] sm:$0xff] %v10987_v32  ;;  %v11407_v32 = vmul.f32 %v6681_v20, %v6680_v17  ;;  %v6723_v17 = vld [vmem:[%s13896_s1 + $0xbb8] sm:$0xff]  ;;  %v6725_v20 = vld [vmem:[%s13895_s0 + $0xbc0] sm:$0xff] }
 0x14c   :  { %6580 = vst [vmem:[%s13897_s2 + $0xa38] sm:$0xff] %v10999_v33  ;;  %v11419_v33 = vmul.f32 %v6684_v25, %v6683_v21  ;;  %v6726_v21 = vld [vmem:[%s13896_s1 + $0xbc0] sm:$0xff]  ;;  %v6728_v25 = vld [vmem:[%s13895_s0 + $0xbc8] sm:$0xff] }
 0x14d   :  { %6583 = vst [vmem:[%s13897_s2 + $0xa40] sm:$0xff] %v11011_v11  ;;  %v11431_v11 = vmul.f32 %v6687_v27, %v6686_v26  ;;  %v6729_v26 = vld [vmem:[%s13896_s1 + $0xbc8] sm:$0xff]  ;;  %v6731_v27 = vld [vmem:[%s13895_s0 + $0xbd0] sm:$0xff] }
 0x14e   :  { %6586 = vst [vmem:[%s13897_s2 + $0xa48] sm:$0xff] %v11023_v37  ;;  %v11443_v37 = vmul.f32 %v6690_v31, %v6689_v30  ;;  %v6732_v30 = vld [vmem:[%s13896_s1 + $0xbd0] sm:$0xff]  ;;  %v6734_v31 = vld [vmem:[%s13895_s0 + $0xbd8] sm:$0xff] }
 0x14f   :  { %6589 = vst [vmem:[%s13897_s2 + $0xa50] sm:$0xff] %v11035_v41  ;;  %v11455_v41 = vmul.f32 %v6693_v36, %v6692_v34  ;;  %v6735_v34 = vld [vmem:[%s13896_s1 + $0xbd8] sm:$0xff]  ;;  %v6737_v36 = vld [vmem:[%s13895_s0 + $0xbe0] sm:$0xff] }
 0x150   :  { %6592 = vst [vmem:[%s13897_s2 + $0xa58] sm:$0xff] %v11047_v22  ;;  %v11467_v22 = vmul.f32 %v6696_v40, %v6695_v38  ;;  %v6738_v38 = vld [vmem:[%s13896_s1 + $0xbe0] sm:$0xff]  ;;  %v6740_v40 = vld [vmem:[%s13895_s0 + $0xbe8] sm:$0xff] }
 0x151   :  { %6595 = vst [vmem:[%s13897_s2 + $0xa60] sm:$0xff] %v11059_v42  ;;  %v11479_v42 = vmul.f32 %v6699_v44, %v6698_v43  ;;  %v6741_v43 = vld [vmem:[%s13896_s1 + $0xbe8] sm:$0xff]  ;;  %v6743_v44 = vld [vmem:[%s13895_s0 + $0xbf0] sm:$0xff] }
 0x152   :  { %6598 = vst [vmem:[%s13897_s2 + $0xa68] sm:$0xff] %v11071_v46  ;;  %v11491_v46 = vmul.f32 %v6702_v48, %v6701_v45  ;;  %v6744_v45 = vld [vmem:[%s13896_s1 + $0xbf0] sm:$0xff]  ;;  %v6746_v48 = vld [vmem:[%s13895_s0 + $0xbf8] sm:$0xff] }
 0x153   :  { %6601 = vst [vmem:[%s13897_s2 + $0xa70] sm:$0xff] %v11083_v35  ;;  %v11503_v35 = vmul.f32 %v6705_v54, %v6704_v53  ;;  %v6747_v53 = vld [vmem:[%s13896_s1 + $0xbf8] sm:$0xff]  ;;  %v6749_v54 = vld [vmem:[%s13895_s0 + $0xc00] sm:$0xff] }
 0x154   :  { %6604 = vst [vmem:[%s13897_s2 + $0xa78] sm:$0xff] %v11095_v50  ;;  %v11515_v50 = vmul.f32 %v6708_v57, %v6707_v55  ;;  %v6750_v55 = vld [vmem:[%s13896_s1 + $0xc00] sm:$0xff]  ;;  %v6752_v57 = vld [vmem:[%s13895_s0 + $0xc08] sm:$0xff] }
 0x155   :  { %6607 = vst [vmem:[%s13897_s2 + $0xa80] sm:$0xff] %v11107_v51  ;;  %v11527_v51 = vmul.f32 %v6711_v0, %v6710_v58  ;;  %v6753_v58 = vld [vmem:[%s13896_s1 + $0xc08] sm:$0xff]  ;;  %v6755_v0 = vld [vmem:[%s13895_s0 + $0xc10] sm:$0xff] }
 0x156   :  { %6610 = vst [vmem:[%s13897_s2 + $0xa88] sm:$0xff] %v11119_v47  ;;  %v11539_v47 = vmul.f32 %v6714_v3, %v6713_v2  ;;  %v6756_v2 = vld [vmem:[%s13896_s1 + $0xc10] sm:$0xff]  ;;  %v6758_v3 = vld [vmem:[%s13895_s0 + $0xc18] sm:$0xff] }
 0x157   :  { %6613 = vst [vmem:[%s13897_s2 + $0xa90] sm:$0xff] %v11131_v52  ;;  %v11551_v52 = vmul.f32 %v6717_v7, %v6716_v4  ;;  %v6759_v4 = vld [vmem:[%s13896_s1 + $0xc18] sm:$0xff]  ;;  %v6761_v7 = vld [vmem:[%s13895_s0 + $0xc20] sm:$0xff] }
 0x158   :  { %6616 = vst [vmem:[%s13897_s2 + $0xa98] sm:$0xff] %v11143_v56  ;;  %v11563_v56 = vmul.f32 %v6720_v13, %v6719_v9  ;;  %v6762_v9 = vld [vmem:[%s13896_s1 + $0xc20] sm:$0xff]  ;;  %v6764_v13 = vld [vmem:[%s13895_s0 + $0xc28] sm:$0xff] }
 0x159   :  { %6619 = vst [vmem:[%s13897_s2 + $0xaa0] sm:$0xff] %v11155_v59  ;;  %v11575_v59 = vmul.f32 %v6723_v17, %v6722_v16  ;;  %v6765_v16 = vld [vmem:[%s13896_s1 + $0xc28] sm:$0xff]  ;;  %v6767_v17 = vld [vmem:[%s13895_s0 + $0xc30] sm:$0xff] }
 0x15a   :  { %6622 = vst [vmem:[%s13897_s2 + $0xaa8] sm:$0xff] %v11167_v62  ;;  %v11587_v62 = vmul.f32 %v6726_v21, %v6725_v20  ;;  %v6768_v20 = vld [vmem:[%s13896_s1 + $0xc30] sm:$0xff]  ;;  %v6770_v21 = vld [vmem:[%s13895_s0 + $0xc38] sm:$0xff] }
 0x15b   :  { %6625 = vst [vmem:[%s13897_s2 + $0xab0] sm:$0xff] %v11179_v60  ;;  %v11599_v60 = vmul.f32 %v6729_v26, %v6728_v25  ;;  %v6771_v25 = vld [vmem:[%s13896_s1 + $0xc38] sm:$0xff]  ;;  %v6773_v26 = vld [vmem:[%s13895_s0 + $0xc40] sm:$0xff] }
 0x15c   :  { %6628 = vst [vmem:[%s13897_s2 + $0xab8] sm:$0xff] %v11191_v12  ;;  %v11611_v12 = vmul.f32 %v6732_v30, %v6731_v27  ;;  %v6774_v27 = vld [vmem:[%s13896_s1 + $0xc40] sm:$0xff]  ;;  %v6776_v30 = vld [vmem:[%s13895_s0 + $0xc48] sm:$0xff] }
 0x15d   :  { %6631 = vst [vmem:[%s13897_s2 + $0xac0] sm:$0xff] %v11203_v61  ;;  %v11623_v61 = vmul.f32 %v6735_v34, %v6734_v31  ;;  %v6777_v31 = vld [vmem:[%s13896_s1 + $0xc48] sm:$0xff]  ;;  %v6779_v34 = vld [vmem:[%s13895_s0 + $0xc50] sm:$0xff] }
 0x15e   :  { %6634 = vst [vmem:[%s13897_s2 + $0xac8] sm:$0xff] %v11215_v8  ;;  %v11635_v8 = vmul.f32 %v6738_v38, %v6737_v36  ;;  %v6780_v36 = vld [vmem:[%s13896_s1 + $0xc50] sm:$0xff]  ;;  %v6782_v38 = vld [vmem:[%s13895_s0 + $0xc58] sm:$0xff] }
 0x15f   :  { %6637 = vst [vmem:[%s13897_s2 + $0xad0] sm:$0xff] %v11227_v1  ;;  %v11647_v1 = vmul.f32 %v6741_v43, %v6740_v40  ;;  %v6783_v40 = vld [vmem:[%s13896_s1 + $0xc58] sm:$0xff]  ;;  %v6785_v43 = vld [vmem:[%s13895_s0 + $0xc60] sm:$0xff] }
 0x160   :  { %6640 = vst [vmem:[%s13897_s2 + $0xad8] sm:$0xff] %v11239_v5  ;;  %v11659_v5 = vmul.f32 %v6744_v45, %v6743_v44  ;;  %v6786_v44 = vld [vmem:[%s13896_s1 + $0xc60] sm:$0xff]  ;;  %v6788_v45 = vld [vmem:[%s13895_s0 + $0xc68] sm:$0xff] }
 0x161   :  { %6643 = vst [vmem:[%s13897_s2 + $0xae0] sm:$0xff] %v11251_v18  ;;  %v11671_v18 = vmul.f32 %v6747_v53, %v6746_v48  ;;  %v6789_v48 = vld [vmem:[%s13896_s1 + $0xc68] sm:$0xff]  ;;  %v6791_v53 = vld [vmem:[%s13895_s0 + $0xc70] sm:$0xff] }
 0x162   :  { %6646 = vst [vmem:[%s13897_s2 + $0xae8] sm:$0xff] %v11263_v6  ;;  %v11683_v6 = vmul.f32 %v6750_v55, %v6749_v54  ;;  %v6792_v54 = vld [vmem:[%s13896_s1 + $0xc70] sm:$0xff]  ;;  %v6794_v55 = vld [vmem:[%s13895_s0 + $0xc78] sm:$0xff] }
 0x163   :  { %6649 = vst [vmem:[%s13897_s2 + $0xaf0] sm:$0xff] %v11275_v10  ;;  %v11695_v10 = vmul.f32 %v6753_v58, %v6752_v57  ;;  %v6795_v57 = vld [vmem:[%s13896_s1 + $0xc78] sm:$0xff]  ;;  %v6797_v58 = vld [vmem:[%s13895_s0 + $0xc80] sm:$0xff] }
 0x164   :  { %6652 = vst [vmem:[%s13897_s2 + $0xaf8] sm:$0xff] %v11287_v29  ;;  %v11707_v29 = vmul.f32 %v6756_v2, %v6755_v0  ;;  %v6798_v0 = vld [vmem:[%s13896_s1 + $0xc80] sm:$0xff]  ;;  %v6800_v2 = vld [vmem:[%s13895_s0 + $0xc88] sm:$0xff] }
 0x165   :  { %6655 = vst [vmem:[%s13897_s2 + $0xb00] sm:$0xff] %v11299_v14  ;;  %v11719_v14 = vmul.f32 %v6759_v4, %v6758_v3  ;;  %v6801_v3 = vld [vmem:[%s13896_s1 + $0xc88] sm:$0xff]  ;;  %v6803_v4 = vld [vmem:[%s13895_s0 + $0xc90] sm:$0xff] }
 0x166   :  { %6658 = vst [vmem:[%s13897_s2 + $0xb08] sm:$0xff] %v11311_v15  ;;  %v11731_v15 = vmul.f32 %v6762_v9, %v6761_v7  ;;  %v6804_v7 = vld [vmem:[%s13896_s1 + $0xc90] sm:$0xff]  ;;  %v6806_v9 = vld [vmem:[%s13895_s0 + $0xc98] sm:$0xff] }
 0x167   :  { %6661 = vst [vmem:[%s13897_s2 + $0xb10] sm:$0xff] %v11323_v39  ;;  %v11743_v39 = vmul.f32 %v6765_v16, %v6764_v13  ;;  %v6807_v13 = vld [vmem:[%s13896_s1 + $0xc98] sm:$0xff]  ;;  %v6809_v16 = vld [vmem:[%s13895_s0 + $0xca0] sm:$0xff] }
 0x168   :  { %6664 = vst [vmem:[%s13897_s2 + $0xb18] sm:$0xff] %v11335_v19  ;;  %v11755_v19 = vmul.f32 %v6768_v20, %v6767_v17  ;;  %v6810_v17 = vld [vmem:[%s13896_s1 + $0xca0] sm:$0xff]  ;;  %v6812_v20 = vld [vmem:[%s13895_s0 + $0xca8] sm:$0xff] }
 0x169   :  { %6667 = vst [vmem:[%s13897_s2 + $0xb20] sm:$0xff] %v11347_v23  ;;  %v11767_v23 = vmul.f32 %v6771_v25, %v6770_v21  ;;  %v6813_v21 = vld [vmem:[%s13896_s1 + $0xca8] sm:$0xff]  ;;  %v6815_v25 = vld [vmem:[%s13895_s0 + $0xcb0] sm:$0xff] }
 0x16a   :  { %6670 = vst [vmem:[%s13897_s2 + $0xb28] sm:$0xff] %v11359_v49  ;;  %v11779_v49 = vmul.f32 %v6774_v27, %v6773_v26  ;;  %v6816_v26 = vld [vmem:[%s13896_s1 + $0xcb0] sm:$0xff]  ;;  %v6818_v27 = vld [vmem:[%s13895_s0 + $0xcb8] sm:$0xff] }
 0x16b   :  { %6673 = vst [vmem:[%s13897_s2 + $0xb30] sm:$0xff] %v11371_v24  ;;  %v11791_v24 = vmul.f32 %v6777_v31, %v6776_v30  ;;  %v6819_v30 = vld [vmem:[%s13896_s1 + $0xcb8] sm:$0xff]  ;;  %v6821_v31 = vld [vmem:[%s13895_s0 + $0xcc0] sm:$0xff] }
 0x16c   :  { %6676 = vst [vmem:[%s13897_s2 + $0xb38] sm:$0xff] %v11383_v28  ;;  %v11803_v28 = vmul.f32 %v6780_v36, %v6779_v34  ;;  %v6822_v34 = vld [vmem:[%s13896_s1 + $0xcc0] sm:$0xff]  ;;  %v6824_v36 = vld [vmem:[%s13895_s0 + $0xcc8] sm:$0xff] }
 0x16d   :  { %6679 = vst [vmem:[%s13897_s2 + $0xb40] sm:$0xff] %v11395_v63  ;;  %v11815_v63 = vmul.f32 %v6783_v40, %v6782_v38  ;;  %v6825_v38 = vld [vmem:[%s13896_s1 + $0xcc8] sm:$0xff]  ;;  %v6827_v40 = vld [vmem:[%s13895_s0 + $0xcd0] sm:$0xff] }
 0x16e   :  { %6682 = vst [vmem:[%s13897_s2 + $0xb48] sm:$0xff] %v11407_v32  ;;  %v11827_v32 = vmul.f32 %v6786_v44, %v6785_v43  ;;  %v6828_v43 = vld [vmem:[%s13896_s1 + $0xcd0] sm:$0xff]  ;;  %v6830_v44 = vld [vmem:[%s13895_s0 + $0xcd8] sm:$0xff] }
 0x16f   :  { %6685 = vst [vmem:[%s13897_s2 + $0xb50] sm:$0xff] %v11419_v33  ;;  %v11839_v33 = vmul.f32 %v6789_v48, %v6788_v45  ;;  %v6831_v45 = vld [vmem:[%s13896_s1 + $0xcd8] sm:$0xff]  ;;  %v6833_v48 = vld [vmem:[%s13895_s0 + $0xce0] sm:$0xff] }
 0x170   :  { %6688 = vst [vmem:[%s13897_s2 + $0xb58] sm:$0xff] %v11431_v11  ;;  %v11851_v11 = vmul.f32 %v6792_v54, %v6791_v53  ;;  %v6834_v53 = vld [vmem:[%s13896_s1 + $0xce0] sm:$0xff]  ;;  %v6836_v54 = vld [vmem:[%s13895_s0 + $0xce8] sm:$0xff] }
 0x171   :  { %6691 = vst [vmem:[%s13897_s2 + $0xb60] sm:$0xff] %v11443_v37  ;;  %v11863_v37 = vmul.f32 %v6795_v57, %v6794_v55  ;;  %v6837_v55 = vld [vmem:[%s13896_s1 + $0xce8] sm:$0xff]  ;;  %v6839_v57 = vld [vmem:[%s13895_s0 + $0xcf0] sm:$0xff] }
 0x172   :  { %6694 = vst [vmem:[%s13897_s2 + $0xb68] sm:$0xff] %v11455_v41  ;;  %v11875_v41 = vmul.f32 %v6798_v0, %v6797_v58  ;;  %v6840_v58 = vld [vmem:[%s13896_s1 + $0xcf0] sm:$0xff]  ;;  %v6842_v0 = vld [vmem:[%s13895_s0 + $0xcf8] sm:$0xff] }
 0x173   :  { %6697 = vst [vmem:[%s13897_s2 + $0xb70] sm:$0xff] %v11467_v22  ;;  %v11887_v22 = vmul.f32 %v6801_v3, %v6800_v2  ;;  %v6843_v2 = vld [vmem:[%s13896_s1 + $0xcf8] sm:$0xff]  ;;  %v6845_v3 = vld [vmem:[%s13895_s0 + $0xd00] sm:$0xff] }
 0x174   :  { %6700 = vst [vmem:[%s13897_s2 + $0xb78] sm:$0xff] %v11479_v42  ;;  %v11899_v42 = vmul.f32 %v6804_v7, %v6803_v4  ;;  %v6846_v4 = vld [vmem:[%s13896_s1 + $0xd00] sm:$0xff]  ;;  %v6848_v7 = vld [vmem:[%s13895_s0 + $0xd08] sm:$0xff] }
 0x175   :  { %6703 = vst [vmem:[%s13897_s2 + $0xb80] sm:$0xff] %v11491_v46  ;;  %v11911_v46 = vmul.f32 %v6807_v13, %v6806_v9  ;;  %v6849_v9 = vld [vmem:[%s13896_s1 + $0xd08] sm:$0xff]  ;;  %v6851_v13 = vld [vmem:[%s13895_s0 + $0xd10] sm:$0xff] }
 0x176   :  { %6706 = vst [vmem:[%s13897_s2 + $0xb88] sm:$0xff] %v11503_v35  ;;  %v11923_v35 = vmul.f32 %v6810_v17, %v6809_v16  ;;  %v6852_v16 = vld [vmem:[%s13896_s1 + $0xd10] sm:$0xff]  ;;  %v6854_v17 = vld [vmem:[%s13895_s0 + $0xd18] sm:$0xff] }
 0x177   :  { %6709 = vst [vmem:[%s13897_s2 + $0xb90] sm:$0xff] %v11515_v50  ;;  %v11935_v50 = vmul.f32 %v6813_v21, %v6812_v20  ;;  %v6855_v20 = vld [vmem:[%s13896_s1 + $0xd18] sm:$0xff]  ;;  %v6857_v21 = vld [vmem:[%s13895_s0 + $0xd20] sm:$0xff] }
 0x178   :  { %6712 = vst [vmem:[%s13897_s2 + $0xb98] sm:$0xff] %v11527_v51  ;;  %v11947_v51 = vmul.f32 %v6816_v26, %v6815_v25  ;;  %v6858_v25 = vld [vmem:[%s13896_s1 + $0xd20] sm:$0xff]  ;;  %v6860_v26 = vld [vmem:[%s13895_s0 + $0xd28] sm:$0xff] }
 0x179   :  { %6715 = vst [vmem:[%s13897_s2 + $0xba0] sm:$0xff] %v11539_v47  ;;  %v11959_v47 = vmul.f32 %v6819_v30, %v6818_v27  ;;  %v6861_v27 = vld [vmem:[%s13896_s1 + $0xd28] sm:$0xff]  ;;  %v6863_v30 = vld [vmem:[%s13895_s0 + $0xd30] sm:$0xff] }
 0x17a   :  { %6718 = vst [vmem:[%s13897_s2 + $0xba8] sm:$0xff] %v11551_v52  ;;  %v11971_v52 = vmul.f32 %v6822_v34, %v6821_v31  ;;  %v6864_v31 = vld [vmem:[%s13896_s1 + $0xd30] sm:$0xff]  ;;  %v6866_v34 = vld [vmem:[%s13895_s0 + $0xd38] sm:$0xff] }
 0x17b   :  { %6721 = vst [vmem:[%s13897_s2 + $0xbb0] sm:$0xff] %v11563_v56  ;;  %v11983_v56 = vmul.f32 %v6825_v38, %v6824_v36  ;;  %v6867_v36 = vld [vmem:[%s13896_s1 + $0xd38] sm:$0xff]  ;;  %v6869_v38 = vld [vmem:[%s13895_s0 + $0xd40] sm:$0xff] }
 0x17c   :  { %6724 = vst [vmem:[%s13897_s2 + $0xbb8] sm:$0xff] %v11575_v59  ;;  %v11995_v59 = vmul.f32 %v6828_v43, %v6827_v40  ;;  %v6870_v40 = vld [vmem:[%s13896_s1 + $0xd40] sm:$0xff]  ;;  %v6872_v43 = vld [vmem:[%s13895_s0 + $0xd48] sm:$0xff] }
 0x17d   :  { %6727 = vst [vmem:[%s13897_s2 + $0xbc0] sm:$0xff] %v11587_v62  ;;  %v12007_v62 = vmul.f32 %v6831_v45, %v6830_v44  ;;  %v6873_v44 = vld [vmem:[%s13896_s1 + $0xd48] sm:$0xff]  ;;  %v6875_v45 = vld [vmem:[%s13895_s0 + $0xd50] sm:$0xff] }
 0x17e   :  { %6730 = vst [vmem:[%s13897_s2 + $0xbc8] sm:$0xff] %v11599_v60  ;;  %v12019_v60 = vmul.f32 %v6834_v53, %v6833_v48  ;;  %v6876_v48 = vld [vmem:[%s13896_s1 + $0xd50] sm:$0xff]  ;;  %v6878_v53 = vld [vmem:[%s13895_s0 + $0xd58] sm:$0xff] }
 0x17f   :  { %6733 = vst [vmem:[%s13897_s2 + $0xbd0] sm:$0xff] %v11611_v12  ;;  %v12031_v12 = vmul.f32 %v6837_v55, %v6836_v54  ;;  %v6879_v54 = vld [vmem:[%s13896_s1 + $0xd58] sm:$0xff]  ;;  %v6881_v55 = vld [vmem:[%s13895_s0 + $0xd60] sm:$0xff] }
 0x180   :  { %6736 = vst [vmem:[%s13897_s2 + $0xbd8] sm:$0xff] %v11623_v61  ;;  %v12043_v61 = vmul.f32 %v6840_v58, %v6839_v57  ;;  %v6882_v57 = vld [vmem:[%s13896_s1 + $0xd60] sm:$0xff]  ;;  %v6884_v58 = vld [vmem:[%s13895_s0 + $0xd68] sm:$0xff] }
 0x181   :  { %6739 = vst [vmem:[%s13897_s2 + $0xbe0] sm:$0xff] %v11635_v8  ;;  %v12055_v8 = vmul.f32 %v6843_v2, %v6842_v0  ;;  %v6885_v0 = vld [vmem:[%s13896_s1 + $0xd68] sm:$0xff]  ;;  %v6887_v2 = vld [vmem:[%s13895_s0 + $0xd70] sm:$0xff] }
 0x182   :  { %6742 = vst [vmem:[%s13897_s2 + $0xbe8] sm:$0xff] %v11647_v1  ;;  %v12067_v1 = vmul.f32 %v6846_v4, %v6845_v3  ;;  %v6888_v3 = vld [vmem:[%s13896_s1 + $0xd70] sm:$0xff]  ;;  %v6890_v4 = vld [vmem:[%s13895_s0 + $0xd78] sm:$0xff] }
 0x183   :  { %6745 = vst [vmem:[%s13897_s2 + $0xbf0] sm:$0xff] %v11659_v5  ;;  %v12079_v5 = vmul.f32 %v6849_v9, %v6848_v7  ;;  %v6891_v7 = vld [vmem:[%s13896_s1 + $0xd78] sm:$0xff]  ;;  %v6893_v9 = vld [vmem:[%s13895_s0 + $0xd80] sm:$0xff] }
 0x184   :  { %6748 = vst [vmem:[%s13897_s2 + $0xbf8] sm:$0xff] %v11671_v18  ;;  %v12091_v18 = vmul.f32 %v6852_v16, %v6851_v13  ;;  %v6894_v13 = vld [vmem:[%s13896_s1 + $0xd80] sm:$0xff]  ;;  %v6896_v16 = vld [vmem:[%s13895_s0 + $0xd88] sm:$0xff] }
 0x185   :  { %6751 = vst [vmem:[%s13897_s2 + $0xc00] sm:$0xff] %v11683_v6  ;;  %v12103_v6 = vmul.f32 %v6855_v20, %v6854_v17  ;;  %v6897_v17 = vld [vmem:[%s13896_s1 + $0xd88] sm:$0xff]  ;;  %v6899_v20 = vld [vmem:[%s13895_s0 + $0xd90] sm:$0xff] }
 0x186   :  { %6754 = vst [vmem:[%s13897_s2 + $0xc08] sm:$0xff] %v11695_v10  ;;  %v12115_v10 = vmul.f32 %v6858_v25, %v6857_v21  ;;  %v6900_v21 = vld [vmem:[%s13896_s1 + $0xd90] sm:$0xff]  ;;  %v6902_v25 = vld [vmem:[%s13895_s0 + $0xd98] sm:$0xff] }
 0x187   :  { %6757 = vst [vmem:[%s13897_s2 + $0xc10] sm:$0xff] %v11707_v29  ;;  %v12127_v29 = vmul.f32 %v6861_v27, %v6860_v26  ;;  %v6903_v26 = vld [vmem:[%s13896_s1 + $0xd98] sm:$0xff]  ;;  %v6905_v27 = vld [vmem:[%s13895_s0 + $0xda0] sm:$0xff] }
 0x188   :  { %6760 = vst [vmem:[%s13897_s2 + $0xc18] sm:$0xff] %v11719_v14  ;;  %v12139_v14 = vmul.f32 %v6864_v31, %v6863_v30  ;;  %v6906_v30 = vld [vmem:[%s13896_s1 + $0xda0] sm:$0xff]  ;;  %v6908_v31 = vld [vmem:[%s13895_s0 + $0xda8] sm:$0xff] }
 0x189   :  { %6763 = vst [vmem:[%s13897_s2 + $0xc20] sm:$0xff] %v11731_v15  ;;  %v12151_v15 = vmul.f32 %v6867_v36, %v6866_v34  ;;  %v6909_v34 = vld [vmem:[%s13896_s1 + $0xda8] sm:$0xff]  ;;  %v6911_v36 = vld [vmem:[%s13895_s0 + $0xdb0] sm:$0xff] }
 0x18a   :  { %6766 = vst [vmem:[%s13897_s2 + $0xc28] sm:$0xff] %v11743_v39  ;;  %v12163_v39 = vmul.f32 %v6870_v40, %v6869_v38  ;;  %v6912_v38 = vld [vmem:[%s13896_s1 + $0xdb0] sm:$0xff]  ;;  %v6914_v40 = vld [vmem:[%s13895_s0 + $0xdb8] sm:$0xff] }
 0x18b   :  { %6769 = vst [vmem:[%s13897_s2 + $0xc30] sm:$0xff] %v11755_v19  ;;  %v12175_v19 = vmul.f32 %v6873_v44, %v6872_v43  ;;  %v6915_v43 = vld [vmem:[%s13896_s1 + $0xdb8] sm:$0xff]  ;;  %v6917_v44 = vld [vmem:[%s13895_s0 + $0xdc0] sm:$0xff] }
 0x18c   :  { %6772 = vst [vmem:[%s13897_s2 + $0xc38] sm:$0xff] %v11767_v23  ;;  %v12187_v23 = vmul.f32 %v6876_v48, %v6875_v45  ;;  %v6918_v45 = vld [vmem:[%s13896_s1 + $0xdc0] sm:$0xff]  ;;  %v6920_v48 = vld [vmem:[%s13895_s0 + $0xdc8] sm:$0xff] }
 0x18d   :  { %6775 = vst [vmem:[%s13897_s2 + $0xc40] sm:$0xff] %v11779_v49  ;;  %v12199_v49 = vmul.f32 %v6879_v54, %v6878_v53  ;;  %v6921_v53 = vld [vmem:[%s13896_s1 + $0xdc8] sm:$0xff]  ;;  %v6923_v54 = vld [vmem:[%s13895_s0 + $0xdd0] sm:$0xff] }
 0x18e   :  { %6778 = vst [vmem:[%s13897_s2 + $0xc48] sm:$0xff] %v11791_v24  ;;  %v12211_v24 = vmul.f32 %v6882_v57, %v6881_v55  ;;  %v6924_v55 = vld [vmem:[%s13896_s1 + $0xdd0] sm:$0xff]  ;;  %v6926_v57 = vld [vmem:[%s13895_s0 + $0xdd8] sm:$0xff] }
 0x18f   :  { %6781 = vst [vmem:[%s13897_s2 + $0xc50] sm:$0xff] %v11803_v28  ;;  %v12223_v28 = vmul.f32 %v6885_v0, %v6884_v58  ;;  %v6927_v58 = vld [vmem:[%s13896_s1 + $0xdd8] sm:$0xff]  ;;  %v6929_v0 = vld [vmem:[%s13895_s0 + $0xde0] sm:$0xff] }
 0x190   :  { %6784 = vst [vmem:[%s13897_s2 + $0xc58] sm:$0xff] %v11815_v63  ;;  %v12235_v63 = vmul.f32 %v6888_v3, %v6887_v2  ;;  %v6930_v2 = vld [vmem:[%s13896_s1 + $0xde0] sm:$0xff]  ;;  %v6932_v3 = vld [vmem:[%s13895_s0 + $0xde8] sm:$0xff] }
 0x191   :  { %6787 = vst [vmem:[%s13897_s2 + $0xc60] sm:$0xff] %v11827_v32  ;;  %v12247_v32 = vmul.f32 %v6891_v7, %v6890_v4  ;;  %v6933_v4 = vld [vmem:[%s13896_s1 + $0xde8] sm:$0xff]  ;;  %v6935_v7 = vld [vmem:[%s13895_s0 + $0xdf0] sm:$0xff] }
 0x192   :  { %6790 = vst [vmem:[%s13897_s2 + $0xc68] sm:$0xff] %v11839_v33  ;;  %v12259_v33 = vmul.f32 %v6894_v13, %v6893_v9  ;;  %v6936_v9 = vld [vmem:[%s13896_s1 + $0xdf0] sm:$0xff]  ;;  %v6938_v13 = vld [vmem:[%s13895_s0 + $0xdf8] sm:$0xff] }
 0x193   :  { %6793 = vst [vmem:[%s13897_s2 + $0xc70] sm:$0xff] %v11851_v11  ;;  %v12271_v11 = vmul.f32 %v6897_v17, %v6896_v16  ;;  %v6939_v16 = vld [vmem:[%s13896_s1 + $0xdf8] sm:$0xff]  ;;  %v6941_v17 = vld [vmem:[%s13895_s0 + $0xe00] sm:$0xff] }
 0x194   :  { %6796 = vst [vmem:[%s13897_s2 + $0xc78] sm:$0xff] %v11863_v37  ;;  %v12283_v37 = vmul.f32 %v6900_v21, %v6899_v20  ;;  %v6942_v20 = vld [vmem:[%s13896_s1 + $0xe00] sm:$0xff]  ;;  %v6944_v21 = vld [vmem:[%s13895_s0 + $0xe08] sm:$0xff] }
 0x195   :  { %6799 = vst [vmem:[%s13897_s2 + $0xc80] sm:$0xff] %v11875_v41  ;;  %v12295_v41 = vmul.f32 %v6903_v26, %v6902_v25  ;;  %v6945_v25 = vld [vmem:[%s13896_s1 + $0xe08] sm:$0xff]  ;;  %v6947_v26 = vld [vmem:[%s13895_s0 + $0xe10] sm:$0xff] }
 0x196   :  { %6802 = vst [vmem:[%s13897_s2 + $0xc88] sm:$0xff] %v11887_v22  ;;  %v12307_v22 = vmul.f32 %v6906_v30, %v6905_v27  ;;  %v6948_v27 = vld [vmem:[%s13896_s1 + $0xe10] sm:$0xff]  ;;  %v6950_v30 = vld [vmem:[%s13895_s0 + $0xe18] sm:$0xff] }
 0x197   :  { %6805 = vst [vmem:[%s13897_s2 + $0xc90] sm:$0xff] %v11899_v42  ;;  %v12319_v42 = vmul.f32 %v6909_v34, %v6908_v31  ;;  %v6951_v31 = vld [vmem:[%s13896_s1 + $0xe18] sm:$0xff]  ;;  %v6953_v34 = vld [vmem:[%s13895_s0 + $0xe20] sm:$0xff] }
 0x198   :  { %6808 = vst [vmem:[%s13897_s2 + $0xc98] sm:$0xff] %v11911_v46  ;;  %v12331_v46 = vmul.f32 %v6912_v38, %v6911_v36  ;;  %v6954_v36 = vld [vmem:[%s13896_s1 + $0xe20] sm:$0xff]  ;;  %v6956_v38 = vld [vmem:[%s13895_s0 + $0xe28] sm:$0xff] }
 0x199   :  { %6811 = vst [vmem:[%s13897_s2 + $0xca0] sm:$0xff] %v11923_v35  ;;  %v12343_v35 = vmul.f32 %v6915_v43, %v6914_v40  ;;  %v6957_v40 = vld [vmem:[%s13896_s1 + $0xe28] sm:$0xff]  ;;  %v6959_v43 = vld [vmem:[%s13895_s0 + $0xe30] sm:$0xff] }
 0x19a   :  { %6814 = vst [vmem:[%s13897_s2 + $0xca8] sm:$0xff] %v11935_v50  ;;  %v12355_v50 = vmul.f32 %v6918_v45, %v6917_v44  ;;  %v6960_v44 = vld [vmem:[%s13896_s1 + $0xe30] sm:$0xff]  ;;  %v6962_v45 = vld [vmem:[%s13895_s0 + $0xe38] sm:$0xff] }
 0x19b   :  { %6817 = vst [vmem:[%s13897_s2 + $0xcb0] sm:$0xff] %v11947_v51  ;;  %v12367_v51 = vmul.f32 %v6921_v53, %v6920_v48  ;;  %v6963_v48 = vld [vmem:[%s13896_s1 + $0xe38] sm:$0xff]  ;;  %v6965_v53 = vld [vmem:[%s13895_s0 + $0xe40] sm:$0xff] }
 0x19c   :  { %6820 = vst [vmem:[%s13897_s2 + $0xcb8] sm:$0xff] %v11959_v47  ;;  %v12379_v47 = vmul.f32 %v6924_v55, %v6923_v54  ;;  %v6966_v54 = vld [vmem:[%s13896_s1 + $0xe40] sm:$0xff]  ;;  %v6968_v55 = vld [vmem:[%s13895_s0 + $0xe48] sm:$0xff] }
 0x19d   :  { %6823 = vst [vmem:[%s13897_s2 + $0xcc0] sm:$0xff] %v11971_v52  ;;  %v12391_v52 = vmul.f32 %v6927_v58, %v6926_v57  ;;  %v6969_v57 = vld [vmem:[%s13896_s1 + $0xe48] sm:$0xff]  ;;  %v6971_v58 = vld [vmem:[%s13895_s0 + $0xe50] sm:$0xff] }
 0x19e   :  { %6826 = vst [vmem:[%s13897_s2 + $0xcc8] sm:$0xff] %v11983_v56  ;;  %v12403_v56 = vmul.f32 %v6930_v2, %v6929_v0  ;;  %v6972_v0 = vld [vmem:[%s13896_s1 + $0xe50] sm:$0xff]  ;;  %v6974_v2 = vld [vmem:[%s13895_s0 + $0xe58] sm:$0xff] }
 0x19f   :  { %6829 = vst [vmem:[%s13897_s2 + $0xcd0] sm:$0xff] %v11995_v59  ;;  %v12415_v59 = vmul.f32 %v6933_v4, %v6932_v3  ;;  %v6975_v3 = vld [vmem:[%s13896_s1 + $0xe58] sm:$0xff]  ;;  %v6977_v4 = vld [vmem:[%s13895_s0 + $0xe60] sm:$0xff] }
 0x1a0   :  { %6832 = vst [vmem:[%s13897_s2 + $0xcd8] sm:$0xff] %v12007_v62  ;;  %v12427_v62 = vmul.f32 %v6936_v9, %v6935_v7  ;;  %v6978_v7 = vld [vmem:[%s13896_s1 + $0xe60] sm:$0xff]  ;;  %v6980_v9 = vld [vmem:[%s13895_s0 + $0xe68] sm:$0xff] }
 0x1a1   :  { %6835 = vst [vmem:[%s13897_s2 + $0xce0] sm:$0xff] %v12019_v60  ;;  %v12439_v60 = vmul.f32 %v6939_v16, %v6938_v13  ;;  %v6981_v13 = vld [vmem:[%s13896_s1 + $0xe68] sm:$0xff]  ;;  %v6983_v16 = vld [vmem:[%s13895_s0 + $0xe70] sm:$0xff] }
 0x1a2   :  { %6838 = vst [vmem:[%s13897_s2 + $0xce8] sm:$0xff] %v12031_v12  ;;  %v12451_v12 = vmul.f32 %v6942_v20, %v6941_v17  ;;  %v6984_v17 = vld [vmem:[%s13896_s1 + $0xe70] sm:$0xff]  ;;  %v6986_v20 = vld [vmem:[%s13895_s0 + $0xe78] sm:$0xff] }
 0x1a3   :  { %6841 = vst [vmem:[%s13897_s2 + $0xcf0] sm:$0xff] %v12043_v61  ;;  %v12463_v61 = vmul.f32 %v6945_v25, %v6944_v21  ;;  %v6987_v21 = vld [vmem:[%s13896_s1 + $0xe78] sm:$0xff]  ;;  %v6989_v25 = vld [vmem:[%s13895_s0 + $0xe80] sm:$0xff] }
 0x1a4   :  { %6844 = vst [vmem:[%s13897_s2 + $0xcf8] sm:$0xff] %v12055_v8  ;;  %v12475_v8 = vmul.f32 %v6948_v27, %v6947_v26  ;;  %v6990_v26 = vld [vmem:[%s13896_s1 + $0xe80] sm:$0xff]  ;;  %v6992_v27 = vld [vmem:[%s13895_s0 + $0xe88] sm:$0xff] }
 0x1a5   :  { %6847 = vst [vmem:[%s13897_s2 + $0xd00] sm:$0xff] %v12067_v1  ;;  %v12487_v1 = vmul.f32 %v6951_v31, %v6950_v30  ;;  %v6993_v30 = vld [vmem:[%s13896_s1 + $0xe88] sm:$0xff]  ;;  %v6995_v31 = vld [vmem:[%s13895_s0 + $0xe90] sm:$0xff] }
 0x1a6   :  { %6850 = vst [vmem:[%s13897_s2 + $0xd08] sm:$0xff] %v12079_v5  ;;  %v12499_v5 = vmul.f32 %v6954_v36, %v6953_v34  ;;  %v6996_v34 = vld [vmem:[%s13896_s1 + $0xe90] sm:$0xff]  ;;  %v6998_v36 = vld [vmem:[%s13895_s0 + $0xe98] sm:$0xff] }
 0x1a7   :  { %6853 = vst [vmem:[%s13897_s2 + $0xd10] sm:$0xff] %v12091_v18  ;;  %v12511_v18 = vmul.f32 %v6957_v40, %v6956_v38  ;;  %v6999_v38 = vld [vmem:[%s13896_s1 + $0xe98] sm:$0xff]  ;;  %v7001_v40 = vld [vmem:[%s13895_s0 + $0xea0] sm:$0xff] }
 0x1a8   :  { %6856 = vst [vmem:[%s13897_s2 + $0xd18] sm:$0xff] %v12103_v6  ;;  %v12523_v6 = vmul.f32 %v6960_v44, %v6959_v43  ;;  %v7002_v43 = vld [vmem:[%s13896_s1 + $0xea0] sm:$0xff]  ;;  %v7004_v44 = vld [vmem:[%s13895_s0 + $0xea8] sm:$0xff] }
 0x1a9   :  { %6859 = vst [vmem:[%s13897_s2 + $0xd20] sm:$0xff] %v12115_v10  ;;  %v12535_v10 = vmul.f32 %v6963_v48, %v6962_v45  ;;  %v7005_v45 = vld [vmem:[%s13896_s1 + $0xea8] sm:$0xff]  ;;  %v7007_v48 = vld [vmem:[%s13895_s0 + $0xeb0] sm:$0xff] }
 0x1aa   :  { %6862 = vst [vmem:[%s13897_s2 + $0xd28] sm:$0xff] %v12127_v29  ;;  %v12547_v29 = vmul.f32 %v6966_v54, %v6965_v53  ;;  %v7008_v53 = vld [vmem:[%s13896_s1 + $0xeb0] sm:$0xff]  ;;  %v7010_v54 = vld [vmem:[%s13895_s0 + $0xeb8] sm:$0xff] }
 0x1ab   :  { %6865 = vst [vmem:[%s13897_s2 + $0xd30] sm:$0xff] %v12139_v14  ;;  %v12559_v14 = vmul.f32 %v6969_v57, %v6968_v55  ;;  %v7011_v55 = vld [vmem:[%s13896_s1 + $0xeb8] sm:$0xff]  ;;  %v7013_v57 = vld [vmem:[%s13895_s0 + $0xec0] sm:$0xff] }
 0x1ac   :  { %6868 = vst [vmem:[%s13897_s2 + $0xd38] sm:$0xff] %v12151_v15  ;;  %v12571_v15 = vmul.f32 %v6972_v0, %v6971_v58  ;;  %v7014_v58 = vld [vmem:[%s13896_s1 + $0xec0] sm:$0xff]  ;;  %v7016_v0 = vld [vmem:[%s13895_s0 + $0xec8] sm:$0xff] }
 0x1ad   :  { %6871 = vst [vmem:[%s13897_s2 + $0xd40] sm:$0xff] %v12163_v39  ;;  %v12583_v39 = vmul.f32 %v6975_v3, %v6974_v2  ;;  %v7017_v2 = vld [vmem:[%s13896_s1 + $0xec8] sm:$0xff]  ;;  %v7019_v3 = vld [vmem:[%s13895_s0 + $0xed0] sm:$0xff] }
 0x1ae   :  { %6874 = vst [vmem:[%s13897_s2 + $0xd48] sm:$0xff] %v12175_v19  ;;  %v12595_v19 = vmul.f32 %v6978_v7, %v6977_v4  ;;  %v7020_v4 = vld [vmem:[%s13896_s1 + $0xed0] sm:$0xff]  ;;  %v7022_v7 = vld [vmem:[%s13895_s0 + $0xed8] sm:$0xff] }
 0x1af   :  { %6877 = vst [vmem:[%s13897_s2 + $0xd50] sm:$0xff] %v12187_v23  ;;  %v12607_v23 = vmul.f32 %v6981_v13, %v6980_v9  ;;  %v7023_v9 = vld [vmem:[%s13896_s1 + $0xed8] sm:$0xff]  ;;  %v7025_v13 = vld [vmem:[%s13895_s0 + $0xee0] sm:$0xff] }
 0x1b0   :  { %6880 = vst [vmem:[%s13897_s2 + $0xd58] sm:$0xff] %v12199_v49  ;;  %v12619_v49 = vmul.f32 %v6984_v17, %v6983_v16  ;;  %v7026_v16 = vld [vmem:[%s13896_s1 + $0xee0] sm:$0xff]  ;;  %v7028_v17 = vld [vmem:[%s13895_s0 + $0xee8] sm:$0xff] }
 0x1b1   :  { %6883 = vst [vmem:[%s13897_s2 + $0xd60] sm:$0xff] %v12211_v24  ;;  %v12631_v24 = vmul.f32 %v6987_v21, %v6986_v20  ;;  %v7029_v20 = vld [vmem:[%s13896_s1 + $0xee8] sm:$0xff]  ;;  %v7031_v21 = vld [vmem:[%s13895_s0 + $0xef0] sm:$0xff] }
 0x1b2   :  { %6886 = vst [vmem:[%s13897_s2 + $0xd68] sm:$0xff] %v12223_v28  ;;  %v12643_v28 = vmul.f32 %v6990_v26, %v6989_v25  ;;  %v7032_v25 = vld [vmem:[%s13896_s1 + $0xef0] sm:$0xff]  ;;  %v7034_v26 = vld [vmem:[%s13895_s0 + $0xef8] sm:$0xff] }
 0x1b3   :  { %6889 = vst [vmem:[%s13897_s2 + $0xd70] sm:$0xff] %v12235_v63  ;;  %v12655_v63 = vmul.f32 %v6993_v30, %v6992_v27  ;;  %v7035_v27 = vld [vmem:[%s13896_s1 + $0xef8] sm:$0xff]  ;;  %v7037_v30 = vld [vmem:[%s13895_s0 + $0xf00] sm:$0xff] }
 0x1b4   :  { %6892 = vst [vmem:[%s13897_s2 + $0xd78] sm:$0xff] %v12247_v32  ;;  %v12667_v32 = vmul.f32 %v6996_v34, %v6995_v31  ;;  %v7038_v31 = vld [vmem:[%s13896_s1 + $0xf00] sm:$0xff]  ;;  %v7040_v34 = vld [vmem:[%s13895_s0 + $0xf08] sm:$0xff] }
 0x1b5   :  { %6895 = vst [vmem:[%s13897_s2 + $0xd80] sm:$0xff] %v12259_v33  ;;  %v12679_v33 = vmul.f32 %v6999_v38, %v6998_v36  ;;  %v7041_v36 = vld [vmem:[%s13896_s1 + $0xf08] sm:$0xff]  ;;  %v7043_v38 = vld [vmem:[%s13895_s0 + $0xf10] sm:$0xff] }
 0x1b6   :  { %6898 = vst [vmem:[%s13897_s2 + $0xd88] sm:$0xff] %v12271_v11  ;;  %v12691_v11 = vmul.f32 %v7002_v43, %v7001_v40  ;;  %v7044_v40 = vld [vmem:[%s13896_s1 + $0xf10] sm:$0xff]  ;;  %v7046_v43 = vld [vmem:[%s13895_s0 + $0xf18] sm:$0xff] }
 0x1b7   :  { %6901 = vst [vmem:[%s13897_s2 + $0xd90] sm:$0xff] %v12283_v37  ;;  %v12703_v37 = vmul.f32 %v7005_v45, %v7004_v44  ;;  %v7047_v44 = vld [vmem:[%s13896_s1 + $0xf18] sm:$0xff]  ;;  %v7049_v45 = vld [vmem:[%s13895_s0 + $0xf20] sm:$0xff] }
 0x1b8   :  { %6904 = vst [vmem:[%s13897_s2 + $0xd98] sm:$0xff] %v12295_v41  ;;  %v12715_v41 = vmul.f32 %v7008_v53, %v7007_v48  ;;  %v7050_v48 = vld [vmem:[%s13896_s1 + $0xf20] sm:$0xff]  ;;  %v7052_v53 = vld [vmem:[%s13895_s0 + $0xf28] sm:$0xff] }
 0x1b9   :  { %6907 = vst [vmem:[%s13897_s2 + $0xda0] sm:$0xff] %v12307_v22  ;;  %v12727_v22 = vmul.f32 %v7011_v55, %v7010_v54  ;;  %v7053_v54 = vld [vmem:[%s13896_s1 + $0xf28] sm:$0xff]  ;;  %v7055_v55 = vld [vmem:[%s13895_s0 + $0xf30] sm:$0xff] }
 0x1ba   :  { %6910 = vst [vmem:[%s13897_s2 + $0xda8] sm:$0xff] %v12319_v42  ;;  %v12739_v42 = vmul.f32 %v7014_v58, %v7013_v57  ;;  %v7056_v57 = vld [vmem:[%s13896_s1 + $0xf30] sm:$0xff]  ;;  %v7058_v58 = vld [vmem:[%s13895_s0 + $0xf38] sm:$0xff] }
 0x1bb   :  { %6913 = vst [vmem:[%s13897_s2 + $0xdb0] sm:$0xff] %v12331_v46  ;;  %v12751_v46 = vmul.f32 %v7017_v2, %v7016_v0  ;;  %v7059_v0 = vld [vmem:[%s13896_s1 + $0xf38] sm:$0xff]  ;;  %v7061_v2 = vld [vmem:[%s13895_s0 + $0xf40] sm:$0xff] }
 0x1bc   :  { %6916 = vst [vmem:[%s13897_s2 + $0xdb8] sm:$0xff] %v12343_v35  ;;  %v12763_v35 = vmul.f32 %v7020_v4, %v7019_v3  ;;  %v7062_v3 = vld [vmem:[%s13896_s1 + $0xf40] sm:$0xff]  ;;  %v7064_v4 = vld [vmem:[%s13895_s0 + $0xf48] sm:$0xff] }
 0x1bd   :  { %6919 = vst [vmem:[%s13897_s2 + $0xdc0] sm:$0xff] %v12355_v50  ;;  %v12775_v50 = vmul.f32 %v7023_v9, %v7022_v7  ;;  %v7065_v7 = vld [vmem:[%s13896_s1 + $0xf48] sm:$0xff]  ;;  %v7067_v9 = vld [vmem:[%s13895_s0 + $0xf50] sm:$0xff] }
 0x1be   :  { %6922 = vst [vmem:[%s13897_s2 + $0xdc8] sm:$0xff] %v12367_v51  ;;  %v12787_v51 = vmul.f32 %v7026_v16, %v7025_v13  ;;  %v7068_v13 = vld [vmem:[%s13896_s1 + $0xf50] sm:$0xff]  ;;  %v7070_v16 = vld [vmem:[%s13895_s0 + $0xf58] sm:$0xff] }
 0x1bf   :  { %6925 = vst [vmem:[%s13897_s2 + $0xdd0] sm:$0xff] %v12379_v47  ;;  %v12799_v47 = vmul.f32 %v7029_v20, %v7028_v17  ;;  %v7071_v17 = vld [vmem:[%s13896_s1 + $0xf58] sm:$0xff]  ;;  %v7073_v20 = vld [vmem:[%s13895_s0 + $0xf60] sm:$0xff] }
 0x1c0   :  { %6928 = vst [vmem:[%s13897_s2 + $0xdd8] sm:$0xff] %v12391_v52  ;;  %v12811_v52 = vmul.f32 %v7032_v25, %v7031_v21  ;;  %v7074_v21 = vld [vmem:[%s13896_s1 + $0xf60] sm:$0xff]  ;;  %v7076_v25 = vld [vmem:[%s13895_s0 + $0xf68] sm:$0xff] }
 0x1c1   :  { %6931 = vst [vmem:[%s13897_s2 + $0xde0] sm:$0xff] %v12403_v56  ;;  %v12823_v56 = vmul.f32 %v7035_v27, %v7034_v26  ;;  %v7077_v26 = vld [vmem:[%s13896_s1 + $0xf68] sm:$0xff]  ;;  %v7079_v27 = vld [vmem:[%s13895_s0 + $0xf70] sm:$0xff] }
 0x1c2   :  { %6934 = vst [vmem:[%s13897_s2 + $0xde8] sm:$0xff] %v12415_v59  ;;  %v12835_v59 = vmul.f32 %v7038_v31, %v7037_v30  ;;  %v7080_v30 = vld [vmem:[%s13896_s1 + $0xf70] sm:$0xff]  ;;  %v7082_v31 = vld [vmem:[%s13895_s0 + $0xf78] sm:$0xff] }
 0x1c3   :  { %6937 = vst [vmem:[%s13897_s2 + $0xdf0] sm:$0xff] %v12427_v62  ;;  %v12847_v62 = vmul.f32 %v7041_v36, %v7040_v34  ;;  %v7083_v34 = vld [vmem:[%s13896_s1 + $0xf78] sm:$0xff]  ;;  %v7085_v36 = vld [vmem:[%s13895_s0 + $0xf80] sm:$0xff] }
 0x1c4   :  { %6940 = vst [vmem:[%s13897_s2 + $0xdf8] sm:$0xff] %v12439_v60  ;;  %v12859_v60 = vmul.f32 %v7044_v40, %v7043_v38  ;;  %v7086_v38 = vld [vmem:[%s13896_s1 + $0xf80] sm:$0xff]  ;;  %v7088_v40 = vld [vmem:[%s13895_s0 + $0xf88] sm:$0xff] }
 0x1c5   :  { %6943 = vst [vmem:[%s13897_s2 + $0xe00] sm:$0xff] %v12451_v12  ;;  %v12871_v12 = vmul.f32 %v7047_v44, %v7046_v43  ;;  %v7089_v43 = vld [vmem:[%s13896_s1 + $0xf88] sm:$0xff]  ;;  %v7091_v44 = vld [vmem:[%s13895_s0 + $0xf90] sm:$0xff] }
 0x1c6   :  { %6946 = vst [vmem:[%s13897_s2 + $0xe08] sm:$0xff] %v12463_v61  ;;  %v12883_v61 = vmul.f32 %v7050_v48, %v7049_v45  ;;  %v7092_v45 = vld [vmem:[%s13896_s1 + $0xf90] sm:$0xff]  ;;  %v7094_v48 = vld [vmem:[%s13895_s0 + $0xf98] sm:$0xff] }
 0x1c7   :  { %6949 = vst [vmem:[%s13897_s2 + $0xe10] sm:$0xff] %v12475_v8  ;;  %v12895_v8 = vmul.f32 %v7053_v54, %v7052_v53  ;;  %v7095_v53 = vld [vmem:[%s13896_s1 + $0xf98] sm:$0xff]  ;;  %v7097_v54 = vld [vmem:[%s13895_s0 + $0xfa0] sm:$0xff] }
 0x1c8   :  { %6952 = vst [vmem:[%s13897_s2 + $0xe18] sm:$0xff] %v12487_v1  ;;  %v12907_v1 = vmul.f32 %v7056_v57, %v7055_v55  ;;  %v7098_v55 = vld [vmem:[%s13896_s1 + $0xfa0] sm:$0xff]  ;;  %v7100_v57 = vld [vmem:[%s13895_s0 + $0xfa8] sm:$0xff] }
 0x1c9   :  { %6955 = vst [vmem:[%s13897_s2 + $0xe20] sm:$0xff] %v12499_v5  ;;  %v12919_v5 = vmul.f32 %v7059_v0, %v7058_v58  ;;  %v7101_v58 = vld [vmem:[%s13896_s1 + $0xfa8] sm:$0xff]  ;;  %v7103_v0 = vld [vmem:[%s13895_s0 + $0xfb0] sm:$0xff] }
 0x1ca   :  { %6958 = vst [vmem:[%s13897_s2 + $0xe28] sm:$0xff] %v12511_v18  ;;  %v12931_v18 = vmul.f32 %v7062_v3, %v7061_v2  ;;  %v7104_v2 = vld [vmem:[%s13896_s1 + $0xfb0] sm:$0xff]  ;;  %v7106_v3 = vld [vmem:[%s13895_s0 + $0xfb8] sm:$0xff] }
 0x1cb   :  { %6961 = vst [vmem:[%s13897_s2 + $0xe30] sm:$0xff] %v12523_v6  ;;  %v12943_v6 = vmul.f32 %v7065_v7, %v7064_v4  ;;  %v7107_v4 = vld [vmem:[%s13896_s1 + $0xfb8] sm:$0xff]  ;;  %v7109_v7 = vld [vmem:[%s13895_s0 + $0xfc0] sm:$0xff] }
 0x1cc   :  { %6964 = vst [vmem:[%s13897_s2 + $0xe38] sm:$0xff] %v12535_v10  ;;  %v12955_v10 = vmul.f32 %v7068_v13, %v7067_v9  ;;  %v7110_v9 = vld [vmem:[%s13896_s1 + $0xfc0] sm:$0xff]  ;;  %v7112_v13 = vld [vmem:[%s13895_s0 + $0xfc8] sm:$0xff] }
 0x1cd   :  { %6967 = vst [vmem:[%s13897_s2 + $0xe40] sm:$0xff] %v12547_v29  ;;  %v12967_v29 = vmul.f32 %v7071_v17, %v7070_v16  ;;  %v7113_v16 = vld [vmem:[%s13896_s1 + $0xfc8] sm:$0xff]  ;;  %v7115_v17 = vld [vmem:[%s13895_s0 + $0xfd0] sm:$0xff] }
 0x1ce   :  { %6970 = vst [vmem:[%s13897_s2 + $0xe48] sm:$0xff] %v12559_v14  ;;  %v12979_v14 = vmul.f32 %v7074_v21, %v7073_v20  ;;  %v7116_v20 = vld [vmem:[%s13896_s1 + $0xfd0] sm:$0xff]  ;;  %v7118_v21 = vld [vmem:[%s13895_s0 + $0xfd8] sm:$0xff] }
 0x1cf   :  { %6973 = vst [vmem:[%s13897_s2 + $0xe50] sm:$0xff] %v12571_v15  ;;  %v12991_v15 = vmul.f32 %v7077_v26, %v7076_v25  ;;  %v7119_v25 = vld [vmem:[%s13896_s1 + $0xfd8] sm:$0xff]  ;;  %v7121_v26 = vld [vmem:[%s13895_s0 + $0xfe0] sm:$0xff] }
 0x1d0   :  { %6976 = vst [vmem:[%s13897_s2 + $0xe58] sm:$0xff] %v12583_v39  ;;  %v13003_v39 = vmul.f32 %v7080_v30, %v7079_v27  ;;  %v7122_v27 = vld [vmem:[%s13896_s1 + $0xfe0] sm:$0xff]  ;;  %v7124_v30 = vld [vmem:[%s13895_s0 + $0xfe8] sm:$0xff] }
 0x1d1   :  { %6979 = vst [vmem:[%s13897_s2 + $0xe60] sm:$0xff] %v12595_v19  ;;  %v13015_v19 = vmul.f32 %v7083_v34, %v7082_v31  ;;  %v7125_v31 = vld [vmem:[%s13896_s1 + $0xfe8] sm:$0xff]  ;;  %v7127_v34 = vld [vmem:[%s13895_s0 + $0xff0] sm:$0xff] }
 0x1d2   :  { %6982 = vst [vmem:[%s13897_s2 + $0xe68] sm:$0xff] %v12607_v23  ;;  %v13027_v23 = vmul.f32 %v7086_v38, %v7085_v36  ;;  %v7128_v36 = vld [vmem:[%s13896_s1 + $0xff0] sm:$0xff]  ;;  %v7130_v38 = vld [vmem:[%s13895_s0 + $0xff8] sm:$0xff] }
 0x1d3   :  { %6985 = vst [vmem:[%s13897_s2 + $0xe70] sm:$0xff] %v12619_v49  ;;  %v13039_v49 = vmul.f32 %v7089_v43, %v7088_v40  ;;  %v7131_v40 = vld [vmem:[%s13896_s1 + $0xff8] sm:$0xff]  ;;  %v7133_v43 = vld [vmem:[%s13895_s0 + $0x1000] sm:$0xff] }
 0x1d4   :  { %6988 = vst [vmem:[%s13897_s2 + $0xe78] sm:$0xff] %v12631_v24  ;;  %v13051_v24 = vmul.f32 %v7092_v45, %v7091_v44  ;;  %v7134_v44 = vld [vmem:[%s13896_s1 + $0x1000] sm:$0xff]  ;;  %v7136_v45 = vld [vmem:[%s13895_s0 + $0x1008] sm:$0xff] }
 0x1d5   :  { %6991 = vst [vmem:[%s13897_s2 + $0xe80] sm:$0xff] %v12643_v28  ;;  %v13063_v28 = vmul.f32 %v7095_v53, %v7094_v48  ;;  %v7137_v48 = vld [vmem:[%s13896_s1 + $0x1008] sm:$0xff]  ;;  %v7139_v53 = vld [vmem:[%s13895_s0 + $0x1010] sm:$0xff] }
 0x1d6   :  { %6994 = vst [vmem:[%s13897_s2 + $0xe88] sm:$0xff] %v12655_v63  ;;  %v13075_v63 = vmul.f32 %v7098_v55, %v7097_v54  ;;  %v7140_v54 = vld [vmem:[%s13896_s1 + $0x1010] sm:$0xff]  ;;  %v7142_v55 = vld [vmem:[%s13895_s0 + $0x1018] sm:$0xff] }
 0x1d7   :  { %6997 = vst [vmem:[%s13897_s2 + $0xe90] sm:$0xff] %v12667_v32  ;;  %v13087_v32 = vmul.f32 %v7101_v58, %v7100_v57  ;;  %v7143_v57 = vld [vmem:[%s13896_s1 + $0x1018] sm:$0xff]  ;;  %v7145_v58 = vld [vmem:[%s13895_s0 + $0x1020] sm:$0xff] }
 0x1d8   :  { %7000 = vst [vmem:[%s13897_s2 + $0xe98] sm:$0xff] %v12679_v33  ;;  %v13099_v33 = vmul.f32 %v7104_v2, %v7103_v0  ;;  %v7146_v0 = vld [vmem:[%s13896_s1 + $0x1020] sm:$0xff]  ;;  %v7148_v2 = vld [vmem:[%s13895_s0 + $0x1028] sm:$0xff] }
 0x1d9   :  { %7003 = vst [vmem:[%s13897_s2 + $0xea0] sm:$0xff] %v12691_v11  ;;  %v13111_v11 = vmul.f32 %v7107_v4, %v7106_v3  ;;  %v7149_v3 = vld [vmem:[%s13896_s1 + $0x1028] sm:$0xff]  ;;  %v7151_v4 = vld [vmem:[%s13895_s0 + $0x1030] sm:$0xff] }
 0x1da   :  { %7006 = vst [vmem:[%s13897_s2 + $0xea8] sm:$0xff] %v12703_v37  ;;  %v13123_v37 = vmul.f32 %v7110_v9, %v7109_v7  ;;  %v7152_v7 = vld [vmem:[%s13896_s1 + $0x1030] sm:$0xff]  ;;  %v7154_v9 = vld [vmem:[%s13895_s0 + $0x1038] sm:$0xff] }
 0x1db   :  { %7009 = vst [vmem:[%s13897_s2 + $0xeb0] sm:$0xff] %v12715_v41  ;;  %v13135_v41 = vmul.f32 %v7113_v16, %v7112_v13  ;;  %v7155_v13 = vld [vmem:[%s13896_s1 + $0x1038] sm:$0xff]  ;;  %v7157_v16 = vld [vmem:[%s13895_s0 + $0x1040] sm:$0xff] }
 0x1dc   :  { %7012 = vst [vmem:[%s13897_s2 + $0xeb8] sm:$0xff] %v12727_v22  ;;  %v13147_v22 = vmul.f32 %v7116_v20, %v7115_v17  ;;  %v7158_v17 = vld [vmem:[%s13896_s1 + $0x1040] sm:$0xff]  ;;  %v7160_v20 = vld [vmem:[%s13895_s0 + $0x1048] sm:$0xff] }
 0x1dd   :  { %7015 = vst [vmem:[%s13897_s2 + $0xec0] sm:$0xff] %v12739_v42  ;;  %v13159_v42 = vmul.f32 %v7119_v25, %v7118_v21  ;;  %v7161_v21 = vld [vmem:[%s13896_s1 + $0x1048] sm:$0xff]  ;;  %v7163_v25 = vld [vmem:[%s13895_s0 + $0x1050] sm:$0xff] }
 0x1de   :  { %7018 = vst [vmem:[%s13897_s2 + $0xec8] sm:$0xff] %v12751_v46  ;;  %v13171_v46 = vmul.f32 %v7122_v27, %v7121_v26  ;;  %v7164_v26 = vld [vmem:[%s13896_s1 + $0x1050] sm:$0xff]  ;;  %v7166_v27 = vld [vmem:[%s13895_s0 + $0x1058] sm:$0xff] }
 0x1df   :  { %7021 = vst [vmem:[%s13897_s2 + $0xed0] sm:$0xff] %v12763_v35  ;;  %v13183_v35 = vmul.f32 %v7125_v31, %v7124_v30  ;;  %v7167_v30 = vld [vmem:[%s13896_s1 + $0x1058] sm:$0xff]  ;;  %v7169_v31 = vld [vmem:[%s13895_s0 + $0x1060] sm:$0xff] }
 0x1e0   :  { %7024 = vst [vmem:[%s13897_s2 + $0xed8] sm:$0xff] %v12775_v50  ;;  %v13195_v50 = vmul.f32 %v7128_v36, %v7127_v34  ;;  %v7170_v34 = vld [vmem:[%s13896_s1 + $0x1060] sm:$0xff]  ;;  %v7172_v36 = vld [vmem:[%s13895_s0 + $0x1068] sm:$0xff] }
 0x1e1   :  { %7027 = vst [vmem:[%s13897_s2 + $0xee0] sm:$0xff] %v12787_v51  ;;  %v13207_v51 = vmul.f32 %v7131_v40, %v7130_v38  ;;  %v7173_v38 = vld [vmem:[%s13896_s1 + $0x1068] sm:$0xff]  ;;  %v7175_v40 = vld [vmem:[%s13895_s0 + $0x1070] sm:$0xff] }
 0x1e2   :  { %7030 = vst [vmem:[%s13897_s2 + $0xee8] sm:$0xff] %v12799_v47  ;;  %v13219_v47 = vmul.f32 %v7134_v44, %v7133_v43  ;;  %v7176_v43 = vld [vmem:[%s13896_s1 + $0x1070] sm:$0xff]  ;;  %v7178_v44 = vld [vmem:[%s13895_s0 + $0x1078] sm:$0xff] }
 0x1e3   :  { %7033 = vst [vmem:[%s13897_s2 + $0xef0] sm:$0xff] %v12811_v52  ;;  %v13231_v52 = vmul.f32 %v7137_v48, %v7136_v45  ;;  %v7179_v45 = vld [vmem:[%s13896_s1 + $0x1078] sm:$0xff]  ;;  %v7181_v48 = vld [vmem:[%s13895_s0 + $0x1080] sm:$0xff] }
 0x1e4   :  { %7036 = vst [vmem:[%s13897_s2 + $0xef8] sm:$0xff] %v12823_v56  ;;  %v13243_v56 = vmul.f32 %v7140_v54, %v7139_v53  ;;  %v7182_v53 = vld [vmem:[%s13896_s1 + $0x1080] sm:$0xff]  ;;  %v7184_v54 = vld [vmem:[%s13895_s0 + $0x1088] sm:$0xff] }
 0x1e5   :  { %7039 = vst [vmem:[%s13897_s2 + $0xf00] sm:$0xff] %v12835_v59  ;;  %v13255_v59 = vmul.f32 %v7143_v57, %v7142_v55  ;;  %v7185_v55 = vld [vmem:[%s13896_s1 + $0x1088] sm:$0xff]  ;;  %v7187_v57 = vld [vmem:[%s13895_s0 + $0x1090] sm:$0xff] }
 0x1e6   :  { %7042 = vst [vmem:[%s13897_s2 + $0xf08] sm:$0xff] %v12847_v62  ;;  %v13267_v62 = vmul.f32 %v7146_v0, %v7145_v58  ;;  %v7188_v58 = vld [vmem:[%s13896_s1 + $0x1090] sm:$0xff]  ;;  %v7190_v0 = vld [vmem:[%s13895_s0 + $0x1098] sm:$0xff] }
 0x1e7   :  { %7045 = vst [vmem:[%s13897_s2 + $0xf10] sm:$0xff] %v12859_v60  ;;  %v13279_v60 = vmul.f32 %v7149_v3, %v7148_v2  ;;  %v7191_v2 = vld [vmem:[%s13896_s1 + $0x1098] sm:$0xff]  ;;  %v7193_v3 = vld [vmem:[%s13895_s0 + $0x10a0] sm:$0xff] }
 0x1e8   :  { %7048 = vst [vmem:[%s13897_s2 + $0xf18] sm:$0xff] %v12871_v12  ;;  %v13291_v12 = vmul.f32 %v7152_v7, %v7151_v4  ;;  %v7194_v4 = vld [vmem:[%s13896_s1 + $0x10a0] sm:$0xff]  ;;  %v7196_v7 = vld [vmem:[%s13895_s0 + $0x10a8] sm:$0xff] }
 0x1e9   :  { %7051 = vst [vmem:[%s13897_s2 + $0xf20] sm:$0xff] %v12883_v61  ;;  %v13303_v61 = vmul.f32 %v7155_v13, %v7154_v9  ;;  %v7197_v9 = vld [vmem:[%s13896_s1 + $0x10a8] sm:$0xff]  ;;  %v7199_v13 = vld [vmem:[%s13895_s0 + $0x10b0] sm:$0xff] }
 0x1ea   :  { %7054 = vst [vmem:[%s13897_s2 + $0xf28] sm:$0xff] %v12895_v8  ;;  %v13315_v8 = vmul.f32 %v7158_v17, %v7157_v16  ;;  %v7200_v16 = vld [vmem:[%s13896_s1 + $0x10b0] sm:$0xff]  ;;  %v7202_v17 = vld [vmem:[%s13895_s0 + $0x10b8] sm:$0xff] }
 0x1eb   :  { %7057 = vst [vmem:[%s13897_s2 + $0xf30] sm:$0xff] %v12907_v1  ;;  %v13327_v1 = vmul.f32 %v7161_v21, %v7160_v20  ;;  %v7203_v20 = vld [vmem:[%s13896_s1 + $0x10b8] sm:$0xff]  ;;  %v7205_v21 = vld [vmem:[%s13895_s0 + $0x10c0] sm:$0xff] }
 0x1ec   :  { %7060 = vst [vmem:[%s13897_s2 + $0xf38] sm:$0xff] %v12919_v5  ;;  %v13339_v5 = vmul.f32 %v7164_v26, %v7163_v25  ;;  %v7206_v25 = vld [vmem:[%s13896_s1 + $0x10c0] sm:$0xff]  ;;  %v7208_v26 = vld [vmem:[%s13895_s0 + $0x10c8] sm:$0xff] }
 0x1ed   :  { %7063 = vst [vmem:[%s13897_s2 + $0xf40] sm:$0xff] %v12931_v18  ;;  %v13351_v18 = vmul.f32 %v7167_v30, %v7166_v27  ;;  %v7209_v27 = vld [vmem:[%s13896_s1 + $0x10c8] sm:$0xff]  ;;  %v7211_v30 = vld [vmem:[%s13895_s0 + $0x10d0] sm:$0xff] }
 0x1ee   :  { %7066 = vst [vmem:[%s13897_s2 + $0xf48] sm:$0xff] %v12943_v6  ;;  %v13363_v6 = vmul.f32 %v7170_v34, %v7169_v31  ;;  %v7212_v31 = vld [vmem:[%s13896_s1 + $0x10d0] sm:$0xff]  ;;  %v7214_v34 = vld [vmem:[%s13895_s0 + $0x10d8] sm:$0xff] }
 0x1ef   :  { %7069 = vst [vmem:[%s13897_s2 + $0xf50] sm:$0xff] %v12955_v10  ;;  %v13375_v10 = vmul.f32 %v7173_v38, %v7172_v36  ;;  %v7215_v36 = vld [vmem:[%s13896_s1 + $0x10d8] sm:$0xff]  ;;  %v7217_v38 = vld [vmem:[%s13895_s0 + $0x10e0] sm:$0xff] }
 0x1f0   :  { %7072 = vst [vmem:[%s13897_s2 + $0xf58] sm:$0xff] %v12967_v29  ;;  %v13387_v29 = vmul.f32 %v7176_v43, %v7175_v40  ;;  %v7218_v40 = vld [vmem:[%s13896_s1 + $0x10e0] sm:$0xff]  ;;  %v7220_v43 = vld [vmem:[%s13895_s0 + $0x10e8] sm:$0xff] }
 0x1f1   :  { %7075 = vst [vmem:[%s13897_s2 + $0xf60] sm:$0xff] %v12979_v14  ;;  %v13399_v14 = vmul.f32 %v7179_v45, %v7178_v44  ;;  %v7221_v44 = vld [vmem:[%s13896_s1 + $0x10e8] sm:$0xff]  ;;  %v7223_v45 = vld [vmem:[%s13895_s0 + $0x10f0] sm:$0xff] }
 0x1f2   :  { %7078 = vst [vmem:[%s13897_s2 + $0xf68] sm:$0xff] %v12991_v15  ;;  %v13411_v15 = vmul.f32 %v7182_v53, %v7181_v48  ;;  %v7224_v48 = vld [vmem:[%s13896_s1 + $0x10f0] sm:$0xff]  ;;  %v7226_v53 = vld [vmem:[%s13895_s0 + $0x10f8] sm:$0xff] }
 0x1f3   :  { %7081 = vst [vmem:[%s13897_s2 + $0xf70] sm:$0xff] %v13003_v39  ;;  %v13423_v39 = vmul.f32 %v7185_v55, %v7184_v54  ;;  %v7227_v54 = vld [vmem:[%s13896_s1 + $0x10f8] sm:$0xff]  ;;  %v7229_v55 = vld [vmem:[%s13895_s0 + $0x1100] sm:$0xff] }
 0x1f4   :  { %7084 = vst [vmem:[%s13897_s2 + $0xf78] sm:$0xff] %v13015_v19  ;;  %v13435_v19 = vmul.f32 %v7188_v58, %v7187_v57  ;;  %v7230_v57 = vld [vmem:[%s13896_s1 + $0x1100] sm:$0xff]  ;;  %v7232_v58 = vld [vmem:[%s13895_s0 + $0x1108] sm:$0xff] }
 0x1f5   :  { %7087 = vst [vmem:[%s13897_s2 + $0xf80] sm:$0xff] %v13027_v23  ;;  %v13447_v23 = vmul.f32 %v7191_v2, %v7190_v0  ;;  %v7233_v0 = vld [vmem:[%s13896_s1 + $0x1108] sm:$0xff]  ;;  %v7235_v2 = vld [vmem:[%s13895_s0 + $0x1110] sm:$0xff] }
 0x1f6   :  { %7090 = vst [vmem:[%s13897_s2 + $0xf88] sm:$0xff] %v13039_v49  ;;  %v13459_v49 = vmul.f32 %v7194_v4, %v7193_v3  ;;  %v7236_v3 = vld [vmem:[%s13896_s1 + $0x1110] sm:$0xff]  ;;  %v7238_v4 = vld [vmem:[%s13895_s0 + $0x1118] sm:$0xff] }
 0x1f7   :  { %7093 = vst [vmem:[%s13897_s2 + $0xf90] sm:$0xff] %v13051_v24  ;;  %v13471_v24 = vmul.f32 %v7197_v9, %v7196_v7  ;;  %v7239_v7 = vld [vmem:[%s13896_s1 + $0x1118] sm:$0xff]  ;;  %v7241_v9 = vld [vmem:[%s13895_s0 + $0x1120] sm:$0xff] }
 0x1f8   :  { %7096 = vst [vmem:[%s13897_s2 + $0xf98] sm:$0xff] %v13063_v28  ;;  %v13483_v28 = vmul.f32 %v7200_v16, %v7199_v13  ;;  %v7242_v13 = vld [vmem:[%s13896_s1 + $0x1120] sm:$0xff]  ;;  %v7244_v16 = vld [vmem:[%s13895_s0 + $0x1128] sm:$0xff] }
 0x1f9   :  { %7099 = vst [vmem:[%s13897_s2 + $0xfa0] sm:$0xff] %v13075_v63  ;;  %v13495_v63 = vmul.f32 %v7203_v20, %v7202_v17  ;;  %v7245_v17 = vld [vmem:[%s13896_s1 + $0x1128] sm:$0xff]  ;;  %v7247_v20 = vld [vmem:[%s13895_s0 + $0x1130] sm:$0xff] }
 0x1fa   :  { %7102 = vst [vmem:[%s13897_s2 + $0xfa8] sm:$0xff] %v13087_v32  ;;  %v13507_v32 = vmul.f32 %v7206_v25, %v7205_v21  ;;  %v7248_v21 = vld [vmem:[%s13896_s1 + $0x1130] sm:$0xff]  ;;  %v7250_v25 = vld [vmem:[%s13895_s0 + $0x1138] sm:$0xff] }
 0x1fb   :  { %7105 = vst [vmem:[%s13897_s2 + $0xfb0] sm:$0xff] %v13099_v33  ;;  %v13519_v33 = vmul.f32 %v7209_v27, %v7208_v26  ;;  %v7251_v26 = vld [vmem:[%s13896_s1 + $0x1138] sm:$0xff]  ;;  %v7253_v27 = vld [vmem:[%s13895_s0 + $0x1140] sm:$0xff] }
 0x1fc   :  { %7108 = vst [vmem:[%s13897_s2 + $0xfb8] sm:$0xff] %v13111_v11  ;;  %v13531_v11 = vmul.f32 %v7212_v31, %v7211_v30  ;;  %v7254_v30 = vld [vmem:[%s13896_s1 + $0x1140] sm:$0xff]  ;;  %v7256_v31 = vld [vmem:[%s13895_s0 + $0x1148] sm:$0xff] }
 0x1fd   :  { %7111 = vst [vmem:[%s13897_s2 + $0xfc0] sm:$0xff] %v13123_v37  ;;  %v13543_v37 = vmul.f32 %v7215_v36, %v7214_v34  ;;  %v7257_v34 = vld [vmem:[%s13896_s1 + $0x1148] sm:$0xff]  ;;  %v7259_v36 = vld [vmem:[%s13895_s0 + $0x1150] sm:$0xff] }
 0x1fe   :  { %7114 = vst [vmem:[%s13897_s2 + $0xfc8] sm:$0xff] %v13135_v41  ;;  %v13555_v41 = vmul.f32 %v7218_v40, %v7217_v38  ;;  %v7260_v38 = vld [vmem:[%s13896_s1 + $0x1150] sm:$0xff]  ;;  %v7262_v40 = vld [vmem:[%s13895_s0 + $0x1158] sm:$0xff] }
 0x1ff   :  { %7117 = vst [vmem:[%s13897_s2 + $0xfd0] sm:$0xff] %v13147_v22  ;;  %v13567_v22 = vmul.f32 %v7221_v44, %v7220_v43  ;;  %v7263_v43 = vld [vmem:[%s13896_s1 + $0x1158] sm:$0xff]  ;;  %v7265_v44 = vld [vmem:[%s13895_s0 + $0x1160] sm:$0xff] }
 0x200   :  { %7120 = vst [vmem:[%s13897_s2 + $0xfd8] sm:$0xff] %v13159_v42  ;;  %v13579_v42 = vmul.f32 %v7224_v48, %v7223_v45  ;;  %v7266_v45 = vld [vmem:[%s13896_s1 + $0x1160] sm:$0xff]  ;;  %v7268_v48 = vld [vmem:[%s13895_s0 + $0x1168] sm:$0xff] }
 0x201   :  { %7123 = vst [vmem:[%s13897_s2 + $0xfe0] sm:$0xff] %v13171_v46  ;;  %v13591_v46 = vmul.f32 %v7227_v54, %v7226_v53  ;;  %v7269_v53 = vld [vmem:[%s13896_s1 + $0x1168] sm:$0xff]  ;;  %v7271_v54 = vld [vmem:[%s13895_s0 + $0x1170] sm:$0xff] }
 0x202   :  { %7126 = vst [vmem:[%s13897_s2 + $0xfe8] sm:$0xff] %v13183_v35  ;;  %v13603_v35 = vmul.f32 %v7230_v57, %v7229_v55  ;;  %v7272_v55 = vld [vmem:[%s13896_s1 + $0x1170] sm:$0xff]  ;;  %v7274_v57 = vld [vmem:[%s13895_s0 + $0x1178] sm:$0xff] }
 0x203   :  { %7129 = vst [vmem:[%s13897_s2 + $0xff0] sm:$0xff] %v13195_v50  ;;  %v13615_v50 = vmul.f32 %v7233_v0, %v7232_v58  ;;  %v7275_v58 = vld [vmem:[%s13896_s1 + $0x1178] sm:$0xff] }
 0x204   :  { %7132 = vst [vmem:[%s13897_s2 + $0xff8] sm:$0xff] %v13207_v51  ;;  %v13627_v51 = vmul.f32 %v7236_v3, %v7235_v2 }
 0x205   :  { %7135 = vst [vmem:[%s13897_s2 + $0x1000] sm:$0xff] %v13219_v47  ;;  %v13639_v47 = vmul.f32 %v7239_v7, %v7238_v4 }
 0x206   :  { %7138 = vst [vmem:[%s13897_s2 + $0x1008] sm:$0xff] %v13231_v52  ;;  %v13651_v52 = vmul.f32 %v7242_v13, %v7241_v9 }
 0x207   :  { %7141 = vst [vmem:[%s13897_s2 + $0x1010] sm:$0xff] %v13243_v56  ;;  %v13663_v56 = vmul.f32 %v7245_v17, %v7244_v16 }
 0x208   :  { %7144 = vst [vmem:[%s13897_s2 + $0x1018] sm:$0xff] %v13255_v59  ;;  %v5506_v59 = vmul.f32 %v7248_v21, %v7247_v20 }
 0x209   :  { %7147 = vst [vmem:[%s13897_s2 + $0x1020] sm:$0xff] %v13267_v62  ;;  %v5516_v62 = vmul.f32 %v7251_v26, %v7250_v25 }
 0x20a   :  { %7150 = vst [vmem:[%s13897_s2 + $0x1028] sm:$0xff] %v13279_v60  ;;  %v5526_v60 = vmul.f32 %v7254_v30, %v7253_v27 }
 0x20b   :  { %7153 = vst [vmem:[%s13897_s2 + $0x1030] sm:$0xff] %v13291_v12  ;;  %v5536_v12 = vmul.f32 %v7257_v34, %v7256_v31 }
 0x20c   :  { %7156 = vst [vmem:[%s13897_s2 + $0x1038] sm:$0xff] %v13303_v61  ;;  %v5546_v61 = vmul.f32 %v7260_v38, %v7259_v36 }
 0x20d   :  { %7159 = vst [vmem:[%s13897_s2 + $0x1040] sm:$0xff] %v13315_v8  ;;  %v5556_v8 = vmul.f32 %v7263_v43, %v7262_v40 }
 0x20e   :  { %7162 = vst [vmem:[%s13897_s2 + $0x1048] sm:$0xff] %v13327_v1  ;;  %v5566_v1 = vmul.f32 %v7266_v45, %v7265_v44 }
 0x20f   :  { %7165 = vst [vmem:[%s13897_s2 + $0x1050] sm:$0xff] %v13339_v5  ;;  %v5576_v5 = vmul.f32 %v7269_v53, %v7268_v48 }
 0x210   :  { %7168 = vst [vmem:[%s13897_s2 + $0x1058] sm:$0xff] %v13351_v18  ;;  %v5586_v18 = vmul.f32 %v7272_v55, %v7271_v54 }
 0x211   :  { %7171 = vst [vmem:[%s13897_s2 + $0x1060] sm:$0xff] %v13363_v6  ;;  %v5596_v6 = vmul.f32 %v7275_v58, %v7274_v57 }
 0x212   :  { %7174 = vst [vmem:[%s13897_s2 + $0x1068] sm:$0xff] %v13375_v10 }
 0x213   :  { %7177 = vst [vmem:[%s13897_s2 + $0x1070] sm:$0xff] %v13387_v29 }
 0x214   :  { %7180 = vst [vmem:[%s13897_s2 + $0x1078] sm:$0xff] %v13399_v14 }
 0x215   :  { %7183 = vst [vmem:[%s13897_s2 + $0x1080] sm:$0xff] %v13411_v15 }
 0x216   :  { %7186 = vst [vmem:[%s13897_s2 + $0x1088] sm:$0xff] %v13423_v39 }
 0x217   :  { %7189 = vst [vmem:[%s13897_s2 + $0x1090] sm:$0xff] %v13435_v19 }
 0x218   :  { %7192 = vst [vmem:[%s13897_s2 + $0x1098] sm:$0xff] %v13447_v23 }
 0x219   :  { %7195 = vst [vmem:[%s13897_s2 + $0x10a0] sm:$0xff] %v13459_v49 }
 0x21a   :  { %7198 = vst [vmem:[%s13897_s2 + $0x10a8] sm:$0xff] %v13471_v24 }
 0x21b   :  { %7201 = vst [vmem:[%s13897_s2 + $0x10b0] sm:$0xff] %v13483_v28 }
 0x21c   :  { %7204 = vst [vmem:[%s13897_s2 + $0x10b8] sm:$0xff] %v13495_v63 }
 0x21d   :  { %7207 = vst [vmem:[%s13897_s2 + $0x10c0] sm:$0xff] %v13507_v32 }
 0x21e   :  { %7210 = vst [vmem:[%s13897_s2 + $0x10c8] sm:$0xff] %v13519_v33 }
 0x21f   :  { %7213 = vst [vmem:[%s13897_s2 + $0x10d0] sm:$0xff] %v13531_v11 }
 0x220   :  { %7216 = vst [vmem:[%s13897_s2 + $0x10d8] sm:$0xff] %v13543_v37 }
 0x221   :  { %7219 = vst [vmem:[%s13897_s2 + $0x10e0] sm:$0xff] %v13555_v41 }
 0x222   :  { %7222 = vst [vmem:[%s13897_s2 + $0x10e8] sm:$0xff] %v13567_v22 }
 0x223   :  { %7225 = vst [vmem:[%s13897_s2 + $0x10f0] sm:$0xff] %v13579_v42 }
 0x224   :  { %7228 = vst [vmem:[%s13897_s2 + $0x10f8] sm:$0xff] %v13591_v46 }
 0x225   :  { %7231 = vst [vmem:[%s13897_s2 + $0x1100] sm:$0xff] %v13603_v35 }
 0x226   :  { %7234 = vst [vmem:[%s13897_s2 + $0x1108] sm:$0xff] %v13615_v50 }
 0x227   :  { %7237 = vst [vmem:[%s13897_s2 + $0x1110] sm:$0xff] %v13627_v51 }
 0x228   :  { %7240 = vst [vmem:[%s13897_s2 + $0x1118] sm:$0xff] %v13639_v47 }
 0x229   :  { %7243 = vst [vmem:[%s13897_s2 + $0x1120] sm:$0xff] %v13651_v52 }
 0x22a   :  { %7246 = vst [vmem:[%s13897_s2 + $0x1128] sm:$0xff] %v13663_v56 }
 0x22b   :  { %7249 = vst [vmem:[%s13897_s2 + $0x1130] sm:$0xff] %v5506_v59 }
 0x22c   :  { %7252 = vst [vmem:[%s13897_s2 + $0x1138] sm:$0xff] %v5516_v62 }
 0x22d   :  { %7255 = vst [vmem:[%s13897_s2 + $0x1140] sm:$0xff] %v5526_v60 }
 0x22e   :  { %7258 = vst [vmem:[%s13897_s2 + $0x1148] sm:$0xff] %v5536_v12 }
 0x22f   :  { %7261 = vst [vmem:[%s13897_s2 + $0x1150] sm:$0xff] %v5546_v61 }
 0x230   :  { %7264 = vst [vmem:[%s13897_s2 + $0x1158] sm:$0xff] %v5556_v8 }
 0x231   :  { %7267 = vst [vmem:[%s13897_s2 + $0x1160] sm:$0xff] %v5566_v1 }
 0x232   :  { %7270 = vst [vmem:[%s13897_s2 + $0x1168] sm:$0xff] %v5576_v5 }
 0x233   :  { %7273 = vst [vmem:[%s13897_s2 + $0x1170] sm:$0xff] %v5586_v18 }
 0x234   :  { %7276 = vst [vmem:[%s13897_s2 + $0x1178] sm:$0xff] %v5596_v6 }

// kernel: reverse
= control target key start
LH: loop header
LB: loop body
LE: loop exit
PB: predicated region body
PF: predicated region fallthrough
CT: control target
= control target key end

     0   :  { %v2_v0 = vlaneseq  ;;  %s327_s0 = inlined_call_operand.vmem [shape: bf16[4,256], index: 0, kind: input, shape index: {}]   ;;  %s328_s1 = inlined_call_operand.vmem [shape: bf16[4,256], index: 1, kind: output, shape index: {}]  }
   0x2   :  { %v3_v1 = vsub.s32 127, %v2_v0 }
   0x4   :  { %4 = vset.pattern.permute.xlu0 %v3_v1 }
   0x5   :  { %s287_s6 = smov 0   ;;  %s289_s7 = smov 0  }
   0x6   :  { %s291_s8 = smov 0  }
   0x7 LB: > { %s217_s9 = sadd.s32 4294967295, %s275_s8   ;;  %s19_s10 = sadd.s32 1, %s271_s7  ;;  %s275_s8 = sphi %s291_s8, %s10_s8   ;;  %s271_s7 = sphi %s289_s7, %s330_s7   ;;  %s267_s6 = sphi %s287_s6, %s329_s6  }
   0x8   : > { %p20_p0 = scmp.ge.s32.totalorder %s19_s10, 2  ;;  %p219_p1 = scmp.ge.s32.totalorder %s275_s8, 2 }
   0x9   : > { %s38_s11 = sand.u32 (!%p219_p1), 1, %s275_s8   ;;  %s41_s12 = ssub.s32 (!%p219_p1), 1, %s271_s7 }
   0xa   : > { %s332_s10 = smov (%p20_p0, %s19_s10), 0  ;;  %36 = sbr.rel (%p219_p1) target bundleno = 17 (0x11), region = 16 }
   0xb   : > { %s220_s13 = sshll.u32 (!%p219_p1), %s38_s11, 1  ;;  %s221_s14 = sshll.u32 (!%p219_p1), %s41_s12, 1 }
   0xc   : > { %s45_s17 = scalar_lea.vmem (!%p219_p1), %s327_s0, %s221_s14  ;;  %s40_s18 = scalar_lea.vmem (!%p219_p1), [#allocation1], %s220_s13 }
   0xf   : > { %v62_v2 = vld [vmem:[%s45_s17] sm:$0x3] }
  0x10   : > { %63 = vst [vmem:[%s40_s18] sm:$0x3] %v62_v2 }
  0x11 PF: > { %p222_p2 = scmp.ge.s32.totalorder %s275_s8, 1  ;;  %p80_p3 = scmp.lt.s32.totalorder %s275_s8, 3 }
  0x13   : > { %p81_p4 = pnand %p222_p2, %p80_p3 }
  0x14   : > { %s91_s19 = sand.u32 (!%p81_p4), 1, %s217_s9   ;;  %s226_s23 = sshll.u32 (!%p81_p4), %s267_s6, 1 }
  0x15   : > { %84 = sbr.rel (%p81_p4) target bundleno = 171 (0xab), region = 50  ;;  %s223_s20 = sshll.u32 (!%p81_p4), %s91_s19, 1 }
  0x16   : > { %s93_s21 = scalar_lea.vmem (!%p81_p4), [#allocation1], %s223_s20  ;;  %s97_s22 = scalar_lea.vmem (!%p81_p4), [#allocation3], %s223_s20 }
  0x17   : > { %s132_s26 = scalar_lea.vmem (!%p81_p4), %s328_s1, %s226_s23 }
  0x1a   : > { %v109_v3 = vld [vmem:[%s93_s21] sm:$0x3] }
  0x1b   : > { %v110_v4 = vunpack.c.l.bf16 %v109_v3 }
  0x1d   : > { %112 = vst [vmem:[#allocation0] sm:$0xf] %v110_v4 }
  0x24   : > { %v114_v5 = vld [vmem:[#allocation0] sm:$0xff] }
  0x25   : > { %115 = vperm.xlu0 %4, %v114_v5  }
  0x97   : > { %v116_v6 = vpop.permute.xlu0 %115 }
  0x98   : > { %117 = vst [vmem:[#allocation2] sm:$0xff] %v116_v6 }
  0x9f   : > { %v120_v7 = vld [vmem:[#allocation2] sm:$0xf] }
  0xa0   : > { %v121_v8 = vpack.c.bf16 0.0, %v120_v7 }
  0xa2   : > { %124 = vst [vmem:[%s97_s22] sm:$0x3] %v121_v8 }
  0xa9   : > { %v149_v9 = vld [vmem:[%s97_s22] sm:$0x3] }
  0xaa   : > { %150 = vst [vmem:[%s132_s26] sm:$0x3] %v149_v9 }
  0xab PF: > { %s10_s8 = sadd.s32 1, %s275_s8   ;;  %s329_s6 = smov %s271_s7 }
  0xac   : > { %p7_p5 = scmp.ge.s32.totalorder %s10_s8, 4   ;;  %s330_s7 = smov %s332_s10 }
  0xae   :  { %9 = sbr.rel (!%p7_p5) target bundleno = 7 (0x7), region = 110 }

// kernel: nda_loss.1
= control target key start
LH: loop header
LB: loop body
LE: loop exit
PB: predicated region body
PF: predicated region fallthrough
CT: control target
= control target key end

     0   :  { %s2940_s15 = smov 0   ;;  %s2942_s16 = smov 0   ;;  %s4164_s0 = inlined_call_operand.vmem [shape: bf16[2,1,48,384], index: 0, kind: input, shape index: {}]   ;;  %s4165_s1 = inlined_call_operand.vmem [shape: bf16[384,512], index: 1, kind: input, shape index: {}]   ;;  %s4166_s2 = inlined_call_operand.vmem [shape: bf16[256,128], index: 2, kind: input, shape index: {}]   ;;  %s4167_s3 = inlined_call_operand.vmem [shape: f32[2,16,1], index: 3, kind: input, shape index: {}]   ;;  %s4168_s4 = inlined_call_operand.vmem [shape: f32[2,8,128], index: 4, kind: output, shape index: {}]  }
   0x1   :  { %s2944_s17 = smov 0  }
   0x2 LB: > { %s26_s18 = sadd.s32 1, %s2905_s16  ;;  %p2173_p0 = scmp.ge.s32.totalorder %s2909_s17, 1  ;;  %s2909_s17 = sphi %s2944_s17, %s14_s17   ;;  %s2905_s16 = sphi %s2942_s16, %s4170_s16   ;;  %s2901_s15 = sphi %s2940_s15, %s4169_s15  }
   0x3   : > { %p28_p1 = scmp.ge.s32.totalorder %s26_s18, 2  ;;  %p197_p2 = scmp.lt.s32.totalorder %s2909_s17, 3 }
   0x5   : > { %s4172_s18 = smov (%p28_p1, %s26_s18), 0  ;;  %p198_p3 = pnand %p2173_p0, %p197_p2 }
   0x6   : > { %p235_p4 = scmp.lt.s32.totalorder (!%p198_p3), %s2901_s15, 1 }
   0x7   : > { %201 = sbr.rel (%p198_p3) target bundleno = 596 (0x254), region = 36 }
   0xc   : > { %v2328_v0 = vld [vmem:[%s4165_s1 + $0xe0] sm:$0xf]  ;;  %v2708_v1 = vld [vmem:[%s4165_s1 + $0xec] sm:$0xf0]  ;;  %s4174_s15 = smov (!%p235_p4, %s2901_s15), 1 }
   0xd   : > { %v2456_v2 = vld [vmem:[%s4165_s1 + $0x1e0] sm:$0xf]  ;;  %v2329_v3 = vor.u32 %v2708_v1, %v2328_v0  ;;  %v2740_v4 = vld [vmem:[%s4165_s1 + $0x1ec] sm:$0xf0]  ;;  %s2806_s23 = smul.u32 72, %s4174_s15  ;;  %s2668_s6 = sshll.u32 %s4174_s15, 4 }
   0xe   : > { %v2312_v5 = vld [vmem:[%s4165_s1 + $0xc0] sm:$0xf]  ;;  %v2704_v6 = vld [vmem:[%s4165_s1 + $0xcc] sm:$0xf0]  ;;  %v2457_v7 = vor.u32 %v2740_v4, %v2456_v2  ;;  %v2706_v48 = vld [vmem:[%s4165_s1 + $0xe4] sm:$0xf]  ;;  %s252_s9 = scalar_lea.vmem %s4167_s3, %s2668_s6 }
   0xf   : > { %v2440_v8 = vld [vmem:[%s4165_s1 + $0x1c0] sm:$0xf]  ;;  %v2736_v9 = vld [vmem:[%s4165_s1 + $0x1cc] sm:$0xf0]  ;;  %2790 = vmatpush.bf16.msra.mxu2 %v2329_v3  ;;  %899 = vmatpush.bf16.msra.mxu0 %v2329_v3  ;;  %v2313_v10 = vor.u32 %v2704_v6, %v2312_v5  ;;  %s3055_s10 = scalar_lea.vmem %s4164_s0, %s2806_s23  ;;  %v2330_v49 = vld [vmem:[%s4165_s1 + $0xf0] sm:$0xf0] }
  0x10   : > { %2798 = vmatpush.bf16.msra.mxu3 %v2457_v7  ;;  %v2441_v11 = vor.u32 %v2736_v9, %v2440_v8  ;;  %923 = vmatpush.bf16.msra.mxu1 %v2457_v7  ;;  %v2296_v12 = vld [vmem:[%s4165_s1 + $0xa0] sm:$0xf]  ;;  %v2700_v13 = vld [vmem:[%s4165_s1 + $0xac] sm:$0xf0]  ;;  %v2738_v51 = vld [vmem:[%s4165_s1 + $0x1e4] sm:$0xf]  ;;  %v2333_v63 = vor.u32 %v2706_v48, %v2330_v49 }
  0x11   : > { %v2424_v14 = vld [vmem:[%s4165_s1 + $0x1a0] sm:$0xf]  ;;  %v2732_v15 = vld [vmem:[%s4165_s1 + $0x1ac] sm:$0xf0]  ;;  %v2297_v16 = vor.u32 %v2700_v13, %v2296_v12  ;;  %v2670_v55 = vld [vmem:[%s3055_s10 + $0x8] sm:$0xf0] }
  0x12   : > { %v2425_v17 = vor.u32 %v2732_v15, %v2424_v14  ;;  %v2280_v18 = vld [vmem:[%s4165_s1 + $0x80] sm:$0xf]  ;;  %v2696_v19 = vld [vmem:[%s4165_s1 + $0x8c] sm:$0xf0]  ;;  %v2676_v57 = vld [vmem:[%s3055_s10 + $0x38] sm:$0xf0] }
  0x13   : > { %2791 = vmatpush.bf16.msra.mxu2 %v2313_v10  ;;  %900 = vmatpush.bf16.msra.mxu0 %v2313_v10  ;;  %v2408_v20 = vld [vmem:[%s4165_s1 + $0x180] sm:$0xf]  ;;  %v2728_v21 = vld [vmem:[%s4165_s1 + $0x18c] sm:$0xf0]  ;;  %v2281_v22 = vor.u32 %v2696_v19, %v2280_v18  ;;  %v2458_v60 = vld [vmem:[%s4165_s1 + $0x1f0] sm:$0xf0] }
  0x14   : > { %2799 = vmatpush.bf16.msra.mxu3 %v2441_v11  ;;  %924 = vmatpush.bf16.msra.mxu1 %v2441_v11  ;;  %v2409_v23 = vor.u32 %v2728_v21, %v2408_v20  ;;  %v2264_v24 = vld [vmem:[%s4165_s1 + $0x60] sm:$0xf]  ;;  %v2692_v25 = vld [vmem:[%s4165_s1 + $0x6c] sm:$0xf0]  ;;  %v2675_v61 = vld [vmem:[%s3055_s10 + $0x34] sm:$0xf]  ;;  %v2461_v8 = vor.u32 %v2738_v51, %v2458_v60 }
  0x15   : > { %v2392_v26 = vld [vmem:[%s4165_s1 + $0x160] sm:$0xf]  ;;  %v2724_v27 = vld [vmem:[%s4165_s1 + $0x16c] sm:$0xf0]  ;;  %v2265_v28 = vor.u32 %v2692_v25, %v2264_v24  ;;  %v2702_v0 = vld [vmem:[%s4165_s1 + $0xc4] sm:$0xf] }
  0x16   : > { %v2393_v29 = vor.u32 %v2724_v27, %v2392_v26  ;;  %v2248_v30 = vld [vmem:[%s4165_s1 + $0x40] sm:$0xf]  ;;  %v2688_v31 = vld [vmem:[%s4165_s1 + $0x4c] sm:$0xf0]  ;;  %v2669_v1 = vld [vmem:[%s3055_s10 + $0x4] sm:$0xf] }
  0x17   : > { %2792 = vmatpush.bf16.msra.mxu2 %v2297_v16  ;;  %901 = vmatpush.bf16.msra.mxu0 %v2297_v16  ;;  %v2376_v32 = vld [vmem:[%s4165_s1 + $0x140] sm:$0xf]  ;;  %v2720_v33 = vld [vmem:[%s4165_s1 + $0x14c] sm:$0xf0]  ;;  %v2249_v34 = vor.u32 %v2688_v31, %v2248_v30  ;;  %v2314_v3 = vld [vmem:[%s4165_s1 + $0xd0] sm:$0xf0] }
  0x18   : > { %2800 = vmatpush.bf16.msra.mxu3 %v2425_v17  ;;  %925 = vmatpush.bf16.msra.mxu1 %v2425_v17  ;;  %v2377_v35 = vor.u32 %v2720_v33, %v2376_v32  ;;  %v2232_v36 = vld [vmem:[%s4165_s1 + $0x20] sm:$0xf]  ;;  %v2684_v37 = vld [vmem:[%s4165_s1 + $0x2c] sm:$0xf0]  ;;  %v2770_v6 = vld [vmem:[%s4165_s1 + $0x2e4] sm:$0xf]  ;;  %v2317_v14 = vor.u32 %v2702_v0, %v2314_v3 }
  0x19   : > { %v2360_v38 = vld [vmem:[%s4165_s1 + $0x120] sm:$0xf]  ;;  %v2716_v39 = vld [vmem:[%s4165_s1 + $0x12c] sm:$0xf0]  ;;  %v2233_v40 = vor.u32 %v2684_v37, %v2232_v36  ;;  %v2586_v7 = vld [vmem:[%s4165_s1 + $0x2f0] sm:$0xf0] }
  0x1a   : > { %v2216_v41 = vld [vmem:[%s4165_s1] sm:$0xf]  ;;  %v2361_v42 = vor.u32 %v2716_v39, %v2360_v38  ;;  %v2680_v43 = vld [vmem:[%s4165_s1 + $0xc] sm:$0xf0]  ;;  %v2734_v12 = vld [vmem:[%s4165_s1 + $0x1c4] sm:$0xf]  ;;  %v2589_v18 = vor.u32 %v2770_v6, %v2586_v7 }
  0x1b   : > { %2793 = vmatpush.bf16.msra.mxu2 %v2281_v22  ;;  %902 = vmatpush.bf16.msra.mxu0 %v2281_v22  ;;  %v2344_v44 = vld [vmem:[%s4165_s1 + $0x100] sm:$0xf]  ;;  %v2712_v45 = vld [vmem:[%s4165_s1 + $0x10c] sm:$0xf0]  ;;  %v2217_v52 = vor.u32 %v2680_v43, %v2216_v41  ;;  %v2442_v13 = vld [vmem:[%s4165_s1 + $0x1d0] sm:$0xf0] }
  0x1c   : > { %2801 = vmatpush.bf16.msra.mxu3 %v2409_v23  ;;  %926 = vmatpush.bf16.msra.mxu1 %v2409_v23  ;;  %v2584_v46 = vld [vmem:[%s4165_s1 + $0x2e0] sm:$0xf]  ;;  %v2772_v47 = vld [vmem:[%s4165_s1 + $0x2ec] sm:$0xf0]  ;;  %v2345_v58 = vor.u32 %v2712_v45, %v2344_v44  ;;  %v2698_v17 = vld [vmem:[%s4165_s1 + $0xa4] sm:$0xf]  ;;  %v2445_v22 = vor.u32 %v2734_v12, %v2442_v13 }
  0x1d   : > { %v2180_v50 = vld [vmem:[%s3055_s10] sm:$0xf]  ;;  %v2768_v54 = vld [vmem:[%s4165_s1 + $0x2cc] sm:$0xf0]  ;;  %v2585_v59 = vor.u32 %v2772_v47, %v2584_v46  ;;  %v2298_v19 = vld [vmem:[%s4165_s1 + $0xb0] sm:$0xf0] }
  0x1e   : > { %v2568_v53 = vld [vmem:[%s4165_s1 + $0x2c0] sm:$0xf]  ;;  %v2204_v56 = vld [vmem:[%s3055_s10 + $0x30] sm:$0xf]  ;;  %v3104_v4 = vor.u32 %v2670_v55, %v2180_v50  ;;  %v2766_v20 = vld [vmem:[%s4165_s1 + $0x2c4] sm:$0xf]  ;;  %v2301_v26 = vor.u32 %v2698_v17, %v2298_v19 }
  0x1f   : > { %2794 = vmatpush.bf16.msra.mxu2 %v2265_v28  ;;  %903 = vmatpush.bf16.msra.mxu0 %v2265_v28  ;;  %v2206_v62 = vld [vmem:[%s3055_s10 + $0x3c] sm:$0xf0]  ;;  %v2182_v2 = vld [vmem:[%s3055_s10 + $0xc] sm:$0xf0]  ;;  %v3106_v5 = vor.u32 %v2676_v57, %v2204_v56  ;;  %v2569_v10 = vor.u32 %v2768_v54, %v2568_v53  ;;  %v2570_v21 = vld [vmem:[%s4165_s1 + $0x2d0] sm:$0xf0] }
  0x20   : > { %2802 = vmatpush.bf16.msra.mxu3 %v2393_v29  ;;  %927 = vmatpush.bf16.msra.mxu1 %v2393_v29  ;;  %v3114_v9 = vor.u32 %v2675_v61, %v2206_v62  ;;  %v3116_v11 = vor.u32 %v2669_v1, %v2182_v2  ;;  %v2552_v15 = vld [vmem:[%s4165_s1 + $0x2a0] sm:$0xf]  ;;  %v2764_v16 = vld [vmem:[%s4165_s1 + $0x2ac] sm:$0xf0]  ;;  %v2730_v24 = vld [vmem:[%s4165_s1 + $0x1a4] sm:$0xf]  ;;  %v2573_v30 = vor.u32 %v2766_v20, %v2570_v21 }
  0x21   : > { %v2553_v23 = vor.u32 %v2764_v16, %v2552_v15  ;;  %v2426_v25 = vld [vmem:[%s4165_s1 + $0x1b0] sm:$0xf0]  ;;  %v2536_v27 = vld [vmem:[%s4165_s1 + $0x280] sm:$0xf]  ;;  %v2760_v28 = vld [vmem:[%s4165_s1 + $0x28c] sm:$0xf0] }
  0x22   : > { %v2694_v29 = vld [vmem:[%s4165_s1 + $0x84] sm:$0xf]  ;;  %v2282_v31 = vld [vmem:[%s4165_s1 + $0x90] sm:$0xf0]  ;;  %v2520_v39 = vld [vmem:[%s4165_s1 + $0x260] sm:$0xf] }
  0x23   : > { %2795 = vmatpush.bf16.msra.mxu2 %v2249_v34  ;;  %904 = vmatpush.bf16.msra.mxu0 %v2249_v34  ;;  %v2762_v32 = vld [vmem:[%s4165_s1 + $0x2a4] sm:$0xf]  ;;  %v2554_v33 = vld [vmem:[%s4165_s1 + $0x2b0] sm:$0xf0]  ;;  %v2429_v34 = vor.u32 %v2730_v24, %v2426_v25  ;;  %v2285_v38 = vor.u32 %v2694_v29, %v2282_v31  ;;  %v2504_v47 = vld [vmem:[%s4165_s1 + $0x240] sm:$0xf] }
  0x24   : > { %2803 = vmatpush.bf16.msra.mxu3 %v2377_v35  ;;  %928 = vmatpush.bf16.msra.mxu1 %v2377_v35  ;;  %v2537_v35 = vor.u32 %v2760_v28, %v2536_v27  ;;  %v2726_v36 = vld [vmem:[%s4165_s1 + $0x184] sm:$0xf]  ;;  %v2410_v37 = vld [vmem:[%s4165_s1 + $0x190] sm:$0xf0]  ;;  %v2192_v48 = vld [vmem:[%s3055_s10 + $0x18] sm:$0xf] }
  0x25   : > { %v2690_v41 = vld [vmem:[%s4165_s1 + $0x64] sm:$0xf]  ;;  %v2266_v43 = vld [vmem:[%s4165_s1 + $0x70] sm:$0xf0]  ;;  %v2413_v46 = vor.u32 %v2726_v36, %v2410_v37  ;;  %v2752_v51 = vld [vmem:[%s4165_s1 + $0x24c] sm:$0xf0] }
  0x26   : > { %v2758_v44 = vld [vmem:[%s4165_s1 + $0x284] sm:$0xf]  ;;  %v2538_v45 = vld [vmem:[%s4165_s1 + $0x290] sm:$0xf0]  ;;  %v2269_v54 = vor.u32 %v2690_v41, %v2266_v43  ;;  %v2672_v57 = vld [vmem:[%s3055_s10 + $0x1c] sm:$0xf]  ;;  %v2505_v0 = vor.u32 %v2752_v51, %v2504_v47 }
  0x27   : > { %2796 = vmatpush.bf16.msra.mxu2 %v2233_v40  ;;  %905 = vmatpush.bf16.msra.mxu0 %v2233_v40  ;;  %v2756_v40 = vld [vmem:[%s4165_s1 + $0x26c] sm:$0xf0]  ;;  %v2673_v49 = vld [vmem:[%s3055_s10 + $0x20] sm:$0xf0]  ;;  %v2394_v53 = vld [vmem:[%s4165_s1 + $0x170] sm:$0xf0]  ;;  %v2541_v56 = vor.u32 %v2758_v44, %v2538_v45 }
  0x28   : > { %2804 = vmatpush.bf16.msra.mxu3 %v2361_v42  ;;  %929 = vmatpush.bf16.msra.mxu1 %v2361_v42  ;;  %v2557_v42 = vor.u32 %v2762_v32, %v2554_v33  ;;  %v2521_v50 = vor.u32 %v2756_v40, %v2520_v39  ;;  %v2686_v55 = vld [vmem:[%s4165_s1 + $0x44] sm:$0xf]  ;;  %v3216_v60 = vor.u32 %v2673_v49, %v2192_v48  ;;  %v2522_v62 = vld [vmem:[%s4165_s1 + $0x270] sm:$0xf0]  ;;  %v2488_v7 = vld [vmem:[%s4165_s1 + $0x220] sm:$0xf] }
  0x29   : > { %v2754_v61 = vld [vmem:[%s4165_s1 + $0x264] sm:$0xf]  ;;  %v2378_v3 = vld [vmem:[%s4165_s1 + $0x150] sm:$0xf0]  ;;  %v2336_v27 = vld [vmem:[%s4165_s1 + $0xe8] sm:$0xf] }
  0x2a   : > { %v2718_v2 = vld [vmem:[%s4165_s1 + $0x144] sm:$0xf]  ;;  %v2525_v12 = vor.u32 %v2754_v61, %v2522_v62  ;;  %v2234_v13 = vld [vmem:[%s4165_s1 + $0x30] sm:$0xf0]  ;;  %v2709_v28 = vld [vmem:[%s4165_s1 + $0xf4] sm:$0xf0] }
  0x2b   : > { %2797 = vmatpush.bf16.msra.mxu2 %v2217_v52  ;;  %906 = vmatpush.bf16.msra.mxu0 %v2217_v52  ;;  %v2722_v52 = vld [vmem:[%s4165_s1 + $0x164] sm:$0xf]  ;;  %v2506_v15 = vld [vmem:[%s4165_s1 + $0x250] sm:$0xf0]  ;;  %v2381_v16 = vor.u32 %v2718_v2, %v2378_v3  ;;  %v2464_v32 = vld [vmem:[%s4165_s1 + $0x1e8] sm:$0xf]  ;;  %v2337_v39 = vor.u32 %v2709_v28, %v2336_v27 }
  0x2c   : > { %2805 = vmatpush.bf16.msra.mxu3 %v2345_v58  ;;  %930 = vmatpush.bf16.msra.mxu1 %v2345_v58  ;;  %v2194_v58 = vld [vmem:[%s3055_s10 + $0x24] sm:$0xf0]  ;;  %v2714_v19 = vld [vmem:[%s4165_s1 + $0x124] sm:$0xf]  ;;  %v2362_v20 = vld [vmem:[%s4165_s1 + $0x130] sm:$0xf0] }
  0x2d   : > { %v3224_v1 = vor.u32 %v2672_v57, %v2194_v58  ;;  %v2218_v24 = vld [vmem:[%s4165_s1 + $0x10] sm:$0xf0]  ;;  %v2746_v29 = vld [vmem:[%s4165_s1 + $0x224] sm:$0xf]  ;;  %v2741_v33 = vld [vmem:[%s4165_s1 + $0x1f4] sm:$0xf0] }
  0x2e   : > { %907 = vmatmul.bf16.vlgmr.msra.gmra.mxu0 %v3104_v4  ;;  %917 = vmatmul.bf16.vlgmr.msra.gmra.mxu2 %v3106_v5  ;;  %v2490_v31 = vld [vmem:[%s4165_s1 + $0x230] sm:$0xf0]  ;;  %v2710_v36 = vld [vmem:[%s4165_s1 + $0x104] sm:$0xf]  ;;  %v2592_v40 = vld [vmem:[%s4165_s1 + $0x2e8] sm:$0xf]  ;;  %v2465_v43 = vor.u32 %v2741_v33, %v2464_v32 }
  0x2f   : > { %947 = vmatpush.bf16.msrb.mxu2 %v2585_v59  ;;  %995 = vmatpush.bf16.msrb.mxu0 %v2461_v8  ;;  %v2250_v59 = vld [vmem:[%s4165_s1 + $0x50] sm:$0xf0]  ;;  %v2748_v8 = vld [vmem:[%s4165_s1 + $0x22c] sm:$0xf0]  ;;  %v2773_v41 = vld [vmem:[%s4165_s1 + $0x2f4] sm:$0xf0] }
  0x30   : > { %971 = vmatpush.bf16.msrb.mxu3 %v2333_v63  ;;  %931 = vmatmul.bf16.vlgmr.msra.gmra.mxu1 %v3116_v11  ;;  %v2397_v63 = vor.u32 %v2722_v52, %v2394_v53  ;;  %v2253_v6 = vor.u32 %v2686_v55, %v2250_v59  ;;  %v2489_v17 = vor.u32 %v2748_v8, %v2488_v7  ;;  %v2346_v37 = vld [vmem:[%s4165_s1 + $0x110] sm:$0xf0]  ;;  %v2320_v44 = vld [vmem:[%s4165_s1 + $0xc8] sm:$0xf]  ;;  %v2705_v45 = vld [vmem:[%s4165_s1 + $0xd4] sm:$0xf0] }
  0x31   : > { %941 = vmatmul.bf16.vlgmr.msra.gmra.mxu3 %v3114_v9  ;;  %1019 = vmatpush.bf16.msrb.mxu1 %v2589_v18  ;;  %v2472_v18 = vld [vmem:[%s4165_s1 + $0x200] sm:$0xf]  ;;  %v2349_v47 = vor.u32 %v2710_v36, %v2346_v37  ;;  %v2742_v48 = vld [vmem:[%s4165_s1 + $0x204] sm:$0xf]  ;;  %v2474_v49 = vld [vmem:[%s4165_s1 + $0x210] sm:$0xf0]  ;;  %v2593_v52 = vor.u32 %v2773_v41, %v2592_v40  ;;  %v2321_v53 = vor.u32 %v2705_v45, %v2320_v44 }
  0x32   : > { %v2737_v51 = vld [vmem:[%s4165_s1 + $0x1d4] sm:$0xf0]  ;;  %v2304_v57 = vld [vmem:[%s4165_s1 + $0xa8] sm:$0xf]  ;;  %s2177_s11 = sshll.u32 %s4174_s15, 3 }
  0x33   : > { %948 = vmatpush.bf16.msrb.mxu2 %v2569_v10  ;;  %996 = vmatpush.bf16.msrb.mxu0 %v2445_v22  ;;  %v2682_v10 = vld [vmem:[%s4165_s1 + $0x24] sm:$0xf]  ;;  %v2744_v22 = vld [vmem:[%s4165_s1 + $0x20c] sm:$0xf0]  ;;  %v2769_v55 = vld [vmem:[%s4165_s1 + $0x2d4] sm:$0xf0] }
  0x34   : > { %972 = vmatpush.bf16.msrb.mxu3 %v2317_v14  ;;  %v2750_v14 = vld [vmem:[%s4165_s1 + $0x244] sm:$0xf]  ;;  %v2237_v21 = vor.u32 %v2682_v10, %v2234_v13  ;;  %v2701_v58 = vld [vmem:[%s4165_s1 + $0xb4] sm:$0xf0]  ;;  %v2432_v61 = vld [vmem:[%s4165_s1 + $0x1a8] sm:$0xf] }
  0x35   : > { %1020 = vmatpush.bf16.msrb.mxu1 %v2573_v30  ;;  %v2509_v25 = vor.u32 %v2750_v14, %v2506_v15  ;;  %v2365_v30 = vor.u32 %v2714_v19, %v2362_v20  ;;  %v2733_v62 = vld [vmem:[%s4165_s1 + $0x1b4] sm:$0xf0]  ;;  %v2560_v2 = vld [vmem:[%s4165_s1 + $0x2a8] sm:$0xf]  ;;  %v2200_v19 = vld [vmem:[%s3055_s10 + $0x20] sm:$0xf] }
  0x36   : > { %v2765_v3 = vld [vmem:[%s4165_s1 + $0x2b4] sm:$0xf0]  ;;  %v2433_v8 = vor.u32 %v2733_v62, %v2432_v61  ;;  %v2416_v10 = vld [vmem:[%s4165_s1 + $0x188] sm:$0xf]  ;;  %v2703_v61 = vld [vmem:[%s4165_s1 + $0xcc] sm:$0xf] }
  0x37   : > { %949 = vmatpush.bf16.msrb.mxu2 %v2553_v23  ;;  %997 = vmatpush.bf16.msrb.mxu0 %v2429_v34  ;;  %v2678_v23 = vld [vmem:[%s4165_s1 + $0x4] sm:$0xf]  ;;  %v2473_v34 = vor.u32 %v2744_v22, %v2472_v18  ;;  %v2697_v7 = vld [vmem:[%s4165_s1 + $0x94] sm:$0xf0]  ;;  %v2561_v13 = vor.u32 %v2765_v3, %v2560_v2  ;;  %v2544_v15 = vld [vmem:[%s4165_s1 + $0x288] sm:$0xf] }
  0x38   : > { %973 = vmatpush.bf16.msrb.mxu3 %v2301_v26  ;;  %v2188_v26 = vld [vmem:[%s3055_s10 + $0x8] sm:$0xf]  ;;  %v2693_v18 = vld [vmem:[%s4165_s1 + $0x74] sm:$0xf0]  ;;  %v2322_v62 = vld [vmem:[%s4165_s1 + $0xd8] sm:$0xf0] }
  0x39   : > { %1021 = vmatpush.bf16.msrb.mxu1 %v2557_v42  ;;  %v2493_v42 = vor.u32 %v2746_v29, %v2490_v31  ;;  %v2400_v22 = vld [vmem:[%s4165_s1 + $0x168] sm:$0xf]  ;;  %v2757_v27 = vld [vmem:[%s4165_s1 + $0x274] sm:$0xf0] }
  0x3a   : > { %v2256_v28 = vld [vmem:[%s4165_s1 + $0x48] sm:$0xf]  ;;  %v2689_v29 = vld [vmem:[%s4165_s1 + $0x54] sm:$0xf0] }
  0x3b   : > { %950 = vmatpush.bf16.msrb.mxu2 %v2537_v35  ;;  %998 = vmatpush.bf16.msrb.mxu0 %v2413_v46  ;;  %v2671_v35 = vld [vmem:[%s3055_s10 + $0x10] sm:$0xf0]  ;;  %v2384_v32 = vld [vmem:[%s4165_s1 + $0x148] sm:$0xf]  ;;  %v2721_v33 = vld [vmem:[%s4165_s1 + $0x154] sm:$0xf0] }
  0x3c   : > { %974 = vmatpush.bf16.msrb.mxu3 %v2285_v38  ;;  %v2221_v38 = vor.u32 %v2678_v23, %v2218_v24  ;;  %v3308_v46 = vor.u32 %v2671_v35, %v2188_v26  ;;  %v2725_v23 = vld [vmem:[%s4165_s1 + $0x174] sm:$0xf0]  ;;  %v2528_v26 = vld [vmem:[%s4165_s1 + $0x268] sm:$0xf]  ;;  %v2257_v35 = vor.u32 %v2689_v29, %v2256_v28  ;;  %v2385_v40 = vor.u32 %v2721_v33, %v2384_v32  ;;  %v2306_v28 = vld [vmem:[%s4165_s1 + $0xb8] sm:$0xf0] }
  0x3d   : > { %1022 = vmatpush.bf16.msrb.mxu1 %v2541_v56  ;;  %v2477_v56 = vor.u32 %v2742_v48, %v2474_v49  ;;  %v2401_v31 = vor.u32 %v2725_v23, %v2400_v22  ;;  %v2512_v36 = vld [vmem:[%s4165_s1 + $0x248] sm:$0xf]  ;;  %v2753_v37 = vld [vmem:[%s4165_s1 + $0x254] sm:$0xf0]  ;;  %v2434_v22 = vld [vmem:[%s4165_s1 + $0x1b8] sm:$0xf0] }
  0x3e   : > { %912 = vmatmul.bf16.gmra.mxu0 %v3216_v60  ;;  %v2368_v41 = vld [vmem:[%s4165_s1 + $0x128] sm:$0xf]  ;;  %v2513_v44 = vor.u32 %v2753_v37, %v2512_v36  ;;  %v2749_v49 = vld [vmem:[%s4165_s1 + $0x234] sm:$0xf0]  ;;  %v2727_v29 = vld [vmem:[%s4165_s1 + $0x18c] sm:$0xf] }
  0x3f   : > { %951 = vmatpush.bf16.msrb.mxu2 %v2521_v50  ;;  %999 = vmatpush.bf16.msrb.mxu0 %v2397_v63  ;;  %v2448_v50 = vld [vmem:[%s4165_s1 + $0x1c8] sm:$0xf]  ;;  %v2745_v3 = vld [vmem:[%s4165_s1 + $0x214] sm:$0xf0]  ;;  %v2418_v33 = vld [vmem:[%s4165_s1 + $0x198] sm:$0xf0] }
  0x40   : > { %975 = vmatpush.bf16.msrb.mxu3 %v2269_v54  ;;  %936 = vmatmul.bf16.gmra.mxu1 %v3224_v1  ;;  %v2576_v54 = vld [vmem:[%s4165_s1 + $0x2c8] sm:$0xf]  ;;  %v2449_v59 = vor.u32 %v2737_v51, %v2448_v50  ;;  %v2707_v51 = vld [vmem:[%s4165_s1 + $0xec] sm:$0xf]  ;;  %v2546_v36 = vld [vmem:[%s4165_s1 + $0x298] sm:$0xf0] }
  0x41   : > { %1023 = vmatpush.bf16.msrb.mxu1 %v2525_v12  ;;  %v2577_v63 = vor.u32 %v2769_v55, %v2576_v54  ;;  %v2729_v12 = vld [vmem:[%s4165_s1 + $0x194] sm:$0xf0]  ;;  %v2496_v48 = vld [vmem:[%s4165_s1 + $0x228] sm:$0xf]  ;;  %v2739_v55 = vld [vmem:[%s4165_s1 + $0x1ec] sm:$0xf] }
  0x42   : > { %v2417_v20 = vor.u32 %v2729_v12, %v2416_v10  ;;  %v2352_v50 = vld [vmem:[%s4165_s1 + $0x108] sm:$0xf]  ;;  %v2713_v54 = vld [vmem:[%s4165_s1 + $0x114] sm:$0xf0]  ;;  %v2735_v10 = vld [vmem:[%s4165_s1 + $0x1cc] sm:$0xf] }
  0x43   : > { %952 = vmatpush.bf16.msrb.mxu2 %v2505_v0  ;;  %1000 = vmatpush.bf16.msrb.mxu0 %v2381_v16  ;;  %v2305_v0 = vor.u32 %v2701_v58, %v2304_v57  ;;  %v2761_v16 = vld [vmem:[%s4165_s1 + $0x294] sm:$0xf0]  ;;  %v2497_v58 = vor.u32 %v2749_v49, %v2496_v48  ;;  %v2480_v2 = vld [vmem:[%s4165_s1 + $0x208] sm:$0xf]  ;;  %v2450_v12 = vld [vmem:[%s4165_s1 + $0x1d8] sm:$0xf0] }
  0x44   : > { %976 = vmatpush.bf16.msrb.mxu3 %v2253_v6  ;;  %v2288_v6 = vld [vmem:[%s4165_s1 + $0x88] sm:$0xf]  ;;  %v2545_v24 = vor.u32 %v2761_v16, %v2544_v15  ;;  %v2481_v16 = vor.u32 %v2745_v3, %v2480_v2  ;;  %v2695_v37 = vld [vmem:[%s4165_s1 + $0x8c] sm:$0xf]  ;;  %v2530_v48 = vld [vmem:[%s4165_s1 + $0x278] sm:$0xf0] }
  0x45   : > { %1024 = vmatpush.bf16.msrb.mxu1 %v2509_v25  ;;  %v2289_v14 = vor.u32 %v2697_v7, %v2288_v6  ;;  %v2325_v7 = vor.u32 %v2703_v61, %v2322_v62  ;;  %v2370_v61 = vld [vmem:[%s4165_s1 + $0x138] sm:$0xf0]  ;;  %v2683_v3 = vld [vmem:[%s4165_s1 + $0x2c] sm:$0xf] }
  0x46   : > { %v2498_v2 = vld [vmem:[%s4165_s1 + $0x238] sm:$0xf0] }
  0x47   : > { %953 = vmatpush.bf16.msrb.mxu2 %v2489_v17  ;;  %1001 = vmatpush.bf16.msrb.mxu0 %v2365_v30  ;;  %v2272_v17 = vld [vmem:[%s4165_s1 + $0x68] sm:$0xf] }
  0x48   : > { %977 = vmatpush.bf16.msrb.mxu3 %v2237_v21  ;;  %v2674_v21 = vld [vmem:[%s3055_s10 + $0x28] sm:$0xf0]  ;;  %v2273_v25 = vor.u32 %v2693_v18, %v2272_v17  ;;  %v2453_v17 = vor.u32 %v2735_v10, %v2450_v12  ;;  %v2354_v10 = vld [vmem:[%s4165_s1 + $0x118] sm:$0xf0] }
  0x49   : > { %1025 = vmatpush.bf16.msrb.mxu1 %v2493_v42  ;;  %v3394_v30 = vor.u32 %v2674_v21, %v2200_v19  ;;  %v2717_v42 = vld [vmem:[%s4165_s1 + $0x134] sm:$0xf0]  ;;  %v2767_v18 = vld [vmem:[%s4165_s1 + $0x2cc] sm:$0xf]  ;;  %v2578_v19 = vld [vmem:[%s4165_s1 + $0x2d8] sm:$0xf0] }
  0x4a   : > { %v2731_v21 = vld [vmem:[%s4165_s1 + $0x1ac] sm:$0xf]  ;;  %v2581_v23 = vor.u32 %v2767_v18, %v2578_v19 }
  0x4b   : > { %954 = vmatpush.bf16.msrb.mxu2 %v2473_v34  ;;  %1002 = vmatpush.bf16.msrb.mxu0 %v2349_v47  ;;  %v2529_v34 = vor.u32 %v2757_v27, %v2528_v26  ;;  %v2681_v47 = vld [vmem:[%s4165_s1 + $0x14] sm:$0xf0]  ;;  %v2562_v26 = vld [vmem:[%s4165_s1 + $0x2b8] sm:$0xf0]  ;;  %v2699_v27 = vld [vmem:[%s4165_s1 + $0xac] sm:$0xf] }
  0x4c   : > { %978 = vmatpush.bf16.msrb.mxu3 %v2221_v38  ;;  %v2240_v38 = vld [vmem:[%s4165_s1 + $0x28] sm:$0xf]  ;;  %v2309_v32 = vor.u32 %v2699_v27, %v2306_v28 }
  0x4d   : > { %1026 = vmatpush.bf16.msrb.mxu1 %v2477_v56  ;;  %v2466_v56 = vld [vmem:[%s4165_s1 + $0x1f8] sm:$0xf0] }
  0x4e   : > { %955 = vmatmul.bf16.vlgmr.msrb.gmra.mxu2 %v3308_v46  ;;  %1003 = vmatmul.bf16.vlgmr.msrb.gmra.mxu0 %v3116_v11  ;;  %v2469_v6 = vor.u32 %v2739_v55, %v2466_v56  ;;  %v2514_v55 = vld [vmem:[%s4165_s1 + $0x258] sm:$0xf0]  ;;  %v2687_v56 = vld [vmem:[%s4165_s1 + $0x4c] sm:$0xf] }
  0x4f   : > { %1043 = vmatpush.bf16.msra.mxu2 %v2337_v39  ;;  %979 = vmatmul.bf16.vlgmr.msrb.gmra.mxu3 %v3104_v4  ;;  %v2685_v39 = vld [vmem:[%s4165_s1 + $0x34] sm:$0xf0] }
  0x50   : > { %1067 = vmatpush.bf16.msra.mxu3 %v2465_v43  ;;  %1091 = vmatpush.bf16.msra.mxu0 %v2593_v52  ;;  %v2224_v43 = vld [vmem:[%s4165_s1 + $0x8] sm:$0xf]  ;;  %v2241_v45 = vor.u32 %v2685_v39, %v2240_v38  ;;  %v2338_v52 = vld [vmem:[%s4165_s1 + $0xf8] sm:$0xf0] }
  0x51   : > { %1027 = vmatmul.bf16.vlgmr.msrb.gmra.mxu1 %v3308_v46  ;;  %v2341_v57 = vor.u32 %v2707_v51, %v2338_v52  ;;  %v2290_v38 = vld [vmem:[%s4165_s1 + $0x98] sm:$0xf0] }
  0x52   : > { %v2293_v39 = vor.u32 %v2695_v37, %v2290_v38  ;;  %v2386_v51 = vld [vmem:[%s4165_s1 + $0x158] sm:$0xf0] }
  0x53   : > { %1044 = vmatpush.bf16.msra.mxu2 %v2321_v53  ;;  %v2369_v53 = vor.u32 %v2717_v42, %v2368_v41  ;;  %1115 = vmatpush.bf16.msra.mxu1 %v2341_v57  ;;  %v2402_v41 = vld [vmem:[%s4165_s1 + $0x178] sm:$0xf0]  ;;  %v2691_v42 = vld [vmem:[%s4165_s1 + $0x6c] sm:$0xf] }
  0x54   : > { %1068 = vmatpush.bf16.msra.mxu3 %v2449_v59  ;;  %1092 = vmatpush.bf16.msra.mxu0 %v2577_v63  ;;  %v2771_v59 = vld [vmem:[%s4165_s1 + $0x2ec] sm:$0xf]  ;;  %v2225_v63 = vor.u32 %v2681_v47, %v2224_v43  ;;  %v2274_v43 = vld [vmem:[%s4165_s1 + $0x78] sm:$0xf0] }
  0x55   : > { %v2755_v47 = vld [vmem:[%s4165_s1 + $0x26c] sm:$0xf]  ;;  %v2277_v49 = vor.u32 %v2691_v42, %v2274_v43 }
  0x56   : > { %v2533_v52 = vor.u32 %v2755_v47, %v2530_v48 }
  0x57   : > { %1045 = vmatpush.bf16.msra.mxu2 %v2305_v0  ;;  %v2594_v0 = vld [vmem:[%s4165_s1 + $0x2f8] sm:$0xf0]  ;;  %1116 = vmatpush.bf16.msra.mxu1 %v2325_v7 }
  0x58   : > { %1069 = vmatpush.bf16.msra.mxu3 %v2433_v8  ;;  %1093 = vmatpush.bf16.msra.mxu0 %v2561_v13  ;;  %v2353_v8 = vor.u32 %v2713_v54, %v2352_v50  ;;  %v2212_v13 = vld [vmem:[%s3055_s10 + $0x38] sm:$0xf]  ;;  %v2597_v15 = vor.u32 %v2771_v59, %v2594_v0  ;;  %v2719_v50 = vld [vmem:[%s4165_s1 + $0x14c] sm:$0xf]  ;;  %v2242_v7 = vld [vmem:[%s4165_s1 + $0x38] sm:$0xf0] }
  0x59   : > { %v2751_v54 = vld [vmem:[%s4165_s1 + $0x24c] sm:$0xf]  ;;  %v2245_v12 = vor.u32 %v2683_v3, %v2242_v7 }
  0x5a   : > { %v2517_v57 = vor.u32 %v2751_v54, %v2514_v55  ;;  %v2715_v59 = vld [vmem:[%s4165_s1 + $0x12c] sm:$0xf] }
  0x5b   : > { %1046 = vmatpush.bf16.msra.mxu2 %v2289_v14  ;;  %v2677_v14 = vld [vmem:[%s3055_s10 + $0x40] sm:$0xf0]  ;;  %1117 = vmatpush.bf16.msra.mxu1 %v2309_v32  ;;  %v2747_v0 = vld [vmem:[%s4165_s1 + $0x22c] sm:$0xf]  ;;  %s257_s10 = scalar_lea.vmem %s4168_s4, %s2177_s11 }
  0x5c   : > { %1070 = vmatpush.bf16.msra.mxu3 %v2417_v20  ;;  %1094 = vmatpush.bf16.msra.mxu0 %v2545_v24  ;;  %v3486_v20 = vor.u32 %v2677_v14, %v2212_v13  ;;  %v2437_v24 = vor.u32 %v2731_v21, %v2434_v22  ;;  %v2743_v14 = vld [vmem:[%s4165_s1 + $0x20c] sm:$0xf] }
  0x5e   : > { %960 = vmatmul.bf16.gmra.mxu2 %v3394_v30  ;;  %1008 = vmatmul.bf16.gmra.mxu0 %v3224_v1 }
  0x5f   : > { %1047 = vmatpush.bf16.msra.mxu2 %v2273_v25  ;;  %984 = vmatmul.bf16.gmra.mxu3 %v3216_v60  ;;  %v2763_v25 = vld [vmem:[%s4165_s1 + $0x2ac] sm:$0xf] }
  0x60   : > { %1071 = vmatpush.bf16.msra.mxu3 %v2401_v31  ;;  %1095 = vmatpush.bf16.msra.mxu0 %v2529_v34  ;;  %v2565_v31 = vor.u32 %v2763_v25, %v2562_v26  ;;  %v2759_v34 = vld [vmem:[%s4165_s1 + $0x28c] sm:$0xf] }
  0x61   : > { %1032 = vmatmul.bf16.gmra.mxu1 %v3394_v30 }
  0x62   : > { %1118 = vmatpush.bf16.msra.mxu1 %v2293_v39 }
  0x63   : > { %1048 = vmatpush.bf16.msra.mxu2 %v2257_v35  ;;  %v2421_v35 = vor.u32 %v2727_v29, %v2418_v33 }
  0x64   : > { %1072 = vmatpush.bf16.msra.mxu3 %v2385_v40  ;;  %1096 = vmatpush.bf16.msra.mxu0 %v2513_v44  ;;  %v2723_v40 = vld [vmem:[%s4165_s1 + $0x16c] sm:$0xf]  ;;  %v2549_v44 = vor.u32 %v2759_v34, %v2546_v36 }
  0x66   : > { %1119 = vmatpush.bf16.msra.mxu1 %v2277_v49  ;;  %v2779_v49 = vld [vmem:[%s4166_s2 + $0x28] sm:$0xff] }
  0x67   : > { %1049 = vmatpush.bf16.msra.mxu2 %v2241_v45  ;;  %v2405_v45 = vor.u32 %v2723_v40, %v2402_v41  ;;  %v2781_v41 = vld [vmem:[%s4166_s2 + $0x38] sm:$0xff] }
  0x68   : > { %1073 = vmatpush.bf16.msra.mxu3 %v2369_v53  ;;  %1097 = vmatpush.bf16.msra.mxu0 %v2497_v58  ;;  %v2389_v53 = vor.u32 %v2719_v50, %v2386_v51  ;;  %v2258_v58 = vld [vmem:[%s4165_s1 + $0x58] sm:$0xf0] }
  0x69   : > { %v2261_v62 = vor.u32 %v2687_v56, %v2258_v58  ;;  %v2777_v56 = vld [vmem:[%s4166_s2 + $0x18] sm:$0xff] }
  0x6b   : > { %1050 = vmatpush.bf16.msra.mxu2 %v2225_v63  ;;  %v2373_v63 = vor.u32 %v2715_v59, %v2370_v61  ;;  %1120 = vmatpush.bf16.msra.mxu1 %v2261_v62  ;;  %v2776_v59 = vld [vmem:[%s4166_s2 + $0x10] sm:$0xff] }
  0x6c   : > { %1074 = vmatpush.bf16.msra.mxu3 %v2353_v8  ;;  %1098 = vmatpush.bf16.msra.mxu0 %v2481_v16  ;;  %v2711_v8 = vld [vmem:[%s4165_s1 + $0x10c] sm:$0xf]  ;;  %v2226_v16 = vld [vmem:[%s4165_s1 + $0x18] sm:$0xf0] }
  0x6d   : > { %v2357_v13 = vor.u32 %v2711_v8, %v2354_v10  ;;  %v2774_v10 = vld [vmem:[%s4166_s2] sm:$0xff] }
  0x6e   : > { %965 = vmatmul.bf16.gmra.mxu2 %v3486_v20  ;;  %1013 = vmatmul.bf16.gmra.mxu0 %v3114_v9 }
  0x6f   : > { %1139 = vmatpush.bf16.msrb.mxu2 %v2469_v6  ;;  %989 = vmatmul.bf16.gmra.mxu3 %v3106_v5  ;;  %v2501_v6 = vor.u32 %v2747_v0, %v2498_v2  ;;  %v2775_v2 = vld [vmem:[%s4166_s2 + $0x8] sm:$0xff] }
  0x70   : > { %1163 = vmatpush.bf16.msrb.mxu3 %v2597_v15  ;;  %v2679_v15 = vld [vmem:[%s4165_s1 + $0xc] sm:$0xf]  ;;  %1121 = vmatpush.bf16.msra.mxu1 %v2245_v12 }
  0x71   : > { %1037 = vmatmul.bf16.gmra.mxu1 %v3486_v20  ;;  %v2229_v19 = vor.u32 %v2679_v15, %v2226_v16  ;;  %1501 = vmatpush.bf16.msrb.mxu0 %v2781_v41 }
  0x73   : > { %1140 = vmatpush.bf16.msrb.mxu2 %v2453_v17  ;;  %v2482_v17 = vld [vmem:[%s4165_s1 + $0x218] sm:$0xf0] }
  0x74   : > { %1164 = vmatpush.bf16.msrb.mxu3 %v2581_v23  ;;  %v2485_v18 = vor.u32 %v2743_v14, %v2482_v17  ;;  %1122 = vmatpush.bf16.msra.mxu1 %v2229_v19 }
  0x77   : > { %1141 = vmatpush.bf16.msrb.mxu2 %v2437_v24 }
  0x78   : > { %1165 = vmatpush.bf16.msrb.mxu3 %v2565_v31 }
  0x7b   : > { %1142 = vmatpush.bf16.msrb.mxu2 %v2421_v35 }
  0x7c   : > { %1166 = vmatpush.bf16.msrb.mxu3 %v2549_v44 }
  0x7e   : > { %1051 = vmatmul.bf16.vlgmr.msra.gmra.mxu2 %v3104_v4  ;;  %1099 = vmatmul.bf16.vlgmr.msra.gmra.mxu0 %v3308_v46 }
  0x7f   : > { %1143 = vmatpush.bf16.msrb.mxu2 %v2405_v45  ;;  %1075 = vmatmul.bf16.vlgmr.msra.gmra.mxu3 %v3116_v11  ;;  %v2780_v45 = vld [vmem:[%s4166_s2 + $0x30] sm:$0xff] }
  0x80   : > { %1167 = vmatpush.bf16.msrb.mxu3 %v2533_v52  ;;  %1502 = vmatpush.bf16.msrb.mxu0 %v2780_v45  ;;  %v2778_v52 = vld [vmem:[%s4166_s2 + $0x20] sm:$0xff] }
  0x81   : > { %1123 = vmatmul.bf16.vlgmr.msra.gmra.mxu1 %v3104_v4 }
  0x83   : > { %1144 = vmatpush.bf16.msrb.mxu2 %v2389_v53 }
  0x84   : > { %1168 = vmatpush.bf16.msrb.mxu3 %v2517_v57  ;;  %1503 = vmatpush.bf16.msrb.mxu0 %v2779_v49 }
  0x87   : > { %1145 = vmatpush.bf16.msrb.mxu2 %v2373_v63 }
  0x88   : > { %1169 = vmatpush.bf16.msrb.mxu3 %v2501_v6  ;;  %1504 = vmatpush.bf16.msrb.mxu0 %v2778_v52 }
  0x8b   : > { %1146 = vmatpush.bf16.msrb.mxu2 %v2357_v13 }
  0x8c   : > { %1170 = vmatpush.bf16.msrb.mxu3 %v2485_v18  ;;  %1505 = vmatpush.bf16.msrb.mxu0 %v2777_v56 }
  0x8e   : > { %1056 = vmatmul.bf16.gmra.mxu2 %v3216_v60  ;;  %1104 = vmatmul.bf16.gmra.mxu0 %v3394_v30 }
  0x8f   : > { %1080 = vmatmul.bf16.gmra.mxu3 %v3224_v1 }
  0x90   : > { %1506 = vmatpush.bf16.msrb.mxu0 %v2776_v59  ;;  %v2787_v59 = vld [vmem:[%s4166_s2 + $0x68] sm:$0xff] }
  0x91   : > { %1128 = vmatmul.bf16.gmra.mxu1 %v3216_v60 }
  0x94   : > { %1507 = vmatpush.bf16.msrb.mxu0 %v2775_v2 }
  0x98   : > { %1508 = vmatpush.bf16.msrb.mxu0 %v2774_v10 }
  0x9e   : > { %1061 = vmatmul.bf16.gmra.mxu2 %v3106_v5  ;;  %1109 = vmatmul.bf16.gmra.mxu0 %v3486_v20 }
  0x9f   : > { %1085 = vmatmul.bf16.gmra.mxu3 %v3114_v9 }
  0xa1   : > { %1133 = vmatmul.bf16.gmra.mxu1 %v3106_v5 }
  0xab   : > { %v908_v21 = vpop.f32.mrf.mxu0 }
  0xae   : > { %1147 = vmatmul.bf16.vlgmr.msrb.gmra.mxu2 %v3116_v11  ;;  %v932_v11 = vpop.f32.mrf.mxu1 }
  0xaf   : > { %1171 = vmatmul.bf16.vlgmr.msrb.gmra.mxu3 %v3308_v46  ;;  %v933_v62 = vadd.f32 %v932_v11, %v908_v21 }
  0xb1   : > { %v918_v4 = vpop.f32.mrf.mxu2 }
  0xb3   : > { %v3614_v23 = vpop.f32.mrf.mxu0 }
  0xb4   : > { %v942_v22 = vpop.f32.mrf.mxu3 }
  0xb5   : > { %v3616_v24 = vadd.f32 %v942_v22, %v918_v4  ;;  %v2789_v22 = vld [vmem:[%s4166_s2 + $0x78] sm:$0xff] }
  0xb6   : > { %v934_v28 = vpop.f32.mrf.mxu1  ;;  %1525 = vmatpush.bf16.msrb.mxu1 %v2789_v22 }
  0xb7   : > { %v935_v13 = vadd.f32 %v934_v28, %v3614_v23 }
  0xb9   : > { %v920_v25 = vpop.f32.mrf.mxu2 }
  0xbb   : > { %v3619_v60 = vpop.f32.mrf.mxu0 }
  0xbc   : > { %v944_v26 = vpop.f32.mrf.mxu3 }
  0xbd   : > { %v3621_v27 = vadd.f32 %v944_v26, %v920_v25 }
  0xbe   : > { %1152 = vmatmul.bf16.gmra.mxu2 %v3224_v1  ;;  %v937_v33 = vpop.f32.mrf.mxu1 }
  0xbf   : > { %1176 = vmatmul.bf16.gmra.mxu3 %v3394_v30  ;;  %v938_v26 = vadd.f32 %v937_v33, %v3619_v60 }
  0xc3   : > { %v3624_v5 = vpop.f32.mrf.mxu0 }
  0xc6   : > { %v3634_v39 = vpop.f32.mrf.mxu1 }
  0xc7   : > { %v940_v45 = vadd.f32 %v3634_v39, %v3624_v5 }
  0xcb   : > { %v1004_v46 = vpop.f32.mrf.mxu0 }
  0xce   : > { %1157 = vmatmul.bf16.gmra.mxu2 %v3114_v9  ;;  %v3645_v44 = vpop.f32.mrf.mxu1 }
  0xcf   : > { %1181 = vmatmul.bf16.gmra.mxu3 %v3486_v20 }
  0xd1   : > { %v956_v29 = vpop.f32.mrf.mxu2 }
  0xd2   : > { %v980_v31 = vpop.f32.mrf.mxu3  ;;  %v957_v6 = vadd.f32 %v956_v29, %v933_v62 }
  0xd3   : > { %v3628_v32 = vadd.f32 %v1004_v46, %v980_v31  ;;  %v1006_v1 = vpop.f32.mrf.mxu0 }
  0xd4   : > { %v1187_v14 = vmul.f32 %v957_v6, %v957_v6 }
  0xd6   : > { %v3660_v54 = vpop.f32.mrf.mxu1 }
  0xd9   : > { %v958_v34 = vpop.f32.mrf.mxu2 }
  0xda   : > { %v982_v35 = vpop.f32.mrf.mxu3  ;;  %v959_v19 = vadd.f32 %v958_v34, %v935_v13 }
  0xdb   : > { %v3630_v36 = vadd.f32 %v1006_v1, %v982_v35  ;;  %v1009_v30 = vpop.f32.mrf.mxu0  ;;  %v2788_v1 = vld [vmem:[%s4166_s2 + $0x70] sm:$0xff] }
  0xdc   : > { %v1191_v11 = vmul.f32 %v959_v19, %v959_v19  ;;  %1526 = vmatpush.bf16.msrb.mxu1 %v2788_v1  ;;  %v2786_v19 = vld [vmem:[%s4166_s2 + $0x60] sm:$0xff] }
  0xde   : > { %v3672_v63 = vpop.f32.mrf.mxu1 }
  0xe0   : > { %1527 = vmatpush.bf16.msrb.mxu1 %v2787_v59 }
  0xe1   : > { %v3632_v37 = vpop.f32.mrf.mxu2 }
  0xe2   : > { %v985_v38 = vpop.f32.mrf.mxu3 }
  0xe3   : > { %v3636_v9 = vadd.f32 %v1009_v30, %v985_v38  ;;  %v1011_v40 = vpop.f32.mrf.mxu0  ;;  %v962_v30 = vadd.f32 %v3632_v37, %v938_v26 }
  0xe4   : > { %1528 = vmatpush.bf16.msrb.mxu1 %v2786_v19 }
  0xe6   : > { %v3683_v21 = vpop.f32.mrf.mxu1 }
  0xe9   : > { %v3638_v20 = vpop.f32.mrf.mxu2 }
  0xea   : > { %v987_v42 = vpop.f32.mrf.mxu3 }
  0xeb   : > { %v3643_v43 = vadd.f32 %v1011_v40, %v987_v42  ;;  %v1014_v47 = vpop.f32.mrf.mxu0 }
  0xee   : > { %v3698_v33 = vpop.f32.mrf.mxu1 }
  0xf1   : > { %v3650_v48 = vpop.f32.mrf.mxu2 }
  0xf2   : > { %v990_v50 = vpop.f32.mrf.mxu3 }
  0xf3   : > { %v3655_v51 = vadd.f32 %v1014_v47, %v990_v50  ;;  %v1016_v53 = vpop.f32.mrf.mxu0  ;;  %v1195_v47 = vmul.f32 %v962_v30, %v962_v30 }
  0xf6   : > { %v3710_v6 = vpop.f32.mrf.mxu1 }
  0xf9   : > { %v3662_v55 = vpop.f32.mrf.mxu2 }
  0xfa   : > { %v992_v57 = vpop.f32.mrf.mxu3 }
  0xfb   : > { %v3667_v58 = vadd.f32 %v1016_v53, %v992_v57  ;;  %v1100_v61 = vpop.f32.mrf.mxu0 }
 0x101   : > { %v1052_v0 = vpop.f32.mrf.mxu2 }
 0x102   : > { %v1076_v3 = vpop.f32.mrf.mxu3 }
 0x103   : > { %v1077_v7 = vadd.f32 %v1076_v3, %v1052_v0  ;;  %v1102_v12 = vpop.f32.mrf.mxu0 }
 0x105   : > { %v1101_v8 = vadd.f32 %v1100_v61, %v1077_v7  ;;  %v964_v61 = vadd.f32 %v3638_v20, %v940_v45 }
 0x107   : > { %v1189_v15 = vmul.f32 %v1101_v8, %v1101_v8  ;;  %v1199_v3 = vmul.f32 %v964_v61, %v964_v61  ;;  %v1029_v61 = vadd.f32 %v3645_v44, %v3628_v32 }
 0x109   : > { %v3681_v16 = vadd.f32 %v1189_v15, %v1187_v14  ;;  %v1054_v17 = vpop.f32.mrf.mxu2  ;;  %v1188_v32 = vmul.f32 %v1029_v61, %v1029_v61 }
 0x10a   : > { %v1078_v18 = vpop.f32.mrf.mxu3 }
 0x10b   : > { %2837 = vrsqrt.f32 %v3681_v16  ;;  %v1079_v4 = vadd.f32 %v1078_v18, %v1054_v17  ;;  %v1105_v23 = vpop.f32.mrf.mxu0  ;;  %vm1230_vm0 = vcmp.eq.f32.partialorder %v3681_v16, inf  ;;  %vm1232_vm2 = vcmp.eq.f32.partialorder %v3681_v16, 0.0 }
 0x10d   : > { %v1103_v25 = vadd.f32 %v1102_v12, %v1079_v4  ;;  %v967_v4 = vadd.f32 %v3650_v48, %v3616_v24 }
 0x10f   : > { %v1193_v46 = vmul.f32 %v1103_v25, %v1103_v25 }
 0x111   : > { %v2838_v28 = vpop.eup %2837  ;;  %v3690_v29 = vadd.f32 %v1193_v46, %v1191_v11  ;;  %v1057_v31 = vpop.f32.mrf.mxu2  ;;  %v1233_v46 = vand.u32 2147483648, %v3681_v16 }
 0x112   : > { %v1081_v34 = vpop.f32.mrf.mxu3  ;;  %v1224_v35 = vmul.f32 %v2838_v28, %v3681_v16 }
 0x113   : > { %2839 = vrsqrt.f32 %v3690_v29  ;;  %v1082_v38 = vadd.f32 %v1081_v34, %v1057_v31  ;;  %v1107_v41 = vpop.f32.mrf.mxu0  ;;  %vm1254_vm1 = vcmp.eq.f32.partialorder %v3690_v29, inf  ;;  %vm1256_vm3 = vcmp.eq.f32.partialorder %v3690_v29, 0.0  ;;  %v1124_v34 = vpop.f32.mrf.mxu1 }
 0x114   : > { %v1225_v60 = vmul.f32 %v2838_v28, %v1224_v35  ;;  %v1203_v31 = vmul.f32 %v967_v4, %v967_v4 }
 0x115   : > { %v1106_v40 = vadd.f32 %v1105_v23, %v1082_v38 }
 0x116   : > { %v1226_v42 = vmul.f32 0.5, %v1225_v60 }
 0x117   : > { %v1197_v49 = vmul.f32 %v1106_v40, %v1106_v40  ;;  %v2785_v40 = vld [vmem:[%s4166_s2 + $0x58] sm:$0xff] }
 0x118   : > { %v1227_v50 = vsub.f32 1.5, %v1226_v42  ;;  %1529 = vmatpush.bf16.msrb.mxu1 %v2785_v40 }
 0x119   : > { %v2840_v52 = vpop.eup %2839  ;;  %v3702_v53 = vadd.f32 %v1197_v49, %v1195_v47  ;;  %v1059_v37 = vpop.f32.mrf.mxu2  ;;  %v2784_v49 = vld [vmem:[%s4166_s2 + $0x50] sm:$0xff] }
 0x11a   : > { %v1083_v56 = vpop.f32.mrf.mxu3  ;;  %v1248_v57 = vmul.f32 %v2840_v52, %v3690_v29  ;;  %v1228_v5 = vmul.f32 %v2838_v28, %v1227_v50  ;;  %v1257_v28 = vand.u32 2147483648, %v3690_v29  ;;  %v969_v50 = vadd.f32 %v3662_v55, %v3621_v27  ;;  %v2783_v27 = vld [vmem:[%s4166_s2 + $0x48] sm:$0xff] }
 0x11b   : > { %v1084_v62 = vadd.f32 %v1083_v56, %v1059_v37  ;;  %2841 = vrsqrt.f32 %v3702_v53  ;;  %v1110_v8 = vpop.f32.mrf.mxu0  ;;  %vm1278_vm4 = vcmp.eq.f32.partialorder %v3702_v53, inf  ;;  %vm1280_vm5 = vcmp.eq.f32.partialorder %v3702_v53, 0.0 }
 0x11c   : > { %v1249_v39 = vmul.f32 %v2840_v52, %v1248_v57  ;;  %v1229_v10 = vmul.f32 %v1228_v5, %v3681_v16  ;;  %1530 = vmatpush.bf16.msrb.mxu1 %v2784_v49 }
 0x11d   : > { %v1108_v0 = vadd.f32 %v1107_v41, %v1084_v62  ;;  %v1207_v62 = vmul.f32 %v969_v50, %v969_v50 }
 0x11e   : > { %v1250_v2 = vmul.f32 0.5, %v1249_v39  ;;  %v1231_v25 = vsel %vm1230_vm0, %v3681_v16, %v1229_v10 }
 0x11f   : > { %v1201_v7 = vmul.f32 %v1108_v0, %v1108_v0  ;;  %v1234_v35 = vsel %vm1232_vm2, %v1233_v46, %v1231_v25 }
 0x120   : > { %v1251_v12 = vsub.f32 1.5, %v1250_v2  ;;  %1531 = vmatpush.bf16.msrb.mxu1 %v2783_v27 }
 0x121   : > { %v2842_v13 = vpop.eup %2841  ;;  %v3713_v14 = vadd.f32 %v1201_v7, %v1199_v3  ;;  %v1062_v20 = vpop.f32.mrf.mxu2 }
 0x122   : > { %v1086_v15 = vpop.f32.mrf.mxu3  ;;  %v1252_v17 = vmul.f32 %v2840_v52, %v1251_v12  ;;  %v1272_v18 = vmul.f32 %v2842_v13, %v3702_v53  ;;  %v1126_v3 = vpop.f32.mrf.mxu1 }
 0x123   : > { %v1087_v22 = vadd.f32 %v1086_v15, %v1062_v20  ;;  %2843 = vrsqrt.f32 %v3713_v14  ;;  %v1112_v47 = vpop.f32.mrf.mxu0  ;;  %vm1302_vm6 = vcmp.eq.f32.partialorder %v3713_v14, inf  ;;  %v1305_v19 = vand.u32 2147483648, %v3713_v14 }
 0x124   : > { %v1253_v23 = vmul.f32 %v1252_v17, %v3690_v29  ;;  %v1273_v26 = vmul.f32 %v2842_v13, %v1272_v18  ;;  %v1281_v18 = vand.u32 2147483648, %v3702_v53  ;;  %vm1304_vm7 = vcmp.eq.f32.partialorder %v3713_v14, 0.0 }
 0x125   : > { %v1111_v11 = vadd.f32 %v1110_v8, %v1087_v22 }
 0x126   : > { %v1255_v24 = vsel %vm1254_vm1, %v3690_v29, %v1253_v23  ;;  %v1274_v48 = vmul.f32 0.5, %v1273_v26  ;;  %v2782_v23 = vld [vmem:[%s4166_s2 + $0x40] sm:$0xff] }
 0x127   : > { %v1205_v1 = vmul.f32 %v1111_v11, %v1111_v11  ;;  %v1258_v30 = vsel %vm1256_vm3, %v1257_v28, %v1255_v24  ;;  %1532 = vmatpush.bf16.msrb.mxu1 %v2782_v23 }
 0x128   : > { %v1367_v38 = vpack.c.bf16 %v1258_v30, %v1234_v35  ;;  %v1275_v60 = vsub.f32 1.5, %v1274_v48 }
 0x129   : > { %v2844_v41 = vpop.eup %2843  ;;  %v3734_v42 = vadd.f32 %v1205_v1, %v1203_v31  ;;  %v1064_v16 = vpop.f32.mrf.mxu2  ;;  %v1031_v31 = vadd.f32 %v3660_v54, %v3630_v36 }
 0x12a   : > { %v1088_v45 = vpop.f32.mrf.mxu3  ;;  %1509 = vmatmul.bf16.vlgmr.msrb.gmra.mxu0 %v1367_v38  ;;  %v1296_v29 = vmul.f32 %v2844_v41, %v3713_v14  ;;  %v1276_v37 = vmul.f32 %v2842_v13, %v1275_v60  ;;  %v1129_v35 = vpop.f32.mrf.mxu1 }
 0x12b   : > { %v1089_v52 = vadd.f32 %v1088_v45, %v1064_v16  ;;  %2845 = vrsqrt.f32 %v3734_v42  ;;  %v1192_v40 = vmul.f32 %v1031_v31, %v1031_v31  ;;  %vm1326_vm8 = vcmp.eq.f32.partialorder %v3734_v42, inf }
 0x12c   : > { %v1297_v56 = vmul.f32 %v2844_v41, %v1296_v29  ;;  %v1277_v39 = vmul.f32 %v1276_v37, %v3702_v53  ;;  %vm1328_vm10 = vcmp.eq.f32.partialorder %v3734_v42, 0.0 }
 0x12d   : > { %v1113_v57 = vadd.f32 %v1112_v47, %v1089_v52  ;;  %v1034_v47 = vadd.f32 %v3672_v63, %v3636_v9 }
 0x12e   : > { %v1298_v59 = vmul.f32 0.5, %v1297_v56  ;;  %v1279_v20 = vsel %vm1278_vm4, %v3702_v53, %v1277_v39 }
 0x12f   : > { %v1209_v5 = vmul.f32 %v1113_v57, %v1113_v57  ;;  %v1282_v26 = vsel %vm1280_vm5, %v1281_v18, %v1279_v20  ;;  %v1036_v20 = vadd.f32 %v3683_v21, %v3643_v43 }
 0x130   : > { %v1299_v0 = vsub.f32 1.5, %v1298_v59  ;;  %v1196_v59 = vmul.f32 %v1034_v47, %v1034_v47 }
 0x131   : > { %v2846_v55 = vpop.eup %2845  ;;  %v3749_v2 = vadd.f32 %v1209_v5, %v1207_v62  ;;  %v1148_v7 = vpop.f32.mrf.mxu2  ;;  %v1329_v5 = vand.u32 2147483648, %v3734_v42 }
 0x132   : > { %v1149_v8 = vadd.f32 %v1148_v7, %v1124_v34  ;;  %v1172_v10 = vpop.f32.mrf.mxu3  ;;  %v1300_v12 = vmul.f32 %v2844_v41, %v1299_v0  ;;  %v1320_v13 = vmul.f32 %v2846_v55, %v3734_v42  ;;  %v1131_v62 = vpop.f32.mrf.mxu1 }
 0x133   : > { %2847 = vrsqrt.f32 %v3749_v2  ;;  %vm1350_vm9 = vcmp.eq.f32.partialorder %v3749_v2, inf  ;;  %v1353_v39 = vand.u32 2147483648, %v3749_v2  ;;  %vm1352_vm11 = vcmp.eq.f32.partialorder %v3749_v2, 0.0 }
 0x134   : > { %v1173_v44 = vadd.f32 %v1172_v10, %v1149_v8  ;;  %v1301_v15 = vmul.f32 %v1300_v12, %v3713_v14  ;;  %v1321_v17 = vmul.f32 %v2846_v55, %v1320_v13 }
 0x136   : > { %v1190_v4 = vmul.f32 %v1173_v44, %v1173_v44  ;;  %v1303_v22 = vsel %vm1302_vm6, %v3713_v14, %v1301_v15  ;;  %v1322_v25 = vmul.f32 0.5, %v1321_v17 }
 0x137   : > { %v1306_v11 = vsel %vm1304_vm7, %v1305_v19, %v1303_v22 }
 0x138   : > { %v3765_v46 = vadd.f32 %v1190_v4, %v1188_v32  ;;  %v1369_v28 = vpack.c.bf16 %v1306_v11, %v1282_v26  ;;  %v1323_v53 = vsub.f32 1.5, %v1322_v25  ;;  %v1200_v4 = vmul.f32 %v1036_v20, %v1036_v20 }
 0x139   : > { %v2848_v24 = vpop.eup %2847  ;;  %v1150_v48 = vpop.f32.mrf.mxu2 }
 0x13a   : > { %2849 = vrsqrt.f32 %v3765_v46  ;;  %v1151_v14 = vadd.f32 %v1150_v48, %v1126_v3  ;;  %v1174_v1 = vpop.f32.mrf.mxu3  ;;  %1514 = vmatmul.bf16.gmra.mxu0 %v1369_v28  ;;  %v1344_v34 = vmul.f32 %v2848_v24, %v3749_v2  ;;  %v1324_v38 = vmul.f32 %v2846_v55, %v1323_v53  ;;  %v1134_v25 = vpop.f32.mrf.mxu1 }
 0x13b   : > { %vm1242_vm12 = vcmp.eq.f32.partialorder %v3765_v46, inf  ;;  %vm1244_vm14 = vcmp.eq.f32.partialorder %v3765_v46, 0.0 }
 0x13c   : > { %v1175_v30 = vadd.f32 %v1174_v1, %v1151_v14  ;;  %v1345_v60 = vmul.f32 %v2848_v24, %v1344_v34  ;;  %v1325_v36 = vmul.f32 %v1324_v38, %v3734_v42 }
 0x13e   : > { %v1194_v41 = vmul.f32 %v1175_v30, %v1175_v30  ;;  %v1346_v16 = vmul.f32 0.5, %v1345_v60  ;;  %v1327_v9 = vsel %vm1326_vm8, %v3734_v42, %v1325_v36  ;;  %v1245_v30 = vand.u32 2147483648, %v3765_v46 }
 0x13f   : > { %v1330_v3 = vsel %vm1328_vm10, %v1329_v5, %v1327_v9  ;;  %vm1655_vm10 = vcmask 1045504  }
 0x140   : > { %v2850_v45 = vpop.eup %2849  ;;  %v3773_v29 = vadd.f32 %v1194_v41, %v1192_v40  ;;  %v1347_v54 = vsub.f32 1.5, %v1346_v16 }
 0x141   : > { %v1153_v49 = vpop.f32.mrf.mxu2  ;;  %v1236_v50 = vmul.f32 %v2850_v45, %v3765_v46 }
 0x142   : > { %2851 = vrsqrt.f32 %v3773_v29  ;;  %v1154_v52 = vadd.f32 %v1153_v49, %v1129_v35  ;;  %v1177_v37 = vpop.f32.mrf.mxu3  ;;  %v1348_v56 = vmul.f32 %v2848_v24, %v1347_v54  ;;  %v1039_v24 = vadd.f32 %v3698_v33, %v3655_v51  ;;  %v1136_v49 = vpop.f32.mrf.mxu1 }
 0x143   : > { %v1237_v57 = vmul.f32 %v2850_v45, %v1236_v50  ;;  %vm1266_vm13 = vcmp.eq.f32.partialorder %v3773_v29, inf  ;;  %v1269_v38 = vand.u32 2147483648, %v3773_v29  ;;  %vm1268_vm15 = vcmp.eq.f32.partialorder %v3773_v29, 0.0 }
 0x144   : > { %v1178_v61 = vadd.f32 %v1177_v37, %v1154_v52  ;;  %v1349_v63 = vmul.f32 %v1348_v56, %v3749_v2  ;;  %v1204_v60 = vmul.f32 %v1039_v24, %v1039_v24  ;;  %v1041_v52 = vadd.f32 %v3710_v6, %v3667_v58 }
 0x145   : > { %v1238_v0 = vmul.f32 0.5, %v1237_v57  ;;  %v2911_v56 = vmov 0  }
 0x146   : > { %v1198_v27 = vmul.f32 %v1178_v61, %v1178_v61  ;;  %v1351_v55 = vsel %vm1350_vm9, %v3749_v2, %v1349_v63  ;;  %2836 = vset.pattern.permute.xlu1 %v2911_v56  ;;  %2835 = vset.pattern.permute.xlu0 %v2911_v56  ;;  %v1208_v5 = vmul.f32 %v1041_v52, %v1041_v52 }
 0x147   : > { %v1354_v7 = vsel %vm1352_vm11, %v1353_v39, %v1351_v55  ;;  %v1239_v8 = vsub.f32 1.5, %v1238_v0  ;;  %v1608_v0 = vld [vmem:[%s252_s9 + $0x8] sm:$0xff]  ;;  %vm1720_vm11 = vcmask 1046528  }
 0x148   : > { %v2852_v10 = vpop.eup %2851  ;;  %v3787_v12 = vadd.f32 %v1198_v27, %v1196_v59  ;;  %v1371_v13 = vpack.c.bf16 %v1354_v7, %v1330_v3 }
 0x149   : > { %v1155_v32 = vpop.f32.mrf.mxu2  ;;  %v1260_v44 = vmul.f32 %v2852_v10, %v3773_v29  ;;  %v1240_v42 = vmul.f32 %v2850_v45, %v1239_v8  ;;  %v1964_v8 = vsub.f32 1.0, %v1608_v0 }
 0x14a   : > { %v1156_v15 = vadd.f32 %v1155_v32, %v1131_v62  ;;  %v1179_v17 = vpop.f32.mrf.mxu3  ;;  %1519 = vmatmul.bf16.gmra.mxu0 %v1371_v13  ;;  %2853 = vrsqrt.f32 %v3787_v12  ;;  %vm1290_vm0 = vcmp.eq.f32.partialorder %v3787_v12, inf  ;;  %vm1292_vm2 = vcmp.eq.f32.partialorder %v3787_v12, 0.0 }
 0x14b   : > { %v1261_v2 = vmul.f32 %v2852_v10, %v1260_v44  ;;  %v1241_v23 = vmul.f32 %v1240_v42, %v3765_v46  ;;  %v1293_v44 = vand.u32 2147483648, %v3787_v12 }
 0x14c   : > { %v1180_v18 = vadd.f32 %v1179_v17, %v1156_v15 }
 0x14d   : > { %v1262_v19 = vmul.f32 0.5, %v1261_v2  ;;  %v1243_v14 = vsel %vm1242_vm12, %v3765_v46, %v1241_v23  ;;  %vm1642_vm12 = vcmask 1041408  }
 0x14e   : > { %v1202_v22 = vmul.f32 %v1180_v18, %v1180_v18  ;;  %v1246_v41 = vsel %vm1244_vm14, %v1245_v30, %v1243_v14  ;;  %vm1684_vm14 = vcmask 1040384  }
 0x14f   : > { %v1263_v26 = vsub.f32 1.5, %v1262_v19 }
 0x150   : > { %v2854_v11 = vpop.eup %2853  ;;  %v3794_v28 = vadd.f32 %v1202_v22, %v1200_v4 }
 0x151   : > { %v1158_v43 = vpop.f32.mrf.mxu2  ;;  %v1264_v21 = vmul.f32 %v2852_v10, %v1263_v26  ;;  %v1284_v53 = vmul.f32 %v2854_v11, %v3787_v12 }
 0x152   : > { %v1159_v48 = vadd.f32 %v1158_v43, %v1134_v25  ;;  %v1182_v31 = vpop.f32.mrf.mxu3  ;;  %2855 = vrsqrt.f32 %v3794_v28  ;;  %vm1314_vm1 = vcmp.eq.f32.partialorder %v3794_v28, inf  ;;  %v1317_v20 = vand.u32 2147483648, %v3794_v28 }
 0x153   : > { %v1265_v1 = vmul.f32 %v1264_v21, %v3773_v29  ;;  %v1285_v34 = vmul.f32 %v2854_v11, %v1284_v53  ;;  %vm1316_vm3 = vcmp.eq.f32.partialorder %v3794_v28, 0.0 }
 0x154   : > { %v1183_v35 = vadd.f32 %v1182_v31, %v1159_v48 }
 0x155   : > { %v1267_v51 = vsel %vm1266_vm13, %v3773_v29, %v1265_v1  ;;  %v1286_v33 = vmul.f32 0.5, %v1285_v34  ;;  %v1607_v29 = vld [vmem:[%s252_s9] sm:$0xff]  ;;  %v2912_v34 = vmov 3.0  }
 0x156   : > { %v1206_v40 = vmul.f32 %v1183_v35, %v1183_v35  ;;  %v1270_v16 = vsel %vm1268_vm15, %v1269_v38, %v1267_v51  ;;  %v1963_v9 = vsub.f32 1.0, %v1607_v29  ;;  %1636 = vperm.xlu0 %2835, %v1607_v29  }
 0x157   : > { %v1368_v45 = vpack.c.bf16 %v1270_v16, %v1246_v41  ;;  %v1287_v47 = vsub.f32 1.5, %v1286_v33 }
 0x158   : > { %v2856_v36 = vpop.eup %2855  ;;  %v3813_v54 = vadd.f32 %v1206_v40, %v1204_v60  ;;  %2038 = vperm.xlu1 %2836, %v1963_v9  }
 0x159   : > { %v1160_v46 = vpop.f32.mrf.mxu2  ;;  %1533 = vmatmul.bf16.vlgmr.msrb.gmra.mxu1 %v1368_v45  ;;  %v1308_v50 = vmul.f32 %v2856_v36, %v3794_v28  ;;  %v1288_v59 = vmul.f32 %v2854_v11, %v1287_v47 }
 0x15a   : > { %v1161_v37 = vadd.f32 %v1160_v46, %v1136_v49  ;;  %2857 = vrsqrt.f32 %v3813_v54  ;;  %v1184_v57 = vpop.f32.mrf.mxu3  ;;  %vm1338_vm4 = vcmp.eq.f32.partialorder %v3813_v54, inf  ;;  %v1341_v53 = vand.u32 2147483648, %v3813_v54 }
 0x15b   : > { %v1309_v61 = vmul.f32 %v2856_v36, %v1308_v50  ;;  %v1289_v27 = vmul.f32 %v1288_v59, %v3787_v12  ;;  %vm1340_vm6 = vcmp.eq.f32.partialorder %v3813_v54, 0.0 }
 0x15c   : > { %v1185_v63 = vadd.f32 %v1184_v57, %v1161_v37 }
 0x15d   : > { %v1310_v62 = vmul.f32 0.5, %v1309_v61  ;;  %v1291_v10 = vsel %vm1290_vm0, %v3787_v12, %v1289_v27 }
 0x15e   : > { %v1210_v39 = vmul.f32 %v1185_v63, %v1185_v63  ;;  %1640 = vperm.xlu0 %2835, %v1608_v0   ;;  %v1294_v42 = vsel %vm1292_vm2, %v1293_v44, %v1291_v10  ;;  %vm1698_vm2 = vcmask 1042432  }
 0x15f   : > { %v1311_v58 = vsub.f32 1.5, %v1310_v62 }
 0x160   : > { %v2858_v6 = vpop.eup %2857  ;;  %v1222_v55 = vadd.f32 %v1210_v39, %v1208_v5  ;;  %2042 = vperm.xlu1 %2836, %v1964_v8  }
 0x161   : > { %v1312_v3 = vmul.f32 %v2856_v36, %v1311_v58  ;;  %v1332_v7 = vmul.f32 %v2858_v6, %v3813_v54 }
 0x162   : > { %2859 = vrsqrt.f32 %v1222_v55  ;;  %vm1362_vm5 = vcmp.eq.f32.partialorder %v1222_v55, inf  ;;  %v1365_v24 = vand.u32 2147483648, %v1222_v55  ;;  %vm1364_vm7 = vcmp.eq.f32.partialorder %v1222_v55, 0.0 }
 0x163   : > { %v1313_v13 = vmul.f32 %v1312_v3, %v3794_v28  ;;  %v1333_v32 = vmul.f32 %v2858_v6, %v1332_v7  ;;  %2861 = vrcp.f32 %v2912_v34  ;;  %v1610_v3 = vlaneseq }
 0x165   : > { %v1315_v15 = vsel %vm1314_vm1, %v3794_v28, %v1313_v13  ;;  %v1334_v17 = vmul.f32 0.5, %v1333_v32  ;;  %v1611_v44 = vshrl.u32 %v1610_v3, 7 }
 0x166   : > { %v1318_v2 = vsel %vm1316_vm3, %v1317_v20, %v1315_v15 }
 0x167   : > { %v1370_v18 = vpack.c.bf16 %v1318_v2, %v1294_v42  ;;  %v1335_v19 = vsub.f32 1.5, %v1334_v17 }
 0x168   : > { %v2860_v4 = vpop.eup %2859 }
 0x169   : > { %1538 = vmatmul.bf16.gmra.mxu1 %v1370_v18  ;;  %v1356_v22 = vmul.f32 %v2860_v4, %v1222_v55  ;;  %v1336_v25 = vmul.f32 %v2858_v6, %v1335_v19  ;;  %v2862_v30 = vpop.eup %2861 }
 0x16a   : > { %v1574_v38 = vmul.f32 3.0, %v2862_v30  ;;  %vm1578_vm8 = vweird.f32 %v2862_v30 }
 0x16b   : > { %v1357_v23 = vmul.f32 %v2860_v4, %v1356_v22  ;;  %v1337_v11 = vmul.f32 %v1336_v25, %v3813_v54  ;;  %v1612_v25 = vadd.s32 8, %v1611_v44 }
 0x16c   : > { %v1575_v51 = vsub.f32 1.0, %v1574_v38 }
 0x16d   : > { %v1358_v26 = vmul.f32 0.5, %v1357_v23  ;;  %v1339_v28 = vsel %vm1338_vm4, %v3813_v54, %v1337_v11 }
 0x16e   : > { %v1342_v31 = vsel %vm1340_vm6, %v1341_v53, %v1339_v28  ;;  %v1576_v16 = vmul.f32 %v2862_v30, %v1575_v51 }
 0x16f   : > { %v1359_v43 = vsub.f32 1.5, %v1358_v26 }
 0x170   : > { %v1577_v45 = vadd.f32 %v2862_v30, %v1576_v16 }
 0x171   : > { %v1360_v12 = vmul.f32 %v2860_v4, %v1359_v43 }
 0x172   : > { %v3835_v46 = vsel %vm1578_vm8, %v2862_v30, %v1577_v45 }
 0x173   : > { %v1361_v21 = vmul.f32 %v1360_v12, %v1222_v55 }
 0x175   : > { %v1363_v48 = vsel %vm1362_vm5, %v1222_v55, %v1361_v21  ;;  %vm1753_vm5 = vcmask 1043456  }
 0x176   : > { %v1366_v14 = vsel %vm1364_vm7, %v1365_v24, %v1363_v48  ;;  %v1674_v48 = vadd.s32 1, %v1612_v25  ;;  %vm1818_vm7 = vcmask 1044480  }
 0x177   : > { %v1372_v1 = vpack.c.bf16 %v1366_v14, %v1342_v31  ;;  %v2913_v31 = vmov 1.0  }
 0x178   : > { %v3874_v14 = vrot.slane %v2913_v31, 5  ;;  %v3878_v51 = vrot.slane %v2913_v31, 4  ;;  %vm1676_vm1 = vcmp.lt.s32.totalorder %v1674_v48, 16 }
 0x179   : > { %1543 = vmatmul.bf16.gmra.mxu1 %v1372_v1 }
 0x1a7   : > { %v1510_v35 = vpop.f32.mrf.mxu0 }
 0x1af   : > { %v1512_v33 = vpop.f32.mrf.mxu0 }
 0x1b7   : > { %v1515_v54 = vpop.f32.mrf.mxu0 }
 0x1bf   : > { %v1517_v9 = vpop.f32.mrf.mxu0 }
 0x1c7   : > { %v1520_v8 = vpop.f32.mrf.mxu0 }
 0x1ca   : > { %v3841_v62 = vpop.permute.xlu1 %2038 }
 0x1cb   : > { %v2044_v26 = vrot.slane %v3841_v62, 6 }
 0x1cf   : > { %v1522_v34 = vpop.f32.mrf.mxu0 }
 0x1d2   : > { %v3850_v32 = vpop.permute.xlu1 %2042 }
 0x1d3   : > { %v2045_v18 = vrot.slane %v3850_v32, 6 }
 0x1d5   : > { %v3870_v21 = vsel %vm1642_vm12, %v2044_v26, %v2045_v18 }
 0x1d6   : > { %v1534_v60 = vpop.f32.mrf.mxu1 }
 0x1d7   : > { %v1535_v40 = vadd.f32 %v1534_v60, %v1510_v35 }
 0x1d9   : > { %v1555_v41 = vmax.f32 %v1535_v40, 1e-30  ;;  %vm1549_vm9 = vcmp.gt.f32.partialorder %v1535_v40, 0.0 }
 0x1db   : > { %2863 = vlog2.f32 %v1555_v41 }
 0x1de   : > { %v1536_v47 = vpop.f32.mrf.mxu1 }
 0x1df   : > { %v1537_v36 = vadd.f32 %v1536_v47, %v1512_v33  ;;  %v3880_v33 = vrot.slane %v2913_v31, 3 }
 0x1e1   : > { %v2864_v49 = vpop.eup %2863  ;;  %v1556_v50 = vmax.f32 %v1537_v36, 1e-30  ;;  %vm1550_vm13 = vcmp.gt.f32.partialorder %v1537_v36, 0.0 }
 0x1e2   : > { %v1562_v29 = vmul.f32 0.6931472, %v2864_v49 }
 0x1e3   : > { %2865 = vlog2.f32 %v1556_v50 }
 0x1e4   : > { %v1580_v52 = vmul.f32 %v3835_v46, %v1562_v29 }
 0x1e6   : > { %v1586_v37 = vmul.f32 1.442695, %v1580_v52  ;;  %v1539_v56 = vpop.f32.mrf.mxu1 }
 0x1e7   : > { %v3838_v57 = vadd.f32 %v1539_v56, %v1515_v54  ;;  %v3895_v56 = vrot.slane %v2913_v31, 2 }
 0x1e8   : > { %2867 = vpow2.f32 %v1586_v37 }
 0x1e9   : > { %v2866_v59 = vpop.eup %2865  ;;  %v1557_v61 = vmax.f32 %v3838_v57, 1e-30  ;;  %vm1551_vm15 = vcmp.gt.f32.partialorder %v3838_v57, 0.0 }
 0x1ea   : > { %v1564_v63 = vmul.f32 0.6931472, %v2866_v59  ;;  %v1733_v59 = vadd.s32 2, %v1612_v25 }
 0x1eb   : > { %2869 = vlog2.f32 %v1557_v61  ;;  %v1798_v61 = vadd.s32 3, %v1612_v25 }
 0x1ec   : > { %v1581_v5 = vmul.f32 %v3835_v46, %v1564_v63  ;;  %vm1735_vm4 = vcmp.lt.s32.totalorder %v1733_v59, 16 }
 0x1ed   : > { %vm1800_vm6 = vcmp.lt.s32.totalorder %v1798_v61, 16 }
 0x1ee   : > { %v1588_v39 = vmul.f32 1.442695, %v1581_v5  ;;  %v1541_v0 = vpop.f32.mrf.mxu1  ;;  %v2868_v58 = vpop.eup %2867 }
 0x1ef   : > { %v3844_v27 = vadd.f32 %v1541_v0, %v1517_v9  ;;  %v3847_v10 = vsel %vm1549_vm9, %v2868_v58, 0.0  ;;  %v3900_v9 = vpop.permute.xlu0 %1636  ;;  %v2914_v0 = vmov 0.0  }
 0x1f0   : > { %2871 = vpow2.f32 %v1588_v39  ;;  %v1969_v42 = vrot.slane %v3847_v10, 6  ;;  %v1985_v22 = vrot.slane %v3847_v10, 7  ;;  %v2002_v28 = vrot.slane %v3847_v10, 1 }
 0x1f1   : > { %v2870_v6 = vpop.eup %2869  ;;  %v1558_v55 = vmax.f32 %v3844_v27, 1e-30  ;;  %v2019_v24 = vrot.slane %v3847_v10, 2  ;;  %vm1552_vm0 = vcmp.gt.f32.partialorder %v3844_v27, 0.0  ;;  %v3906_v58 = vsel %vm1676_vm1, 1.0, %v2914_v0 }
 0x1f2   : > { %v1566_v7 = vmul.f32 0.6931472, %v2870_v6  ;;  %v1975_v43 = vsub.f32 %v3847_v10, %v1969_v42  ;;  %v1993_v53 = vsub.f32 %v3847_v10, %v1985_v22  ;;  %v3950_v61 = vsel %vm1800_vm6, 1.0, %v2914_v0 }
 0x1f3   : > { %2873 = vlog2.f32 %v1558_v55 }
 0x1f4   : > { %v1582_v13 = vmul.f32 %v3835_v46, %v1566_v7  ;;  %v1978_v41 = vand.u32 2147483647, %v1975_v43  ;;  %v1996_v52 = vand.u32 2147483647, %v1993_v53  ;;  %v3911_v7 = vadd.s32 4, %v1612_v25 }
 0x1f6   : > { %v1590_v20 = vmul.f32 1.442695, %v1582_v13  ;;  %v1544_v15 = vpop.f32.mrf.mxu1  ;;  %v2872_v2 = vpop.eup %2871  ;;  %v1999_v44 = vadd.f32 %v1996_v52, %v1978_v41  ;;  %vm1865_vm8 = vcmp.lt.s32.totalorder %v3911_v7, 16 }
 0x1f7   : > { %v3852_v17 = vadd.f32 %v1544_v15, %v1520_v8  ;;  %v3859_v11 = vsel %vm1550_vm13, %v2872_v2, 0.0  ;;  %v1643_v15 = vrot.slane %v3900_v9, 6 }
 0x1f8   : > { %2875 = vpow2.f32 %v1590_v20  ;;  %v2003_v38 = vrot.slane %v3859_v11, 1  ;;  %v2020_v16 = vrot.slane %v3859_v11, 2  ;;  %v1970_v45 = vrot.slane %v3859_v11, 6 }
 0x1f9   : > { %v2874_v19 = vpop.eup %2873  ;;  %v1559_v4 = vmax.f32 %v3852_v17, 1e-30  ;;  %v1986_v47 = vrot.slane %v3859_v11, 7  ;;  %vm1553_vm3 = vcmp.gt.f32.partialorder %v3852_v17, 0.0 }
 0x1fa   : > { %v1568_v23 = vmul.f32 0.6931472, %v2874_v19  ;;  %v2004_v37 = vsel %vm1720_vm11, %v2002_v28, %v2003_v38  ;;  %v2021_v57 = vsel %vm1655_vm10, %v2019_v24, %v2020_v16  ;;  %v1971_v5 = vsel %vm1642_vm12, %v1969_v42, %v1970_v45 }
 0x1fb   : > { %2877 = vlog2.f32 %v1559_v4  ;;  %v1987_v39 = vsel %vm1684_vm14, %v1985_v22, %v1986_v47  ;;  %v2010_v6 = vsub.f32 %v3847_v10, %v2004_v37  ;;  %v2027_v20 = vsub.f32 %v3847_v10, %v2021_v57 }
 0x1fc   : > { %v1583_v12 = vmul.f32 %v3835_v46, %v1568_v23  ;;  %v1976_v2 = vsub.f32 %v3859_v11, %v1971_v5  ;;  %v1994_v19 = vsub.f32 %v3859_v11, %v1987_v39  ;;  %v1700_v4 = vrot.slane %v3906_v58, 5 }
 0x1fd   : > { %v2013_v27 = vand.u32 2147483647, %v2010_v6  ;;  %v2030_v28 = vand.u32 2147483647, %v2027_v20 }
 0x1fe   : > { %v2876_v1 = vpop.eup %2875  ;;  %v1592_v35 = vmul.f32 1.442695, %v1583_v12  ;;  %v1546_v30 = vpop.f32.mrf.mxu1  ;;  %v1979_v48 = vand.u32 2147483647, %v1976_v2  ;;  %v1997_v31 = vand.u32 2147483647, %v1994_v19 }
 0x1ff   : > { %v3884_v60 = vsel %vm1551_vm15, %v2876_v1, 0.0  ;;  %v3886_v40 = vadd.f32 %v1546_v30, %v1522_v34  ;;  %v3934_v30 = vsel %vm1735_vm4, 1.0, %v2914_v0 }
 0x200   : > { %2879 = vpow2.f32 %v1592_v35  ;;  %v1988_v49 = vrot.slane %v3884_v60, 7  ;;  %v2005_v50 = vrot.slane %v3884_v60, 1  ;;  %v1977_v53 = vsub.f32 %v3884_v60, %v1970_v45 }
 0x201   : > { %v2878_v36 = vpop.eup %2877  ;;  %v1560_v54 = vmax.f32 %v3886_v40, 1e-30  ;;  %v2022_v24 = vrot.slane %v3884_v60, 2  ;;  %v2000_v52 = vadd.f32 %v1997_v31, %v1979_v48  ;;  %vm1554_vm9 = vcmp.gt.f32.partialorder %v3886_v40, 0.0 }
 0x202   : > { %v1570_v29 = vmul.f32 0.6931472, %v2878_v36  ;;  %v1989_v55 = vsel %vm1684_vm14, %v1986_v47, %v1988_v49  ;;  %v2006_v3 = vsel %vm1720_vm11, %v2003_v38, %v2005_v50  ;;  %v2012_v1 = vsub.f32 %v3884_v60, %v2005_v50 }
 0x203   : > { %2881 = vlog2.f32 %v1560_v54  ;;  %v1995_v22 = vsub.f32 %v3884_v60, %v1989_v55  ;;  %v2011_v25 = vsub.f32 %v3859_v11, %v2006_v3  ;;  %v2016_v36 = vadd.f32 %v2013_v27, %v1999_v44 }
 0x204   : > { %v1584_v63 = vmul.f32 %v3835_v46, %v1570_v29  ;;  %v1980_v54 = vand.u32 2147483647, %v1977_v53  ;;  %v2023_v49 = vsel %vm1655_vm10, %v2020_v16, %v2022_v24  ;;  %v2029_v50 = vsub.f32 %v3884_v60, %v2022_v24 }
 0x205   : > { %v1998_v34 = vand.u32 2147483647, %v1995_v22  ;;  %v2014_v35 = vand.u32 2147483647, %v2011_v25  ;;  %v2015_v37 = vand.u32 2147483647, %v2012_v1  ;;  %v2028_v39 = vsub.f32 %v3859_v11, %v2023_v49 }
 0x206   : > { %v2880_v8 = vpop.eup %2879  ;;  %v1594_v13 = vmul.f32 1.442695, %v1584_v63  ;;  %v2032_v55 = vand.u32 2147483647, %v2029_v50  ;;  %v1820_v44 = vrot.slane %v3950_v61, 3 }
 0x207   : > { %v1601_v42 = vsel %vm1552_vm0, %v2880_v8, 0.0  ;;  %v2001_v59 = vadd.f32 %v1998_v34, %v1980_v54  ;;  %v2017_v16 = vadd.f32 %v2014_v35, %v2000_v52 }
 0x208   : > { %2883 = vpow2.f32 %v1594_v13  ;;  %v3923_v43 = vsub.f32 %v3847_v10, %v1601_v42  ;;  %v1701_v10 = vsel %vm1698_vm2, %v3874_v14, %v1700_v4  ;;  %v1821_v53 = vsel %vm1818_vm7, %v3880_v33, %v1820_v44 }
 0x209   : > { %v2882_v23 = vpop.eup %2881  ;;  %v2018_v2 = vadd.f32 %v2015_v37, %v2001_v59 }
 0x20a   : > { %v1572_v12 = vmul.f32 0.6931472, %v2882_v23  ;;  %v1740_v41 = vrot.slane %v3923_v43, 6  ;;  %v1685_v45 = vrot.slane %v3923_v43, 7  ;;  %v1805_v8 = vrot.slane %v3923_v43, 5 }
 0x20b   : > { %v2035_v34 = vadd.f32 %v2032_v55, %v2018_v2  ;;  %vm1622_vm13 = vcmp.gt.f32.partialorder %v3923_v43, 0.0  ;;  %v1670_v59 = vmul.f32 -0.357193, %v3923_v43 }
 0x20c   : > { %v1585_v38 = vmul.f32 %v3835_v46, %v1572_v12  ;;  %v1755_v46 = vrot.slane %v3934_v30, 4  ;;  %v1693_v63 = vsub.f32 %v3923_v43, %v1685_v45  ;;  %v1748_v17 = vsub.f32 %v3923_v43, %v1740_v41 }
 0x20d   : > { %v1813_v12 = vsub.f32 %v3923_v43, %v1805_v8 }
 0x20e   : > { %v2884_v47 = vpop.eup %2883  ;;  %v1596_v5 = vmul.f32 1.442695, %v1585_v38  ;;  %v1756_v13 = vsel %vm1753_vm5, %v3878_v51, %v1755_v46  ;;  %v1705_v20 = vmul.f32 %v3874_v14, %v1693_v63  ;;  %v1760_v23 = vmul.f32 %v3878_v51, %v1748_v17 }
 0x20f   : > { %v1602_v29 = vsel %vm1553_vm3, %v2884_v47, 0.0  ;;  %v2031_v14 = vand.u32 2147483647, %v2028_v39  ;;  %v2033_v51 = vadd.f32 %v2030_v28, %v2016_v36  ;;  %v1825_v47 = vmul.f32 %v3880_v33, %v1813_v12 }
 0x210   : > { %v3947_v57 = vsub.f32 %v3859_v11, %v1602_v29  ;;  %2885 = vpow2.f32 %v1596_v5  ;;  %v1714_v48 = vmul.f32 -0.607143, %v1705_v20  ;;  %v1763_v38 = vmul.f32 0.5, %v1760_v23 }
 0x211   : > { %v2034_v1 = vadd.f32 %v2031_v14, %v2017_v16  ;;  %v1625_v28 = vmul.f32 3.0, %v3923_v43  ;;  %v1780_v37 = vmul.f32 -0.285714, %v1760_v23  ;;  %v1870_v5 = vrot.slane %v3923_v43, 4 }
 0x212   : > { %v1741_v6 = vrot.slane %v3947_v57, 6  ;;  %v1686_v3 = vrot.slane %v3947_v57, 7  ;;  %v1806_v11 = vrot.slane %v3947_v57, 5  ;;  %v1721_v36 = vrot.slane %v1714_v48, 1 }
 0x213   : > { %v1871_v29 = vrot.slane %v3947_v57, 4  ;;  %v1769_v63 = vrot.slane %v1763_v38, 1  ;;  %v1828_v17 = vmul.f32 0.75, %v1825_v47  ;;  %v1786_v40 = vrot.slane %v1780_v37, 2 }
 0x214   : > { %v1742_v42 = vsel %vm1642_vm12, %v1740_v41, %v1741_v6  ;;  %v1687_v19 = vsel %vm1684_vm14, %v1685_v45, %v1686_v3  ;;  %v1807_v27 = vsel %vm1698_vm2, %v1805_v8, %v1806_v11  ;;  %v3993_v45 = vsel %vm1865_vm8, 1.0, %v2914_v0 }
 0x215   : > { %v1694_v22 = vsub.f32 %v3947_v57, %v1687_v19  ;;  %v1749_v25 = vsub.f32 %v3947_v57, %v1742_v42  ;;  %v1814_v7 = vsub.f32 %v3947_v57, %v1807_v27  ;;  %v1884_v8 = vrot.slane %v3993_v45, 2 }
 0x216   : > { %v2886_v49 = vpop.eup %2885  ;;  %v1872_v2 = vsel %vm1753_vm5, %v1870_v5, %v1871_v29  ;;  %v4029_v14 = vmul.f32 %v2045_v18, %v2035_v34  ;;  %v1708_v27 = vmul.f32 0.25, %v1705_v20  ;;  %v1878_v12 = vsub.f32 %v3923_v43, %v1870_v5 }
 0x217   : > { %v3983_v24 = vmul.f32 %v1701_v10, %v1694_v22  ;;  %v1761_v31 = vmul.f32 %v1756_v13, %v1749_v25  ;;  %v1826_v54 = vmul.f32 %v1821_v53, %v1814_v7  ;;  %v1603_v16 = vsel %vm1554_vm9, %v2886_v49, 0.0 }
 0x218   : > { %v1628_v13 = vsel %vm1622_vm13, %v3923_v43, %v1625_v28  ;;  %v1845_v25 = vmul.f32 0.25, %v1825_v47  ;;  %v4025_v23 = vsub.f32 %v3884_v60, %v1603_v16  ;;  %v1834_v48 = vrot.slane %v1828_v17, 2 }
 0x219   : > { %v3988_v35 = vmul.f32 -0.607143, %v3983_v24  ;;  %v3990_v41 = vmul.f32 0.5, %v1761_v31  ;;  %v3995_v10 = vmul.f32 -0.285714, %v1761_v31  ;;  %v4003_v0 = vmul.f32 0.75, %v1826_v54 }
 0x21a   : > { %v4013_v55 = vmul.f32 0.25, %v1826_v54  ;;  %v1879_v7 = vsub.f32 %v3947_v57, %v1872_v2  ;;  %v1885_v60 = vsel %vm1655_vm10, %v3895_v56, %v1884_v8  ;;  %v1631_v32 = vand.u32 2147483647, %v1628_v13 }
 0x21b   : > { %v1722_v50 = vrot.slane %v3988_v35, 1  ;;  %v1770_v52 = vrot.slane %v3990_v41, 1  ;;  %v1787_v39 = vrot.slane %v3995_v10, 2  ;;  %v1835_v22 = vrot.slane %v4003_v0, 2 }
 0x21c   : > { %v1852_v31 = vrot.slane %v4013_v55, 3  ;;  %v4043_v43 = vmul.f32 %v2044_v26, %v2033_v51  ;;  %v4046_v20 = vmul.f32 %v3870_v21, %v2034_v1  ;;  %v1851_v47 = vrot.slane %v1845_v25, 3  ;;  %v4060_v21 = vpop.permute.xlu0 %1640 }
 0x21d   : > { %v1723_v33 = vsel %vm1720_vm11, %v1721_v36, %v1722_v50  ;;  %v1771_v19 = vsel %vm1720_vm11, %v1769_v63, %v1770_v52  ;;  %v1788_v53 = vsel %vm1655_vm10, %v1786_v40, %v1787_v39  ;;  %v1836_v38 = vsel %vm1655_vm10, %v1834_v48, %v1835_v22 }
 0x21e   : > { %v1729_v42 = vadd.f32 %v1723_v33, %v1670_v59  ;;  %v1777_v18 = vadd.f32 %v1771_v19, %v1708_v27  ;;  %v1889_v54 = vmul.f32 %v3895_v56, %v1878_v12  ;;  %vm1623_vm15 = vcmp.gt.f32.partialorder %v3947_v57, 0.0 }
 0x21f   : > { %v1626_v49 = vmul.f32 3.0, %v3947_v57  ;;  %v1627_v28 = vmul.f32 3.0, %v4025_v23  ;;  %v1853_v62 = vsel %vm1818_vm7, %v1851_v47, %v1852_v31  ;;  %v4058_v26 = vmul.f32 %v1885_v60, %v1879_v7 }
 0x220   : > { %v1794_v34 = vadd.f32 %v1788_v53, %v1729_v42  ;;  %vm1624_vm0 = vcmp.gt.f32.partialorder %v4025_v23, 0.0  ;;  %v1688_v51 = vrot.slane %v4025_v23, 7  ;;  %v2059_v56 = vrot.slane %v4029_v14, 2 }
 0x221   : > { %v4067_v1 = vmul.f32 %v1643_v15, %v1631_v32  ;;  %v1842_v36 = vadd.f32 %v1836_v38, %v1777_v18  ;;  %v1743_v33 = vrot.slane %v4025_v23, 6  ;;  %v1808_v63 = vrot.slane %v4025_v23, 5 }
 0x222   : > { %v1859_v37 = vadd.f32 %v1853_v62, %v1794_v34  ;;  %v1689_v59 = vsel %vm1684_vm14, %v1686_v3, %v1688_v51  ;;  %v1873_v5 = vrot.slane %v4025_v23, 4  ;;  %v1895_v16 = vrot.slane %v1889_v54, 3 }
 0x223   : > { %v1629_v17 = vsel %vm1623_vm15, %v3947_v57, %v1626_v49  ;;  %v1630_v13 = vsel %vm1624_vm0, %v4025_v23, %v1627_v28  ;;  %v1644_v42 = vrot.slane %v4060_v21, 6  ;;  %v1907_v2 = vrot.slane %v4058_v26, 4 }
 0x224   : > { %v1695_v19 = vsub.f32 %v4025_v23, %v1689_v59  ;;  %v1744_v3 = vsel %vm1642_vm12, %v1741_v6, %v1743_v33  ;;  %v1809_v40 = vsel %vm1698_vm2, %v1806_v11, %v1808_v63  ;;  %v1906_v25 = vrot.slane %v1889_v54, 4 }
 0x225   : > { %v1671_v27 = vmul.f32 -0.357193, %v3947_v57  ;;  %v1750_v12 = vsub.f32 %v4025_v23, %v1744_v3  ;;  %v1874_v53 = vsel %vm1753_vm5, %v1871_v29, %v1873_v5  ;;  %v1632_v48 = vand.u32 2147483647, %v1629_v17 }
 0x226   : > { %v1633_v7 = vand.u32 2147483647, %v1630_v13  ;;  %v1707_v60 = vmul.f32 %v1700_v4, %v1695_v19  ;;  %v1815_v6 = vsub.f32 %v4025_v23, %v1809_v40  ;;  %v1896_v32 = vrot.slane %v4058_v26, 3 }
 0x227   : > { %v1645_v11 = vsel %vm1642_vm12, %v1643_v15, %v1644_v42  ;;  %v1672_v18 = vmul.f32 -0.357193, %v4025_v23  ;;  %v1762_v57 = vmul.f32 %v1755_v46, %v1750_v12  ;;  %v1908_v29 = vsel %vm1753_vm5, %v1906_v25, %v1907_v2 }
 0x228   : > { %v1716_v34 = vmul.f32 -0.607143, %v1707_v60  ;;  %v1827_v58 = vmul.f32 %v1820_v44, %v1815_v6  ;;  %v1880_v4 = vsub.f32 %v4025_v23, %v1874_v53  ;;  %v1914_v38 = vadd.f32 %v1908_v29, %v1859_v37 }
 0x229   : > { %v1709_v47 = vmul.f32 0.25, %v3983_v24  ;;  %v1765_v54 = vmul.f32 0.5, %v1762_v57  ;;  %v1782_v15 = vmul.f32 -0.285714, %v1762_v57  ;;  %v1650_v49 = vmul.f32 %v1645_v11, %v1632_v48 }
 0x22a   : > { %v1651_v28 = vmul.f32 %v1644_v42, %v1633_v7  ;;  %v1724_v62 = vrot.slane %v1716_v34, 1  ;;  %v1830_v30 = vmul.f32 0.75, %v1827_v58  ;;  %v1710_v46 = vmul.f32 0.25, %v1707_v60 }
 0x22b   : > { %v1772_v51 = vrot.slane %v1765_v54, 1  ;;  %v1789_v59 = vrot.slane %v1782_v15, 2  ;;  %v1847_v33 = vmul.f32 0.25, %v1827_v58  ;;  %v1891_v23 = vmul.f32 %v1884_v8, %v1880_v4 }
 0x22c   : > { %v1725_v61 = vsel %vm1720_vm11, %v1722_v50, %v1724_v62  ;;  %v1731_v44 = vadd.f32 %v1724_v62, %v1672_v18  ;;  %v1837_v63 = vrot.slane %v1830_v30, 2  ;;  %v1897_v24 = vsel %vm1818_vm7, %v1895_v16, %v1896_v32 }
 0x22d   : > { %v1730_v37 = vadd.f32 %v1725_v61, %v1671_v27  ;;  %v1773_v5 = vsel %vm1720_vm11, %v1770_v52, %v1772_v51  ;;  %v1779_v17 = vadd.f32 %v1772_v51, %v1710_v46  ;;  %v1903_v13 = vadd.f32 %v1897_v24, %v1842_v36 }
 0x22e   : > { %v1778_v42 = vadd.f32 %v1773_v5, %v1709_v47  ;;  %v1790_v35 = vsel %vm1655_vm10, %v1787_v39, %v1789_v59  ;;  %v1796_v50 = vadd.f32 %v1789_v59, %v1731_v44  ;;  %v1920_v19 = vand.u32 2147483647, %v1914_v38 }
 0x22f   : > { %v1659_v3 = vrot.slane %v1651_v28, 2  ;;  %v1795_v40 = vadd.f32 %v1790_v35, %v1730_v37  ;;  %v1854_v45 = vrot.slane %v1847_v33, 3  ;;  %v1657_v8 = vrot.slane %v1650_v49, 2 }
 0x230   : > { %v1838_v16 = vsel %vm1655_vm10, %v1835_v22, %v1837_v63  ;;  %v1898_v41 = vrot.slane %v1891_v23, 3  ;;  %v1909_v25 = vrot.slane %v1891_v23, 4  ;;  %v1844_v27 = vadd.f32 %v1837_v63, %v1779_v17 }
 0x231   : > { %v1843_v52 = vadd.f32 %v1838_v16, %v1778_v42  ;;  %v1855_v10 = vsel %vm1818_vm7, %v1852_v31, %v1854_v45  ;;  %v1861_v36 = vadd.f32 %v1854_v45, %v1796_v50  ;;  %v2056_v39 = vrot.slane %v4043_v43, 2 }
 0x232   : > { %v2057_v12 = vrot.slane %v4046_v20, 2  ;;  %v1656_v53 = vrot.slane %v4067_v1, 2  ;;  %v1860_v48 = vadd.f32 %v1855_v10, %v1795_v40  ;;  %v1926_v7 = vrot.slane %v1920_v19, 7 }
 0x233   : > { %v1660_v0 = vsel %vm1655_vm10, %v1657_v8, %v1659_v3  ;;  %v1910_v22 = vsel %vm1753_vm5, %v1907_v2, %v1909_v25  ;;  %v1916_v60 = vadd.f32 %v1909_v25, %v1861_v36  ;;  %v1917_v31 = vand.u32 2147483647, %v1903_v13 }
 0x234   : > { %v2060_v55 = vsel %vm1655_vm10, %v2057_v12, %v2059_v56  ;;  %v1899_v43 = vsel %vm1818_vm7, %v1896_v32, %v1898_v41  ;;  %v1915_v6 = vadd.f32 %v1910_v22, %v1860_v48  ;;  %v1658_v20 = vsel %vm1655_vm10, %v1656_v53, %v1657_v8 }
 0x235   : > { %v1904_v1 = vadd.f32 %v1899_v43, %v1843_v52  ;;  %v1905_v11 = vadd.f32 %v1898_v41, %v1844_v27  ;;  %v1922_v18 = vand.u32 2147483647, %v1916_v60  ;;  %v2058_v57 = vsel %vm1655_vm10, %v2056_v39, %v2057_v12 }
 0x236   : > { %v1663_v29 = vadd.f32 %v1660_v0, %v1658_v20  ;;  %v1921_v26 = vand.u32 2147483647, %v1915_v6  ;;  %v2063_v34 = vadd.f32 %v2060_v55, %v2058_v57  ;;  %v1934_v2 = vadd.f32 %v1926_v7, %v1917_v31 }
 0x237   : > { %v1937_v58 = vrot.slane %v3900_v9, 5  ;;  %v1929_v14 = vrot.slane %v1922_v18, 7  ;;  %v1938_v56 = vrot.slane %v4060_v21, 5  ;;  %v1918_v38 = vand.u32 2147483647, %v1904_v1 }
 0x238   : > { %v1927_v4 = vrot.slane %v1921_v26, 7  ;;  %v1919_v32 = vand.u32 2147483647, %v1905_v11  ;;  %v1664_v47 = vrot.slane %v1663_v29, 4  ;;  %v2064_v49 = vrot.slane %v2063_v34, 4 }
 0x239   : > { %v1943_v28 = vmul.f32 %v1937_v58, %v1934_v2  ;;  %v1939_v46 = vsel %vm1698_vm2, %v1937_v58, %v1938_v56 }
 0x23a   : > { %v1928_v54 = vsel %vm1684_vm14, %v1926_v7, %v1927_v4  ;;  %v1930_v15 = vsel %vm1684_vm14, %v1927_v4, %v1929_v14  ;;  %v1665_v9 = vadd.f32 %v1664_v47, %v1663_v29  ;;  %v2065_v33 = vadd.f32 %v2064_v49, %v2063_v34 }
 0x23b   : > { %v1935_v62 = vadd.f32 %v1928_v54, %v1918_v38  ;;  %v1936_v30 = vadd.f32 %v1930_v15, %v1919_v32  ;;  %v1949_v61 = vrot.slane %v1943_v28, 3 }
 0x23c   : > { %v1666_v24 = vrot.slane %v1665_v9, 2  ;;  %v2066_v5 = vrot.slane %v2065_v33, 2 }
 0x23d   : > { %v1944_v51 = vmul.f32 %v1939_v46, %v1935_v62  ;;  %v1945_v59 = vmul.f32 %v1938_v56, %v1936_v30 }
 0x23e   : > { %v1667_v13 = vadd.f32 %v1666_v24, %v1665_v9  ;;  %v2067_v35 = vadd.f32 %v2066_v5, %v2065_v33 }
 0x23f   : > { %v1950_v44 = vrot.slane %v1944_v51, 3  ;;  %v1952_v21 = vrot.slane %v1945_v59, 3 }
 0x240   : > { %v1668_v19 = vrot.slane %v1667_v13, 1  ;;  %v2068_v40 = vrot.slane %v2067_v35, 1 }
 0x241   : > { %v1951_v63 = vsel %vm1818_vm7, %v1949_v61, %v1950_v44  ;;  %v1953_v23 = vsel %vm1818_vm7, %v1950_v44, %v1952_v21 }
 0x242   : > { %v1956_v37 = vadd.f32 %v1953_v23, %v1951_v63  ;;  %v1669_v8 = vadd.f32 %v1668_v19, %v1667_v13  ;;  %v2069_v41 = vadd.f32 %v2068_v40, %v2067_v35 }
 0x244   : > { %v1957_v17 = vrot.slane %v1956_v37, 4 }
 0x246   : > { %v1958_v42 = vadd.f32 %v1957_v17, %v1956_v37 }
 0x248   : > { %v1959_v50 = vrot.slane %v1958_v42, 2 }
 0x24a   : > { %v1960_v3 = vadd.f32 %v1959_v50, %v1958_v42 }
 0x24c   : > { %v1961_v45 = vrot.slane %v1960_v3, 1 }
 0x24e   : > { %v1962_v16 = vadd.f32 %v1961_v45, %v1960_v3 }
 0x250   : > { %v2070_v25 = vsel %vm1684_vm14, %v1669_v8, %v1962_v16 }
 0x251   : > { %v2071_v52 = vsel %vm1642_vm12, %v2070_v25, %v2069_v41 }
 0x252   : > { %v2072_v27 = vsel %vm1698_vm2, %v2071_v52, 0.0 }
 0x253   : > { %2080 = vst [vmem:[%s257_s10] sm:$0xff] %v2072_v27 }
 0x254 PF: > { %s14_s17 = sadd.s32 1, %s2909_s17   ;;  %s4169_s15 = smov %s2905_s16 }
 0x255   : > { %p11_p5 = scmp.ge.s32.totalorder %s14_s17, 4   ;;  %s4170_s16 = smov %s4172_s18 }
 0x257   :  { %13 = sbr.rel (!%p11_p5) target bundleno = 2 (0x2), region = 77 }

</bundles_post_ra>
